<compile_context>
chip_gen: v5e
topology: v5e:2x2
jax: 0.10.0
libtpu: 0.0.40
codegen_flags: <defaults>
</compile_context>

<pallas_src>
import jax
import jax.numpy as jnp
from jax import lax
from jax.experimental import pallas as pl
from jax.experimental.pallas import tpu as pltpu

EPS = 1e-5


def _fold_bn(gamma, beta, mean, var):
    scale = gamma / jnp.sqrt(var + EPS)
    bias = beta - mean * scale
    return (scale.reshape(1, -1).astype(jnp.float32),
            bias.reshape(1, -1).astype(jnp.float32))


def _pick_vmem_limit():
    # Leave headroom below physical VMEM (notably v7x's 64 MiB per TensorCore).
    try:
        cap = int(pltpu.get_tpu_info().vmem_capacity_bytes)
    except Exception:
        cap = 64 * 1024 * 1024
    return int(min(96 * 1024 * 1024, (cap * 3) // 4))


def _make_kernel(H, W, Cin, planes, stride, has_downsample, fuse_w1_wd):
    HW = H * W
    s = stride
    Ho, Wo = H // s, W // s

    def kernel(*refs):
        it = iter(refs)
        x_ref = next(it)                                # (H, W, Cin)  bf16 (s==1) / f32 (s>1)
        w1_ref, s1_ref, b1_ref = next(it), next(it), next(it)
        w2_ref, s2_ref, b2_ref = next(it), next(it), next(it)
        w3_ref, s3_ref, b3_ref = next(it), next(it), next(it)
        wd_ref = sd_ref = bd_ref = None
        if has_downsample:
            if not fuse_w1_wd:
                wd_ref = next(it)
            sd_ref, bd_ref = next(it), next(it)
        o_ref = next(it)
        pad_ref = next(it)
        py_ref = next(it) if s > 1 else None

        def pool_sum(ref3, C):
            # (H, W, C) ref -> (Ho*Wo, C) f32 window SUMS.  The 1/s^2 average
            # scale is folded into the downstream BN scale in the wrapper.
            wp = ref3[:, pl.ds(0, Wo, s), :].astype(jnp.float32)
            for sw in range(1, s):
                wp = wp + ref3[:, pl.ds(sw, Wo, s), :].astype(jnp.float32)
            wp4 = wp.reshape(Ho, s, Wo, C)              # leading-dim regroup (free)
            hp = wp4[:, 0]
            for sh in range(1, s):
                hp = hp + wp4[:, sh]
            return hp.reshape(Ho * Wo, C)

        # Re-zero only the 1-pixel border of the conv2 pad slab each step; the
        # interior is fully overwritten below.
        zrow = jnp.zeros((1, W + 2, planes), jnp.float32)
        zcol = jnp.zeros((H + 2, 1, planes), jnp.float32)
        pad_ref[0:1, :, :] = zrow
        pad_ref[H + 1:H + 2, :, :] = zrow
        pad_ref[:, 0:1, :] = zcol
        pad_ref[:, W + 1:W + 2, :] = zcol

        x_nat = x_ref[...]                              # native dtype block
        x2d = x_nat.reshape(HW, Cin)
        x_mm = x2d.astype(jnp.bfloat16)                 # no-op when already bf16

        # ---- conv1 (1x1) [+ fused downsample 1x1 when stride == 1] + bn1/relu1
        if fuse_w1_wd:
            y0 = jnp.dot(x_mm, w1_ref[...], preferred_element_type=jnp.float32)
            y = y0[:, :planes]
            iden = y0[:, planes:] * sd_ref[...] + bd_ref[...]
        else:
            y = jnp.dot(x_mm, w1_ref[...], preferred_element_type=jnp.float32)
            iden = None
        y = jnp.maximum(y * s1_ref[...] + b1_ref[...], 0.0)

        # ---- conv2 (3x3, pad=1): padded slab + bf16 im2col, one wide-K dot ---
        pad_ref[1:H + 1, 1:W + 1, :] = y.reshape(H, W, planes)
        taps = [pad_ref[ky:ky + H, kx:kx + W, :].astype(jnp.bfloat16)
                for ky in range(3) for kx in range(3)]
        col = jnp.concatenate(taps, axis=-1).reshape(HW, 9 * planes)
        # TODO(synk): on v7x swap this for 9 MRB-accumulating dots to drop `col`.
        y = jnp.dot(col, w2_ref[...], preferred_element_type=jnp.float32)
        y = jnp.maximum(y * s2_ref[...] + b2_ref[...], 0.0)

        # ---- avgpool(stride) main path (sums; 1/s^2 folded into s3) ----------
        if s > 1:
            py_ref[...] = y.reshape(H, W, planes)
            y = pool_sum(py_ref, planes)

        # ---- conv3 (1x1) + bn3 ------------------------------------------------
        y = jnp.dot(y.astype(jnp.bfloat16), w3_ref[...],
                    preferred_element_type=jnp.float32)
        y = y * s3_ref[...] + b3_ref[...]

        # ---- identity / downsample --------------------------------------------
        if has_downsample:
            if not fuse_w1_wd:
                # stride > 1: pool the identity straight from the input block
                # ref (no extra scratch / copy pass), then 1x1 conv + bn.
                xi = pool_sum(x_ref, Cin) if s > 1 else x2d
                iden = jnp.dot(xi.astype(jnp.bfloat16), wd_ref[...],
                               preferred_element_type=jnp.float32)
                iden = iden * sd_ref[...] + bd_ref[...]
        else:
            iden = x2d.astype(jnp.float32)              # Cin == 4*planes

        o_ref[0] = jnp.maximum(y + iden, 0.0).astype(o_ref.dtype)

    return kernel


def _forward_impl(x_nchw, params, *, stride, single_buffer_weights):
    N, Cin, H, W = x_nchw.shape
    planes = params["conv1_w"].shape[0]
    out_c = planes * 4
    s = stride
    has_downsample = (s > 1) or (Cin != out_c)
    fuse_w1_wd = has_downsample and s == 1
    Ho, Wo = H // s, W // s
    HW, HWo = H * W, Ho * Wo
    assert H % s == 0 and W % s == 0, "avg-pool path assumes divisible spatial dims"
    assert W % 8 == 0 and Wo % 8 == 0, "kernel assumes sublane-friendly widths"

    # bf16 activation DMA for the common (stride==1) case; f32 for stride>1 so
    # the identity-path strided pooling reads 32-bit data (proven-safe path).
    # TODO(synk): move stride>1 blocks to bf16 once packed strided loads are
    #             confirmed on all target Mosaic versions.
    x_dtype = jnp.bfloat16 if s == 1 else jnp.float32
    x_nhwc = jnp.transpose(x_nchw, (0, 2, 3, 1)).astype(x_dtype)   # (N, H, W, Cin)

    # Fold weights / BN params (glue); matmul weights in bf16.
    w1 = params["conv1_w"][:, :, 0, 0].T.astype(jnp.bfloat16)                   # (Cin, P)
    s1, b1 = _fold_bn(params["bn1_g"], params["bn1_b"], params["bn1_m"], params["bn1_v"])
    w2 = jnp.transpose(params["conv2_w"], (2, 3, 1, 0)).reshape(
        9 * planes, planes).astype(jnp.bfloat16)                                # (9P, P)
    s2, b2 = _fold_bn(params["bn2_g"], params["bn2_b"], params["bn2_m"], params["bn2_v"])
    w3 = params["conv3_w"][:, :, 0, 0].T.astype(jnp.bfloat16)                   # (P, 4P)
    s3, b3 = _fold_bn(params["bn3_g"], params["bn3_b"], params["bn3_m"], params["bn3_v"])
    if s > 1:
        s3 = s3 * (1.0 / (s * s))          # fold main-path avg-pool scale into bn3

    wd = sd = bd = None
    if has_downsample:
        wd = params["down_w"][:, :, 0, 0].T.astype(jnp.bfloat16)                # (Cin, 4P)
        sd, bd = _fold_bn(params["down_g"], params["down_b"],
                          params["down_m"], params["down_v"])
        if s > 1:
            sd = sd * (1.0 / (s * s))      # fold identity avg-pool scale into bn_d

    if fuse_w1_wd:
        # conv1 and the stride-1 downsample 1x1 share their input: fuse into one
        # wider matmul (better MXU N-dim utilisation), split columns in-kernel.
        first_w = jnp.concatenate([w1, wd], axis=1)                             # (Cin, 5P)
    else:
        first_w = w1

    weight_args = [first_w, s1, b1, w2, s2, b2, w3, s3, b3]
    if has_downsample:
        if not fuse_w1_wd:
            weight_args.append(wd)
        weight_args += [sd, bd]

    def invariant_spec(a):
        nd = a.ndim
        index_map = lambda n, _nd=nd: (0,) * _nd
        if single_buffer_weights:
            # Grid-invariant operand: a second pipeline buffer is pure VMEM waste.
            return pl.BlockSpec(a.shape, index_map, pipeline_mode=pl.Buffered(1))
        return pl.BlockSpec(a.shape, index_map)

    in_specs = [pl.BlockSpec((None, H, W, Cin), lambda n: (n, 0, 0, 0))]
    in_specs += [invariant_spec(a) for a in weight_args]

    scratch = [pltpu.VMEM((H + 2, W + 2, planes), jnp.float32)]   # conv2 zero-pad slab
    if s > 1:
        scratch.append(pltpu.VMEM((H, W, planes), jnp.float32))   # main-path pool staging

    # Advisory cost estimate (MXU flops dominate).
    flops = (2 * HW * Cin * planes + 2 * HW * (9 * planes) * planes
             + 2 * HWo * planes * out_c)
    if has_downsample:
        flops += 2 * HWo * Cin * out_c
    if s > 1:
        flops += HW * (planes + Cin)
    flops *= N
    bytes_accessed = (int(x_nhwc.size) * x_nhwc.dtype.itemsize
                      + sum(int(a.size) * a.dtype.itemsize for a in weight_args)
                      + N * HWo * out_c * 4)
    cost = pl.CostEstimate(flops=int(flops), transcendentals=0,
                           bytes_accessed=int(bytes_accessed))

    kernel = _make_kernel(H, W, Cin, planes, s, has_downsample, fuse_w1_wd)
    out = pl.pallas_call(
        kernel,
        out_shape=jax.ShapeDtypeStruct((N, HWo, out_c), jnp.float32),
        grid_spec=pltpu.PrefetchScalarGridSpec(
            num_scalar_prefetch=0,
            grid=(N,),
            in_specs=in_specs,
            out_specs=pl.BlockSpec((1, HWo, out_c), lambda n: (n, 0, 0)),
            scratch_shapes=scratch,
        ),
        compiler_params=pltpu.CompilerParams(
            dimension_semantics=("parallel",),
            vmem_limit_bytes=_pick_vmem_limit(),
        ),
        cost_estimate=cost,
    )(x_nhwc, *weight_args)

    # (N, Ho*Wo, 4*planes) -> NCHW (glue)
    return jnp.transpose(out.reshape(N, Ho, Wo, out_c), (0, 3, 1, 2))


def bottleneck_forward(x_nchw, params, *, stride):
    """NCHW f32 in/out, eval-mode (folded) BN.  Tries single-buffered
    grid-invariant weight operands first; falls back transparently if this
    jax/Mosaic version rejects pipeline_mode=pl.Buffered(1)."""
    try:
        return _forward_impl(x_nchw, params, stride=stride, single_buffer_weights=True)
    except Exception:
        return _forward_impl(x_nchw, params, stride=stride, single_buffer_weights=False)


def bottleneck_reference(x, params, *, stride):
    """Pure-JAX (XLA conv, f32) reference of the PyTorch forward (eval-mode BN)."""
    def conv(x, w, pad):
        return lax.conv_general_dilated(
            x, w, window_strides=(1, 1), padding=pad,
            dimension_numbers=("NCHW", "OIHW", "NCHW"))

    def bn(x, g, b, m, v):
        s = g / jnp.sqrt(v + EPS)
        return x * s[None, :, None, None] + (b - m * s)[None, :, None, None]

    def avgpool(x, s):
        if s == 1:
            return x
        return lax.reduce_window(x, 0.0, lax.add,
                                 (1, 1, s, s), (1, 1, s, s), "VALID") / float(s * s)

    planes = params["conv1_w"].shape[0]
    Cin = x.shape[1]
    out = jax.nn.relu(bn(conv(x, params["conv1_w"], "VALID"),
                         params["bn1_g"], params["bn1_b"], params["bn1_m"], params["bn1_v"]))
    out = jax.nn.relu(bn(conv(out, params["conv2_w"], [(1, 1), (1, 1)]),
                         params["bn2_g"], params["bn2_b"], params["bn2_m"], params["bn2_v"]))
    out = avgpool(out, stride)
    out = bn(conv(out, params["conv3_w"], "VALID"),
             params["bn3_g"], params["bn3_b"], params["bn3_m"], params["bn3_v"])
    if stride > 1 or Cin != planes * 4:
        iden = avgpool(x, stride)
        iden = bn(conv(iden, params["down_w"], "VALID"),
                  params["down_g"], params["down_b"], params["down_m"], params["down_v"])
    else:
        iden = x
    return jax.nn.relu(out + iden)


def _make_params(key, Cin, planes, with_down):
    out_c = planes * 4
    ks = jax.random.split(key, 8)

    def bn_init(k, c):
        k1, k2, k3, k4 = jax.random.split(k, 4)
        return dict(
            g=1.0 + 0.1 * jax.random.normal(k1, (c,), jnp.float32),
            b=0.1 * jax.random.normal(k2, (c,), jnp.float32),
            m=0.1 * jax.random.normal(k3, (c,), jnp.float32),
            v=jax.random.uniform(k4, (c,), jnp.float32, minval=0.5, maxval=1.5),
        )

    params = {}
    params["conv1_w"] = 0.2 * jax.random.normal(ks[0], (planes, Cin, 1, 1), jnp.float32)
    for n_, v_ in bn_init(ks[1], planes).items():
        params["bn1_" + n_] = v_
    params["conv2_w"] = 0.2 * jax.random.normal(ks[2], (planes, planes, 3, 3), jnp.float32)
    for n_, v_ in bn_init(ks[3], planes).items():
        params["bn2_" + n_] = v_
    params["conv3_w"] = 0.2 * jax.random.normal(ks[4], (out_c, planes, 1, 1), jnp.float32)
    for n_, v_ in bn_init(ks[5], out_c).items():
        params["bn3_" + n_] = v_
    if with_down:
        params["down_w"] = 0.2 * jax.random.normal(ks[6], (out_c, Cin, 1, 1), jnp.float32)
        for n_, v_ in bn_init(ks[7], out_c).items():
            params["down_" + n_] = v_
    return params


if __name__ == "__main__":
    key = jax.random.PRNGKey(0)
    k_a, k_b, k_c, k_xa, k_xb, k_xc = jax.random.split(key, 6)

    # bf16 matmul operands with f32 accumulation -> relaxed tolerance vs f32 ref.
    TOL = 5e-2

    # Config A: stride=2, downsample branch (pooled identity read from x_ref).
    N, Cin, H, W, planes, stride = 2, 16, 16, 16, 8, 2
    params_a = _make_params(k_a, Cin, planes, with_down=True)
    x_a = jax.random.normal(k_xa, (N, Cin, H, W), jnp.float32)
    out_a = jax.block_until_ready(bottleneck_forward(x_a, params_a, stride=stride))
    ref_a = bottleneck_reference(x_a, params_a, stride=stride)
    assert out_a.shape == (N, planes * 4, H // stride, W // stride), out_a.shape
    err_a = float(jnp.max(jnp.abs(out_a - ref_a)))
    assert err_a < TOL, f"stride-2 max abs err {err_a}"

    # Config B: stride=1, plain identity (Cin == 4*planes), bf16 activation DMA.
    N, Cin, H, W, planes, stride = 2, 32, 16, 16, 8, 1
    params_b = _make_params(k_b, Cin, planes, with_down=False)
    x_b = jax.random.normal(k_xb, (N, Cin, H, W), jnp.float32)
    out_b = jax.block_until_ready(bottleneck_forward(x_b, params_b, stride=stride))
    ref_b = bottleneck_reference(x_b, params_b, stride=stride)
    assert out_b.shape == (N, planes * 4, H, W), out_b.shape
    err_b = float(jnp.max(jnp.abs(out_b - ref_b)))
    assert err_b < TOL, f"stride-1 max abs err {err_b}"

    # Config C: stride=1 with channel-changing downsample (fused w1||wd matmul).
    N, Cin, H, W, planes, stride = 2, 16, 16, 16, 8, 1
    params_c = _make_params(k_c, Cin, planes, with_down=True)
    x_c = jax.random.normal(k_xc, (N, Cin, H, W), jnp.float32)
    out_c_arr = jax.block_until_ready(bottleneck_forward(x_c, params_c, stride=stride))
    ref_c = bottleneck_reference(x_c, params_c, stride=stride)
    assert out_c_arr.shape == (N, planes * 4, H, W), out_c_arr.shape
    err_c = float(jnp.max(jnp.abs(out_c_arr - ref_c)))
    assert err_c < TOL, f"stride-1-downsample max abs err {err_c}"

    print("KERNEL_OK")
</pallas_src>

<mosaic_0001>
module attributes {stable_mosaic.version = 11 : i64} {
  func.func @kernel(%arg0: i32, %arg1: memref<1x16x16x16xf32, #tpu.memory_space<vmem>>, %arg2: memref<16x8xbf16, #tpu.memory_space<vmem>>, %arg3: memref<1x8xf32, #tpu.memory_space<vmem>>, %arg4: memref<1x8xf32, #tpu.memory_space<vmem>>, %arg5: memref<72x8xbf16, #tpu.memory_space<vmem>>, %arg6: memref<1x8xf32, #tpu.memory_space<vmem>>, %arg7: memref<1x8xf32, #tpu.memory_space<vmem>>, %arg8: memref<8x32xbf16, #tpu.memory_space<vmem>>, %arg9: memref<1x32xf32, #tpu.memory_space<vmem>>, %arg10: memref<1x32xf32, #tpu.memory_space<vmem>>, %arg11: memref<16x32xbf16, #tpu.memory_space<vmem>>, %arg12: memref<1x32xf32, #tpu.memory_space<vmem>>, %arg13: memref<1x32xf32, #tpu.memory_space<vmem>>, %arg14: memref<1x64x32xf32, #tpu.memory_space<vmem>>, %arg15: memref<18x18x8xf32, #tpu.memory_space<vmem>>, %arg16: memref<16x16x8xf32, #tpu.memory_space<vmem>>) attributes {dimension_semantics = [#tpu.dimension_semantics<parallel>], iteration_bounds = array<i64: 2>, scalar_prefetch = 0 : i64, scratch_operands = 2 : i64, tpu.core_type = #tpu.core_type<tc>, window_params = [{transform_indices = @transform_0, window_bounds = array<i64: 1, 16, 16, 16>}, {pipeline_mode = #tpu.pipeline_mode<synchronous>, transform_indices = @transform_1, window_bounds = array<i64: 16, 8>}, {pipeline_mode = #tpu.pipeline_mode<synchronous>, transform_indices = @transform_2, window_bounds = array<i64: 1, 8>}, {pipeline_mode = #tpu.pipeline_mode<synchronous>, transform_indices = @transform_3, window_bounds = array<i64: 1, 8>}, {pipeline_mode = #tpu.pipeline_mode<synchronous>, transform_indices = @transform_4, window_bounds = array<i64: 72, 8>}, {pipeline_mode = #tpu.pipeline_mode<synchronous>, transform_indices = @transform_5, window_bounds = array<i64: 1, 8>}, {pipeline_mode = #tpu.pipeline_mode<synchronous>, transform_indices = @transform_6, window_bounds = array<i64: 1, 8>}, {pipeline_mode = #tpu.pipeline_mode<synchronous>, transform_indices = @transform_7, window_bounds = array<i64: 8, 32>}, {pipeline_mode = #tpu.pipeline_mode<synchronous>, transform_indices = @transform_8, window_bounds = array<i64: 1, 32>}, {pipeline_mode = #tpu.pipeline_mode<synchronous>, transform_indices = @transform_9, window_bounds = array<i64: 1, 32>}, {pipeline_mode = #tpu.pipeline_mode<synchronous>, transform_indices = @transform_10, window_bounds = array<i64: 16, 32>}, {pipeline_mode = #tpu.pipeline_mode<synchronous>, transform_indices = @transform_11, window_bounds = array<i64: 1, 32>}, {pipeline_mode = #tpu.pipeline_mode<synchronous>, transform_indices = @transform_12, window_bounds = array<i64: 1, 32>}, {transform_indices = @transform_13, window_bounds = array<i64: 1, 64, 32>}]} {
    %cst = arith.constant 0.000000e+00 : f32
    %0 = vector.broadcast %cst : f32 to vector<1x18x8xf32>
    %cst_0 = arith.constant 0.000000e+00 : f32
    %1 = vector.broadcast %cst_0 : f32 to vector<18x1x8xf32>
    %c0 = arith.constant 0 : index
    %c0_1 = arith.constant 0 : index
    %c0_2 = arith.constant 0 : index
    %2 = vector.load %arg15[%c0, %c0_1, %c0_2] : memref<18x18x8xf32, #tpu.memory_space<vmem>>, vector<1x18x8xf32>
    tpu.vector_store %arg15[%c0, %c0_1, %c0_2], %0 {strides = array<i32>} : memref<18x18x8xf32, #tpu.memory_space<vmem>>, vector<1x18x8xf32>,
    %c17 = arith.constant 17 : index
    %c0_3 = arith.constant 0 : index
    %c0_4 = arith.constant 0 : index
    %3 = vector.load %arg15[%c17, %c0_3, %c0_4] : memref<18x18x8xf32, #tpu.memory_space<vmem>>, vector<1x18x8xf32>
    tpu.vector_store %arg15[%c17, %c0_3, %c0_4], %0 {strides = array<i32>} : memref<18x18x8xf32, #tpu.memory_space<vmem>>, vector<1x18x8xf32>,
    %c0_5 = arith.constant 0 : index
    %c0_6 = arith.constant 0 : index
    %c0_7 = arith.constant 0 : index
    %4 = vector.load %arg15[%c0_5, %c0_6, %c0_7] : memref<18x18x8xf32, #tpu.memory_space<vmem>>, vector<18x1x8xf32>
    tpu.vector_store %arg15[%c0_5, %c0_6, %c0_7], %1 {strides = array<i32>} : memref<18x18x8xf32, #tpu.memory_space<vmem>>, vector<18x1x8xf32>,
    %c0_8 = arith.constant 0 : index
    %c17_9 = arith.constant 17 : index
    %c0_10 = arith.constant 0 : index
    %5 = vector.load %arg15[%c0_8, %c17_9, %c0_10] : memref<18x18x8xf32, #tpu.memory_space<vmem>>, vector<18x1x8xf32>
    tpu.vector_store %arg15[%c0_8, %c17_9, %c0_10], %1 {strides = array<i32>} : memref<18x18x8xf32, #tpu.memory_space<vmem>>, vector<18x1x8xf32>,
    %c0_11 = arith.constant 0 : index
    %c0_12 = arith.constant 0 : index
    %c0_13 = arith.constant 0 : index
    %c0_14 = arith.constant 0 : index
    %6 = vector.load %arg1[%c0_11, %c0_12, %c0_13, %c0_14] : memref<1x16x16x16xf32, #tpu.memory_space<vmem>>, vector<1x16x16x16xf32>
    %7 = vector.shape_cast %6 : vector<1x16x16x16xf32> to vector<16x16x16xf32>
    %8 = vector.shape_cast %7 : vector<16x16x16xf32> to vector<256x16xf32>
    %9 = arith.truncf %8 : vector<256x16xf32> to vector<256x16xbf16>
    %c0_15 = arith.constant 0 : index
    %c0_16 = arith.constant 0 : index
    %10 = vector.load %arg2[%c0_15, %c0_16] : memref<16x8xbf16, #tpu.memory_space<vmem>>, vector<16x8xbf16>
    %cst_17 = arith.constant dense<0.000000e+00> : vector<256x8xf32>
    %11 = tpu.matmul %9, %10, %cst_17 {dimension_numbers = #tpu.dot_dimension_numbers<[1], [0], [0], [1], [0, 0, 1, 1], [], []>} : vector<256x16xbf16>, vector<16x8xbf16>, vector<256x8xf32> -> vector<256x8xf32>
    %c0_18 = arith.constant 0 : index
    %c0_19 = arith.constant 0 : index
    %12 = vector.load %arg3[%c0_18, %c0_19] : memref<1x8xf32, #tpu.memory_space<vmem>>, vector<1x8xf32>
    %13 = vector.broadcast %12 : vector<1x8xf32> to vector<256x8xf32>
    %14 = arith.mulf %11, %13 : vector<256x8xf32>
    %c0_20 = arith.constant 0 : index
    %c0_21 = arith.constant 0 : index
    %15 = vector.load %arg4[%c0_20, %c0_21] : memref<1x8xf32, #tpu.memory_space<vmem>>, vector<1x8xf32>
    %16 = vector.broadcast %15 : vector<1x8xf32> to vector<256x8xf32>
    %17 = arith.addf %14, %16 : vector<256x8xf32>
    %cst_22 = arith.constant 0.000000e+00 : f32
    %18 = vector.broadcast %cst_22 : f32 to vector<256x8xf32>
    %19 = arith.maximumf %17, %18 : vector<256x8xf32>
    %20 = vector.shape_cast %19 : vector<256x8xf32> to vector<16x16x8xf32>
    %c1 = arith.constant 1 : index
    %c1_23 = arith.constant 1 : index
    %c0_24 = arith.constant 0 : index
    %21 = vector.load %arg15[%c1, %c1_23, %c0_24] : memref<18x18x8xf32, #tpu.memory_space<vmem>>, vector<16x16x8xf32>
    tpu.vector_store %arg15[%c1, %c1_23, %c0_24], %20 {strides = array<i32>} : memref<18x18x8xf32, #tpu.memory_space<vmem>>, vector<16x16x8xf32>,
    %c0_25 = arith.constant 0 : index
    %c0_26 = arith.constant 0 : index
    %c0_27 = arith.constant 0 : index
    %22 = vector.load %arg15[%c0_25, %c0_26, %c0_27] : memref<18x18x8xf32, #tpu.memory_space<vmem>>, vector<16x16x8xf32>
    %23 = arith.truncf %22 : vector<16x16x8xf32> to vector<16x16x8xbf16>
    %c0_28 = arith.constant 0 : index
    %c1_29 = arith.constant 1 : index
    %c0_30 = arith.constant 0 : index
    %24 = vector.load %arg15[%c0_28, %c1_29, %c0_30] : memref<18x18x8xf32, #tpu.memory_space<vmem>>, vector<16x16x8xf32>
    %25 = arith.truncf %24 : vector<16x16x8xf32> to vector<16x16x8xbf16>
    %c0_31 = arith.constant 0 : index
    %c2 = arith.constant 2 : index
    %c0_32 = arith.constant 0 : index
    %26 = vector.load %arg15[%c0_31, %c2, %c0_32] : memref<18x18x8xf32, #tpu.memory_space<vmem>>, vector<16x16x8xf32>
    %27 = arith.truncf %26 : vector<16x16x8xf32> to vector<16x16x8xbf16>
    %c1_33 = arith.constant 1 : index
    %c0_34 = arith.constant 0 : index
    %c0_35 = arith.constant 0 : index
    %28 = vector.load %arg15[%c1_33, %c0_34, %c0_35] : memref<18x18x8xf32, #tpu.memory_space<vmem>>, vector<16x16x8xf32>
    %29 = arith.truncf %28 : vector<16x16x8xf32> to vector<16x16x8xbf16>
    %c1_36 = arith.constant 1 : index
    %c1_37 = arith.constant 1 : index
    %c0_38 = arith.constant 0 : index
    %30 = vector.load %arg15[%c1_36, %c1_37, %c0_38] : memref<18x18x8xf32, #tpu.memory_space<vmem>>, vector<16x16x8xf32>
    %31 = arith.truncf %30 : vector<16x16x8xf32> to vector<16x16x8xbf16>
    %c1_39 = arith.constant 1 : index
    %c2_40 = arith.constant 2 : index
    %c0_41 = arith.constant 0 : index
    %32 = vector.load %arg15[%c1_39, %c2_40, %c0_41] : memref<18x18x8xf32, #tpu.memory_space<vmem>>, vector<16x16x8xf32>
    %33 = arith.truncf %32 : vector<16x16x8xf32> to vector<16x16x8xbf16>
    %c2_42 = arith.constant 2 : index
    %c0_43 = arith.constant 0 : index
    %c0_44 = arith.constant 0 : index
    %34 = vector.load %arg15[%c2_42, %c0_43, %c0_44] : memref<18x18x8xf32, #tpu.memory_space<vmem>>, vector<16x16x8xf32>
    %35 = arith.truncf %34 : vector<16x16x8xf32> to vector<16x16x8xbf16>
    %c2_45 = arith.constant 2 : index
    %c1_46 = arith.constant 1 : index
    %c0_47 = arith.constant 0 : index
    %36 = vector.load %arg15[%c2_45, %c1_46, %c0_47] : memref<18x18x8xf32, #tpu.memory_space<vmem>>, vector<16x16x8xf32>
    %37 = arith.truncf %36 : vector<16x16x8xf32> to vector<16x16x8xbf16>
    %c2_48 = arith.constant 2 : index
    %c2_49 = arith.constant 2 : index
    %c0_50 = arith.constant 0 : index
    %38 = vector.load %arg15[%c2_48, %c2_49, %c0_50] : memref<18x18x8xf32, #tpu.memory_space<vmem>>, vector<16x16x8xf32>
    %39 = arith.truncf %38 : vector<16x16x8xf32> to vector<16x16x8xbf16>
    %40 = tpu.concatenate %23, %25, %27, %29, %31, %33, %35, %37, %39 in 2 : vector<16x16x8xbf16>, vector<16x16x8xbf16>, vector<16x16x8xbf16>, vector<16x16x8xbf16>, vector<16x16x8xbf16>, vector<16x16x8xbf16>, vector<16x16x8xbf16>, vector<16x16x8xbf16>, vector<16x16x8xbf16> -> vector<16x16x72xbf16>
    %41 = vector.shape_cast %40 : vector<16x16x72xbf16> to vector<256x72xbf16>
    %c0_51 = arith.constant 0 : index
    %c0_52 = arith.constant 0 : index
    %42 = vector.load %arg5[%c0_51, %c0_52] : memref<72x8xbf16, #tpu.memory_space<vmem>>, vector<72x8xbf16>
    %cst_53 = arith.constant dense<0.000000e+00> : vector<256x8xf32>
    %43 = tpu.matmul %41, %42, %cst_53 {dimension_numbers = #tpu.dot_dimension_numbers<[1], [0], [0], [1], [0, 0, 1, 1], [], []>} : vector<256x72xbf16>, vector<72x8xbf16>, vector<256x8xf32> -> vector<256x8xf32>
    %c0_54 = arith.constant 0 : index
    %c0_55 = arith.constant 0 : index
    %44 = vector.load %arg6[%c0_54, %c0_55] : memref<1x8xf32, #tpu.memory_space<vmem>>, vector<1x8xf32>
    %45 = vector.broadcast %44 : vector<1x8xf32> to vector<256x8xf32>
    %46 = arith.mulf %43, %45 : vector<256x8xf32>
    %c0_56 = arith.constant 0 : index
    %c0_57 = arith.constant 0 : index
    %47 = vector.load %arg7[%c0_56, %c0_57] : memref<1x8xf32, #tpu.memory_space<vmem>>, vector<1x8xf32>
    %48 = vector.broadcast %47 : vector<1x8xf32> to vector<256x8xf32>
    %49 = arith.addf %46, %48 : vector<256x8xf32>
    %cst_58 = arith.constant 0.000000e+00 : f32
    %50 = vector.broadcast %cst_58 : f32 to vector<256x8xf32>
    %51 = arith.maximumf %49, %50 : vector<256x8xf32>
    %52 = vector.shape_cast %51 : vector<256x8xf32> to vector<16x16x8xf32>
    %c0_59 = arith.constant 0 : index
    %c0_60 = arith.constant 0 : index
    %c0_61 = arith.constant 0 : index
    %53 = vector.load %arg16[%c0_59, %c0_60, %c0_61] : memref<16x16x8xf32, #tpu.memory_space<vmem>>, vector<16x16x8xf32>
    tpu.vector_store %arg16[%c0_59, %c0_60, %c0_61], %52 {strides = array<i32>} : memref<16x16x8xf32, #tpu.memory_space<vmem>>, vector<16x16x8xf32>,
    %c0_62 = arith.constant 0 : index
    %c0_63 = arith.constant 0 : index
    %c0_64 = arith.constant 0 : index
    %54 = tpu.strided_load %arg16[%c0_62, %c0_63, %c0_64] {strides = array<i32: 1, 2, 1>} : memref<16x16x8xf32, #tpu.memory_space<vmem>>, vector<16x8x8xf32>
    %c0_65 = arith.constant 0 : index
    %c1_66 = arith.constant 1 : index
    %c0_67 = arith.constant 0 : index
    %55 = tpu.strided_load %arg16[%c0_65, %c1_66, %c0_67] {strides = array<i32: 1, 2, 1>} : memref<16x16x8xf32, #tpu.memory_space<vmem>>, vector<16x8x8xf32>
    %56 = arith.addf %54, %55 : vector<16x8x8xf32>
    %57 = vector.shape_cast %56 : vector<16x8x8xf32> to vector<8x2x8x8xf32>
    %58 = vector.extract_strided_slice %57 {offsets = [0, 0, 0, 0], sizes = [8, 1, 8, 8], strides = [1, 1, 1, 1]} : vector<8x2x8x8xf32> to vector<8x1x8x8xf32>
    %59 = vector.shape_cast %58 : vector<8x1x8x8xf32> to vector<8x8x8xf32>
    %60 = vector.extract_strided_slice %57 {offsets = [0, 1, 0, 0], sizes = [8, 1, 8, 8], strides = [1, 1, 1, 1]} : vector<8x2x8x8xf32> to vector<8x1x8x8xf32>
    %61 = vector.shape_cast %60 : vector<8x1x8x8xf32> to vector<8x8x8xf32>
    %62 = arith.addf %59, %61 : vector<8x8x8xf32>
    %63 = vector.shape_cast %62 : vector<8x8x8xf32> to vector<64x8xf32>
    %64 = arith.truncf %63 : vector<64x8xf32> to vector<64x8xbf16>
    %c0_68 = arith.constant 0 : index
    %c0_69 = arith.constant 0 : index
    %65 = vector.load %arg8[%c0_68, %c0_69] : memref<8x32xbf16, #tpu.memory_space<vmem>>, vector<8x32xbf16>
    %cst_70 = arith.constant dense<0.000000e+00> : vector<64x32xf32>
    %66 = tpu.matmul %64, %65, %cst_70 {dimension_numbers = #tpu.dot_dimension_numbers<[1], [0], [0], [1], [0, 0, 1, 1], [], []>} : vector<64x8xbf16>, vector<8x32xbf16>, vector<64x32xf32> -> vector<64x32xf32>
    %c0_71 = arith.constant 0 : index
    %c0_72 = arith.constant 0 : index
    %67 = vector.load %arg9[%c0_71, %c0_72] : memref<1x32xf32, #tpu.memory_space<vmem>>, vector<1x32xf32>
    %68 = vector.broadcast %67 : vector<1x32xf32> to vector<64x32xf32>
    %69 = arith.mulf %66, %68 : vector<64x32xf32>
    %c0_73 = arith.constant 0 : index
    %c0_74 = arith.constant 0 : index
    %70 = vector.load %arg10[%c0_73, %c0_74] : memref<1x32xf32, #tpu.memory_space<vmem>>, vector<1x32xf32>
    %71 = vector.broadcast %70 : vector<1x32xf32> to vector<64x32xf32>
    %72 = arith.addf %69, %71 : vector<64x32xf32>
    %c0_75 = arith.constant 0 : index
    %c0_76 = arith.constant 0 : index
    %c0_77 = arith.constant 0 : index
    %c0_78 = arith.constant 0 : index
    %73 = tpu.strided_load %arg1[%c0_75, %c0_76, %c0_77, %c0_78] {strides = array<i32: 1, 1, 2, 1>} : memref<1x16x16x16xf32, #tpu.memory_space<vmem>>, vector<1x16x8x16xf32>
    %74 = vector.shape_cast %73 : vector<1x16x8x16xf32> to vector<16x8x16xf32>
    %c0_79 = arith.constant 0 : index
    %c0_80 = arith.constant 0 : index
    %c1_81 = arith.constant 1 : index
    %c0_82 = arith.constant 0 : index
    %75 = tpu.strided_load %arg1[%c0_79, %c0_80, %c1_81, %c0_82] {strides = array<i32: 1, 1, 2, 1>} : memref<1x16x16x16xf32, #tpu.memory_space<vmem>>, vector<1x16x8x16xf32>
    %76 = vector.shape_cast %75 : vector<1x16x8x16xf32> to vector<16x8x16xf32>
    %77 = arith.addf %74, %76 : vector<16x8x16xf32>
    %78 = vector.shape_cast %77 : vector<16x8x16xf32> to vector<8x2x8x16xf32>
    %79 = vector.extract_strided_slice %78 {offsets = [0, 0, 0, 0], sizes = [8, 1, 8, 16], strides = [1, 1, 1, 1]} : vector<8x2x8x16xf32> to vector<8x1x8x16xf32>
    %80 = vector.shape_cast %79 : vector<8x1x8x16xf32> to vector<8x8x16xf32>
    %81 = vector.extract_strided_slice %78 {offsets = [0, 1, 0, 0], sizes = [8, 1, 8, 16], strides = [1, 1, 1, 1]} : vector<8x2x8x16xf32> to vector<8x1x8x16xf32>
    %82 = vector.shape_cast %81 : vector<8x1x8x16xf32> to vector<8x8x16xf32>
    %83 = arith.addf %80, %82 : vector<8x8x16xf32>
    %84 = vector.shape_cast %83 : vector<8x8x16xf32> to vector<64x16xf32>
    %85 = arith.truncf %84 : vector<64x16xf32> to vector<64x16xbf16>
    %c0_83 = arith.constant 0 : index
    %c0_84 = arith.constant 0 : index
    %86 = vector.load %arg11[%c0_83, %c0_84] : memref<16x32xbf16, #tpu.memory_space<vmem>>, vector<16x32xbf16>
    %cst_85 = arith.constant dense<0.000000e+00> : vector<64x32xf32>
    %87 = tpu.matmul %85, %86, %cst_85 {dimension_numbers = #tpu.dot_dimension_numbers<[1], [0], [0], [1], [0, 0, 1, 1], [], []>} : vector<64x16xbf16>, vector<16x32xbf16>, vector<64x32xf32> -> vector<64x32xf32>
    %c0_86 = arith.constant 0 : index
    %c0_87 = arith.constant 0 : index
    %88 = vector.load %arg12[%c0_86, %c0_87] : memref<1x32xf32, #tpu.memory_space<vmem>>, vector<1x32xf32>
    %89 = vector.broadcast %88 : vector<1x32xf32> to vector<64x32xf32>
    %90 = arith.mulf %87, %89 : vector<64x32xf32>
    %c0_88 = arith.constant 0 : index
    %c0_89 = arith.constant 0 : index
    %91 = vector.load %arg13[%c0_88, %c0_89] : memref<1x32xf32, #tpu.memory_space<vmem>>, vector<1x32xf32>
    %92 = vector.broadcast %91 : vector<1x32xf32> to vector<64x32xf32>
    %93 = arith.addf %90, %92 : vector<64x32xf32>
    %94 = arith.addf %72, %93 : vector<64x32xf32>
    %cst_90 = arith.constant 0.000000e+00 : f32
    %95 = vector.broadcast %cst_90 : f32 to vector<64x32xf32>
    %96 = arith.maximumf %94, %95 : vector<64x32xf32>
    %c0_91 = arith.constant 0 : index
    %c0_92 = arith.constant 0 : index
    %c0_93 = arith.constant 0 : index
    %97 = vector.load %arg14[%c0_91, %c0_92, %c0_93] : memref<1x64x32xf32, #tpu.memory_space<vmem>>, vector<1x64x32xf32>
    %98 = vector.shape_cast %97 : vector<1x64x32xf32> to vector<64x32xf32>
    %99 = vector.shape_cast %96 : vector<64x32xf32> to vector<1x64x32xf32>
    tpu.vector_store %arg14[%c0_91, %c0_92, %c0_93], %99 {strides = array<i32>} : memref<1x64x32xf32, #tpu.memory_space<vmem>>, vector<1x64x32xf32>,
    return
  }
  func.func @transform_0(%arg0: i32) -> (i32, i32, i32, i32) {
    %c0_i32 = arith.constant 0 : i32
    %c0_i32_0 = arith.constant 0 : i32
    %c0_i32_1 = arith.constant 0 : i32
    %c0_i32_2 = arith.constant 0 : i32
    return %arg0, %c0_i32, %c0_i32_0, %c0_i32_1 : i32, i32, i32, i32
  }
  func.func @transform_1(%arg0: i32) -> (i32, i32) {
    %c0_i32 = arith.constant 0 : i32
    %c0_i32_0 = arith.constant 0 : i32
    %c0_i32_1 = arith.constant 0 : i32
    return %c0_i32, %c0_i32_0 : i32, i32
  }
  func.func @transform_2(%arg0: i32) -> (i32, i32) {
    %c0_i32 = arith.constant 0 : i32
    %c0_i32_0 = arith.constant 0 : i32
    %c0_i32_1 = arith.constant 0 : i32
    return %c0_i32, %c0_i32_0 : i32, i32
  }
  func.func @transform_3(%arg0: i32) -> (i32, i32) {
    %c0_i32 = arith.constant 0 : i32
    %c0_i32_0 = arith.constant 0 : i32
    %c0_i32_1 = arith.constant 0 : i32
    return %c0_i32, %c0_i32_0 : i32, i32
  }
  func.func @transform_4(%arg0: i32) -> (i32, i32) {
    %c0_i32 = arith.constant 0 : i32
    %c0_i32_0 = arith.constant 0 : i32
    %c0_i32_1 = arith.constant 0 : i32
    return %c0_i32, %c0_i32_0 : i32, i32
  }
  func.func @transform_5(%arg0: i32) -> (i32, i32) {
    %c0_i32 = arith.constant 0 : i32
    %c0_i32_0 = arith.constant 0 : i32
    %c0_i32_1 = arith.constant 0 : i32
    return %c0_i32, %c0_i32_0 : i32, i32
  }
  func.func @transform_6(%arg0: i32) -> (i32, i32) {
    %c0_i32 = arith.constant 0 : i32
    %c0_i32_0 = arith.constant 0 : i32
    %c0_i32_1 = arith.constant 0 : i32
    return %c0_i32, %c0_i32_0 : i32, i32
  }
  func.func @transform_7(%arg0: i32) -> (i32, i32) {
    %c0_i32 = arith.constant 0 : i32
    %c0_i32_0 = arith.constant 0 : i32
    %c0_i32_1 = arith.constant 0 : i32
    return %c0_i32, %c0_i32_0 : i32, i32
  }
  func.func @transform_8(%arg0: i32) -> (i32, i32) {
    %c0_i32 = arith.constant 0 : i32
    %c0_i32_0 = arith.constant 0 : i32
    %c0_i32_1 = arith.constant 0 : i32
    return %c0_i32, %c0_i32_0 : i32, i32
  }
  func.func @transform_9(%arg0: i32) -> (i32, i32) {
    %c0_i32 = arith.constant 0 : i32
    %c0_i32_0 = arith.constant 0 : i32
    %c0_i32_1 = arith.constant 0 : i32
    return %c0_i32, %c0_i32_0 : i32, i32
  }
  func.func @transform_10(%arg0: i32) -> (i32, i32) {
    %c0_i32 = arith.constant 0 : i32
    %c0_i32_0 = arith.constant 0 : i32
    %c0_i32_1 = arith.constant 0 : i32
    return %c0_i32, %c0_i32_0 : i32, i32
  }
  func.func @transform_11(%arg0: i32) -> (i32, i32) {
    %c0_i32 = arith.constant 0 : i32
    %c0_i32_0 = arith.constant 0 : i32
    %c0_i32_1 = arith.constant 0 : i32
    return %c0_i32, %c0_i32_0 : i32, i32
  }
  func.func @transform_12(%arg0: i32) -> (i32, i32) {
    %c0_i32 = arith.constant 0 : i32
    %c0_i32_0 = arith.constant 0 : i32
    %c0_i32_1 = arith.constant 0 : i32
    return %c0_i32, %c0_i32_0 : i32, i32
  }
  func.func @transform_13(%arg0: i32) -> (i32, i32, i32) {
    %c0_i32 = arith.constant 0 : i32
    %c0_i32_0 = arith.constant 0 : i32
    %c0_i32_1 = arith.constant 0 : i32
    return %arg0, %c0_i32, %c0_i32_0 : i32, i32, i32
  }
}

module attributes {stable_mosaic.version = 11 : i64} {
  func.func @kernel(%arg0: i32, %arg1: memref<1x16x16x16xf32, #tpu.memory_space<vmem>>, %arg2: memref<16x8xbf16, #tpu.memory_space<vmem>>, %arg3: memref<1x8xf32, #tpu.memory_space<vmem>>, %arg4: memref<1x8xf32, #tpu.memory_space<vmem>>, %arg5: memref<72x8xbf16, #tpu.memory_space<vmem>>, %arg6: memref<1x8xf32, #tpu.memory_space<vmem>>, %arg7: memref<1x8xf32, #tpu.memory_space<vmem>>, %arg8: memref<8x32xbf16, #tpu.memory_space<vmem>>, %arg9: memref<1x32xf32, #tpu.memory_space<vmem>>, %arg10: memref<1x32xf32, #tpu.memory_space<vmem>>, %arg11: memref<16x32xbf16, #tpu.memory_space<vmem>>, %arg12: memref<1x32xf32, #tpu.memory_space<vmem>>, %arg13: memref<1x32xf32, #tpu.memory_space<vmem>>, %arg14: memref<1x64x32xf32, #tpu.memory_space<vmem>>, %arg15: memref<18x18x8xf32, #tpu.memory_space<vmem>>, %arg16: memref<16x16x8xf32, #tpu.memory_space<vmem>>) attributes {dimension_semantics = [#tpu.dimension_semantics<parallel>], iteration_bounds = array<i64: 2>, scalar_prefetch = 0 : i64, scratch_operands = 2 : i64, tpu.core_type = #tpu.core_type<tc>, window_params = [{transform_indices = @transform_0, window_bounds = array<i64: 1, 16, 16, 16>}, {pipeline_mode = #tpu.pipeline_mode<synchronous>, transform_indices = @transform_1, window_bounds = array<i64: 16, 8>}, {pipeline_mode = #tpu.pipeline_mode<synchronous>, transform_indices = @transform_2, window_bounds = array<i64: 1, 8>}, {pipeline_mode = #tpu.pipeline_mode<synchronous>, transform_indices = @transform_3, window_bounds = array<i64: 1, 8>}, {pipeline_mode = #tpu.pipeline_mode<synchronous>, transform_indices = @transform_4, window_bounds = array<i64: 72, 8>}, {pipeline_mode = #tpu.pipeline_mode<synchronous>, transform_indices = @transform_5, window_bounds = array<i64: 1, 8>}, {pipeline_mode = #tpu.pipeline_mode<synchronous>, transform_indices = @transform_6, window_bounds = array<i64: 1, 8>}, {pipeline_mode = #tpu.pipeline_mode<synchronous>, transform_indices = @transform_7, window_bounds = array<i64: 8, 32>}, {pipeline_mode = #tpu.pipeline_mode<synchronous>, transform_indices = @transform_8, window_bounds = array<i64: 1, 32>}, {pipeline_mode = #tpu.pipeline_mode<synchronous>, transform_indices = @transform_9, window_bounds = array<i64: 1, 32>}, {pipeline_mode = #tpu.pipeline_mode<synchronous>, transform_indices = @transform_10, window_bounds = array<i64: 16, 32>}, {pipeline_mode = #tpu.pipeline_mode<synchronous>, transform_indices = @transform_11, window_bounds = array<i64: 1, 32>}, {pipeline_mode = #tpu.pipeline_mode<synchronous>, transform_indices = @transform_12, window_bounds = array<i64: 1, 32>}, {transform_indices = @transform_13, window_bounds = array<i64: 1, 64, 32>}]} {
    %cst = arith.constant 0.000000e+00 : f32
    %0 = vector.broadcast %cst : f32 to vector<1x18x8xf32>
    %cst_0 = arith.constant 0.000000e+00 : f32
    %1 = vector.broadcast %cst_0 : f32 to vector<18x1x8xf32>
    %c0 = arith.constant 0 : index
    %c0_1 = arith.constant 0 : index
    %c0_2 = arith.constant 0 : index
    %2 = vector.load %arg15[%c0, %c0_1, %c0_2] : memref<18x18x8xf32, #tpu.memory_space<vmem>>, vector<1x18x8xf32>
    tpu.vector_store %arg15[%c0, %c0_1, %c0_2], %0 {strides = array<i32>} : memref<18x18x8xf32, #tpu.memory_space<vmem>>, vector<1x18x8xf32>,
    %c17 = arith.constant 17 : index
    %c0_3 = arith.constant 0 : index
    %c0_4 = arith.constant 0 : index
    %3 = vector.load %arg15[%c17, %c0_3, %c0_4] : memref<18x18x8xf32, #tpu.memory_space<vmem>>, vector<1x18x8xf32>
    tpu.vector_store %arg15[%c17, %c0_3, %c0_4], %0 {strides = array<i32>} : memref<18x18x8xf32, #tpu.memory_space<vmem>>, vector<1x18x8xf32>,
    %c0_5 = arith.constant 0 : index
    %c0_6 = arith.constant 0 : index
    %c0_7 = arith.constant 0 : index
    %4 = vector.load %arg15[%c0_5, %c0_6, %c0_7] : memref<18x18x8xf32, #tpu.memory_space<vmem>>, vector<18x1x8xf32>
    tpu.vector_store %arg15[%c0_5, %c0_6, %c0_7], %1 {strides = array<i32>} : memref<18x18x8xf32, #tpu.memory_space<vmem>>, vector<18x1x8xf32>,
    %c0_8 = arith.constant 0 : index
    %c17_9 = arith.constant 17 : index
    %c0_10 = arith.constant 0 : index
    %5 = vector.load %arg15[%c0_8, %c17_9, %c0_10] : memref<18x18x8xf32, #tpu.memory_space<vmem>>, vector<18x1x8xf32>
    tpu.vector_store %arg15[%c0_8, %c17_9, %c0_10], %1 {strides = array<i32>} : memref<18x18x8xf32, #tpu.memory_space<vmem>>, vector<18x1x8xf32>,
    %c0_11 = arith.constant 0 : index
    %c0_12 = arith.constant 0 : index
    %c0_13 = arith.constant 0 : index
    %c0_14 = arith.constant 0 : index
    %6 = vector.load %arg1[%c0_11, %c0_12, %c0_13, %c0_14] : memref<1x16x16x16xf32, #tpu.memory_space<vmem>>, vector<1x16x16x16xf32>
    %7 = vector.shape_cast %6 : vector<1x16x16x16xf32> to vector<16x16x16xf32>
    %8 = vector.shape_cast %7 : vector<16x16x16xf32> to vector<256x16xf32>
    %9 = arith.truncf %8 : vector<256x16xf32> to vector<256x16xbf16>
    %c0_15 = arith.constant 0 : index
    %c0_16 = arith.constant 0 : index
    %10 = vector.load %arg2[%c0_15, %c0_16] : memref<16x8xbf16, #tpu.memory_space<vmem>>, vector<16x8xbf16>
    %cst_17 = arith.constant dense<0.000000e+00> : vector<256x8xf32>
    %11 = tpu.matmul %9, %10, %cst_17 {dimension_numbers = #tpu.dot_dimension_numbers<[1], [0], [0], [1], [0, 0, 1, 1], [], []>} : vector<256x16xbf16>, vector<16x8xbf16>, vector<256x8xf32> -> vector<256x8xf32>
    %c0_18 = arith.constant 0 : index
    %c0_19 = arith.constant 0 : index
    %12 = vector.load %arg3[%c0_18, %c0_19] : memref<1x8xf32, #tpu.memory_space<vmem>>, vector<1x8xf32>
    %13 = vector.broadcast %12 : vector<1x8xf32> to vector<256x8xf32>
    %14 = arith.mulf %11, %13 : vector<256x8xf32>
    %c0_20 = arith.constant 0 : index
    %c0_21 = arith.constant 0 : index
    %15 = vector.load %arg4[%c0_20, %c0_21] : memref<1x8xf32, #tpu.memory_space<vmem>>, vector<1x8xf32>
    %16 = vector.broadcast %15 : vector<1x8xf32> to vector<256x8xf32>
    %17 = arith.addf %14, %16 : vector<256x8xf32>
    %cst_22 = arith.constant 0.000000e+00 : f32
    %18 = vector.broadcast %cst_22 : f32 to vector<256x8xf32>
    %19 = arith.maximumf %17, %18 : vector<256x8xf32>
    %20 = vector.shape_cast %19 : vector<256x8xf32> to vector<16x16x8xf32>
    %c1 = arith.constant 1 : index
    %c1_23 = arith.constant 1 : index
    %c0_24 = arith.constant 0 : index
    %21 = vector.load %arg15[%c1, %c1_23, %c0_24] : memref<18x18x8xf32, #tpu.memory_space<vmem>>, vector<16x16x8xf32>
    tpu.vector_store %arg15[%c1, %c1_23, %c0_24], %20 {strides = array<i32>} : memref<18x18x8xf32, #tpu.memory_space<vmem>>, vector<16x16x8xf32>,
    %c0_25 = arith.constant 0 : index
    %c0_26 = arith.constant 0 : index
    %c0_27 = arith.constant 0 : index
    %22 = vector.load %arg15[%c0_25, %c0_26, %c0_27] : memref<18x18x8xf32, #tpu.memory_space<vmem>>, vector<16x16x8xf32>
    %23 = arith.truncf %22 : vector<16x16x8xf32> to vector<16x16x8xbf16>
    %c0_28 = arith.constant 0 : index
    %c1_29 = arith.constant 1 : index
    %c0_30 = arith.constant 0 : index
    %24 = vector.load %arg15[%c0_28, %c1_29, %c0_30] : memref<18x18x8xf32, #tpu.memory_space<vmem>>, vector<16x16x8xf32>
    %25 = arith.truncf %24 : vector<16x16x8xf32> to vector<16x16x8xbf16>
    %c0_31 = arith.constant 0 : index
    %c2 = arith.constant 2 : index
    %c0_32 = arith.constant 0 : index
    %26 = vector.load %arg15[%c0_31, %c2, %c0_32] : memref<18x18x8xf32, #tpu.memory_space<vmem>>, vector<16x16x8xf32>
    %27 = arith.truncf %26 : vector<16x16x8xf32> to vector<16x16x8xbf16>
    %c1_33 = arith.constant 1 : index
    %c0_34 = arith.constant 0 : index
    %c0_35 = arith.constant 0 : index
    %28 = vector.load %arg15[%c1_33, %c0_34, %c0_35] : memref<18x18x8xf32, #tpu.memory_space<vmem>>, vector<16x16x8xf32>
    %29 = arith.truncf %28 : vector<16x16x8xf32> to vector<16x16x8xbf16>
    %c1_36 = arith.constant 1 : index
    %c1_37 = arith.constant 1 : index
    %c0_38 = arith.constant 0 : index
    %30 = vector.load %arg15[%c1_36, %c1_37, %c0_38] : memref<18x18x8xf32, #tpu.memory_space<vmem>>, vector<16x16x8xf32>
    %31 = arith.truncf %30 : vector<16x16x8xf32> to vector<16x16x8xbf16>
    %c1_39 = arith.constant 1 : index
    %c2_40 = arith.constant 2 : index
    %c0_41 = arith.constant 0 : index
    %32 = vector.load %arg15[%c1_39, %c2_40, %c0_41] : memref<18x18x8xf32, #tpu.memory_space<vmem>>, vector<16x16x8xf32>
    %33 = arith.truncf %32 : vector<16x16x8xf32> to vector<16x16x8xbf16>
    %c2_42 = arith.constant 2 : index
    %c0_43 = arith.constant 0 : index
    %c0_44 = arith.constant 0 : index
    %34 = vector.load %arg15[%c2_42, %c0_43, %c0_44] : memref<18x18x8xf32, #tpu.memory_space<vmem>>, vector<16x16x8xf32>
    %35 = arith.truncf %34 : vector<16x16x8xf32> to vector<16x16x8xbf16>
    %c2_45 = arith.constant 2 : index
    %c1_46 = arith.constant 1 : index
    %c0_47 = arith.constant 0 : index
    %36 = vector.load %arg15[%c2_45, %c1_46, %c0_47] : memref<18x18x8xf32, #tpu.memory_space<vmem>>, vector<16x16x8xf32>
    %37 = arith.truncf %36 : vector<16x16x8xf32> to vector<16x16x8xbf16>
    %c2_48 = arith.constant 2 : index
    %c2_49 = arith.constant 2 : index
    %c0_50 = arith.constant 0 : index
    %38 = vector.load %arg15[%c2_48, %c2_49, %c0_50] : memref<18x18x8xf32, #tpu.memory_space<vmem>>, vector<16x16x8xf32>
    %39 = arith.truncf %38 : vector<16x16x8xf32> to vector<16x16x8xbf16>
    %40 = tpu.concatenate %23, %25, %27, %29, %31, %33, %35, %37, %39 in 2 : vector<16x16x8xbf16>, vector<16x16x8xbf16>, vector<16x16x8xbf16>, vector<16x16x8xbf16>, vector<16x16x8xbf16>, vector<16x16x8xbf16>, vector<16x16x8xbf16>, vector<16x16x8xbf16>, vector<16x16x8xbf16> -> vector<16x16x72xbf16>
    %41 = vector.shape_cast %40 : vector<16x16x72xbf16> to vector<256x72xbf16>
    %c0_51 = arith.constant 0 : index
    %c0_52 = arith.constant 0 : index
    %42 = vector.load %arg5[%c0_51, %c0_52] : memref<72x8xbf16, #tpu.memory_space<vmem>>, vector<72x8xbf16>
    %cst_53 = arith.constant dense<0.000000e+00> : vector<256x8xf32>
    %43 = tpu.matmul %41, %42, %cst_53 {dimension_numbers = #tpu.dot_dimension_numbers<[1], [0], [0], [1], [0, 0, 1, 1], [], []>} : vector<256x72xbf16>, vector<72x8xbf16>, vector<256x8xf32> -> vector<256x8xf32>
    %c0_54 = arith.constant 0 : index
    %c0_55 = arith.constant 0 : index
    %44 = vector.load %arg6[%c0_54, %c0_55] : memref<1x8xf32, #tpu.memory_space<vmem>>, vector<1x8xf32>
    %45 = vector.broadcast %44 : vector<1x8xf32> to vector<256x8xf32>
    %46 = arith.mulf %43, %45 : vector<256x8xf32>
    %c0_56 = arith.constant 0 : index
    %c0_57 = arith.constant 0 : index
    %47 = vector.load %arg7[%c0_56, %c0_57] : memref<1x8xf32, #tpu.memory_space<vmem>>, vector<1x8xf32>
    %48 = vector.broadcast %47 : vector<1x8xf32> to vector<256x8xf32>
    %49 = arith.addf %46, %48 : vector<256x8xf32>
    %cst_58 = arith.constant 0.000000e+00 : f32
    %50 = vector.broadcast %cst_58 : f32 to vector<256x8xf32>
    %51 = arith.maximumf %49, %50 : vector<256x8xf32>
    %52 = vector.shape_cast %51 : vector<256x8xf32> to vector<16x16x8xf32>
    %c0_59 = arith.constant 0 : index
    %c0_60 = arith.constant 0 : index
    %c0_61 = arith.constant 0 : index
    %53 = vector.load %arg16[%c0_59, %c0_60, %c0_61] : memref<16x16x8xf32, #tpu.memory_space<vmem>>, vector<16x16x8xf32>
    tpu.vector_store %arg16[%c0_59, %c0_60, %c0_61], %52 {strides = array<i32>} : memref<16x16x8xf32, #tpu.memory_space<vmem>>, vector<16x16x8xf32>,
    %c0_62 = arith.constant 0 : index
    %c0_63 = arith.constant 0 : index
    %c0_64 = arith.constant 0 : index
    %54 = tpu.strided_load %arg16[%c0_62, %c0_63, %c0_64] {strides = array<i32: 1, 2, 1>} : memref<16x16x8xf32, #tpu.memory_space<vmem>>, vector<16x8x8xf32>
    %c0_65 = arith.constant 0 : index
    %c1_66 = arith.constant 1 : index
    %c0_67 = arith.constant 0 : index
    %55 = tpu.strided_load %arg16[%c0_65, %c1_66, %c0_67] {strides = array<i32: 1, 2, 1>} : memref<16x16x8xf32, #tpu.memory_space<vmem>>, vector<16x8x8xf32>
    %56 = arith.addf %54, %55 : vector<16x8x8xf32>
    %57 = vector.shape_cast %56 : vector<16x8x8xf32> to vector<8x2x8x8xf32>
    %58 = vector.extract_strided_slice %57 {offsets = [0, 0, 0, 0], sizes = [8, 1, 8, 8], strides = [1, 1, 1, 1]} : vector<8x2x8x8xf32> to vector<8x1x8x8xf32>
    %59 = vector.shape_cast %58 : vector<8x1x8x8xf32> to vector<8x8x8xf32>
    %60 = vector.extract_strided_slice %57 {offsets = [0, 1, 0, 0], sizes = [8, 1, 8, 8], strides = [1, 1, 1, 1]} : vector<8x2x8x8xf32> to vector<8x1x8x8xf32>
    %61 = vector.shape_cast %60 : vector<8x1x8x8xf32> to vector<8x8x8xf32>
    %62 = arith.addf %59, %61 : vector<8x8x8xf32>
    %63 = vector.shape_cast %62 : vector<8x8x8xf32> to vector<64x8xf32>
    %64 = arith.truncf %63 : vector<64x8xf32> to vector<64x8xbf16>
    %c0_68 = arith.constant 0 : index
    %c0_69 = arith.constant 0 : index
    %65 = vector.load %arg8[%c0_68, %c0_69] : memref<8x32xbf16, #tpu.memory_space<vmem>>, vector<8x32xbf16>
    %cst_70 = arith.constant dense<0.000000e+00> : vector<64x32xf32>
    %66 = tpu.matmul %64, %65, %cst_70 {dimension_numbers = #tpu.dot_dimension_numbers<[1], [0], [0], [1], [0, 0, 1, 1], [], []>} : vector<64x8xbf16>, vector<8x32xbf16>, vector<64x32xf32> -> vector<64x32xf32>
    %c0_71 = arith.constant 0 : index
    %c0_72 = arith.constant 0 : index
    %67 = vector.load %arg9[%c0_71, %c0_72] : memref<1x32xf32, #tpu.memory_space<vmem>>, vector<1x32xf32>
    %68 = vector.broadcast %67 : vector<1x32xf32> to vector<64x32xf32>
    %69 = arith.mulf %66, %68 : vector<64x32xf32>
    %c0_73 = arith.constant 0 : index
    %c0_74 = arith.constant 0 : index
    %70 = vector.load %arg10[%c0_73, %c0_74] : memref<1x32xf32, #tpu.memory_space<vmem>>, vector<1x32xf32>
    %71 = vector.broadcast %70 : vector<1x32xf32> to vector<64x32xf32>
    %72 = arith.addf %69, %71 : vector<64x32xf32>
    %c0_75 = arith.constant 0 : index
    %c0_76 = arith.constant 0 : index
    %c0_77 = arith.constant 0 : index
    %c0_78 = arith.constant 0 : index
    %73 = tpu.strided_load %arg1[%c0_75, %c0_76, %c0_77, %c0_78] {strides = array<i32: 1, 1, 2, 1>} : memref<1x16x16x16xf32, #tpu.memory_space<vmem>>, vector<1x16x8x16xf32>
    %74 = vector.shape_cast %73 : vector<1x16x8x16xf32> to vector<16x8x16xf32>
    %c0_79 = arith.constant 0 : index
    %c0_80 = arith.constant 0 : index
    %c1_81 = arith.constant 1 : index
    %c0_82 = arith.constant 0 : index
    %75 = tpu.strided_load %arg1[%c0_79, %c0_80, %c1_81, %c0_82] {strides = array<i32: 1, 1, 2, 1>} : memref<1x16x16x16xf32, #tpu.memory_space<vmem>>, vector<1x16x8x16xf32>
    %76 = vector.shape_cast %75 : vector<1x16x8x16xf32> to vector<16x8x16xf32>
    %77 = arith.addf %74, %76 : vector<16x8x16xf32>
    %78 = vector.shape_cast %77 : vector<16x8x16xf32> to vector<8x2x8x16xf32>
    %79 = vector.extract_strided_slice %78 {offsets = [0, 0, 0, 0], sizes = [8, 1, 8, 16], strides = [1, 1, 1, 1]} : vector<8x2x8x16xf32> to vector<8x1x8x16xf32>
    %80 = vector.shape_cast %79 : vector<8x1x8x16xf32> to vector<8x8x16xf32>
    %81 = vector.extract_strided_slice %78 {offsets = [0, 1, 0, 0], sizes = [8, 1, 8, 16], strides = [1, 1, 1, 1]} : vector<8x2x8x16xf32> to vector<8x1x8x16xf32>
    %82 = vector.shape_cast %81 : vector<8x1x8x16xf32> to vector<8x8x16xf32>
    %83 = arith.addf %80, %82 : vector<8x8x16xf32>
    %84 = vector.shape_cast %83 : vector<8x8x16xf32> to vector<64x16xf32>
    %85 = arith.truncf %84 : vector<64x16xf32> to vector<64x16xbf16>
    %c0_83 = arith.constant 0 : index
    %c0_84 = arith.constant 0 : index
    %86 = vector.load %arg11[%c0_83, %c0_84] : memref<16x32xbf16, #tpu.memory_space<vmem>>, vector<16x32xbf16>
    %cst_85 = arith.constant dense<0.000000e+00> : vector<64x32xf32>
    %87 = tpu.matmul %85, %86, %cst_85 {dimension_numbers = #tpu.dot_dimension_numbers<[1], [0], [0], [1], [0, 0, 1, 1], [], []>} : vector<64x16xbf16>, vector<16x32xbf16>, vector<64x32xf32> -> vector<64x32xf32>
    %c0_86 = arith.constant 0 : index
    %c0_87 = arith.constant 0 : index
    %88 = vector.load %arg12[%c0_86, %c0_87] : memref<1x32xf32, #tpu.memory_space<vmem>>, vector<1x32xf32>
    %89 = vector.broadcast %88 : vector<1x32xf32> to vector<64x32xf32>
    %90 = arith.mulf %87, %89 : vector<64x32xf32>
    %c0_88 = arith.constant 0 : index
    %c0_89 = arith.constant 0 : index
    %91 = vector.load %arg13[%c0_88, %c0_89] : memref<1x32xf32, #tpu.memory_space<vmem>>, vector<1x32xf32>
    %92 = vector.broadcast %91 : vector<1x32xf32> to vector<64x32xf32>
    %93 = arith.addf %90, %92 : vector<64x32xf32>
    %94 = arith.addf %72, %93 : vector<64x32xf32>
    %cst_90 = arith.constant 0.000000e+00 : f32
    %95 = vector.broadcast %cst_90 : f32 to vector<64x32xf32>
    %96 = arith.maximumf %94, %95 : vector<64x32xf32>
    %c0_91 = arith.constant 0 : index
    %c0_92 = arith.constant 0 : index
    %c0_93 = arith.constant 0 : index
    %97 = vector.load %arg14[%c0_91, %c0_92, %c0_93] : memref<1x64x32xf32, #tpu.memory_space<vmem>>, vector<1x64x32xf32>
    %98 = vector.shape_cast %97 : vector<1x64x32xf32> to vector<64x32xf32>
    %99 = vector.shape_cast %96 : vector<64x32xf32> to vector<1x64x32xf32>
    tpu.vector_store %arg14[%c0_91, %c0_92, %c0_93], %99 {strides = array<i32>} : memref<1x64x32xf32, #tpu.memory_space<vmem>>, vector<1x64x32xf32>,
    return
  }
  func.func @transform_0(%arg0: i32) -> (i32, i32, i32, i32) {
    %c0_i32 = arith.constant 0 : i32
    %c0_i32_0 = arith.constant 0 : i32
    %c0_i32_1 = arith.constant 0 : i32
    %c0_i32_2 = arith.constant 0 : i32
    return %arg0, %c0_i32, %c0_i32_0, %c0_i32_1 : i32, i32, i32, i32
  }
  func.func @transform_1(%arg0: i32) -> (i32, i32) {
    %c0_i32 = arith.constant 0 : i32
    %c0_i32_0 = arith.constant 0 : i32
    %c0_i32_1 = arith.constant 0 : i32
    return %c0_i32, %c0_i32_0 : i32, i32
  }
  func.func @transform_2(%arg0: i32) -> (i32, i32) {
    %c0_i32 = arith.constant 0 : i32
    %c0_i32_0 = arith.constant 0 : i32
    %c0_i32_1 = arith.constant 0 : i32
    return %c0_i32, %c0_i32_0 : i32, i32
  }
  func.func @transform_3(%arg0: i32) -> (i32, i32) {
    %c0_i32 = arith.constant 0 : i32
    %c0_i32_0 = arith.constant 0 : i32
    %c0_i32_1 = arith.constant 0 : i32
    return %c0_i32, %c0_i32_0 : i32, i32
  }
  func.func @transform_4(%arg0: i32) -> (i32, i32) {
    %c0_i32 = arith.constant 0 : i32
    %c0_i32_0 = arith.constant 0 : i32
    %c0_i32_1 = arith.constant 0 : i32
    return %c0_i32, %c0_i32_0 : i32, i32
  }
  func.func @transform_5(%arg0: i32) -> (i32, i32) {
    %c0_i32 = arith.constant 0 : i32
    %c0_i32_0 = arith.constant 0 : i32
    %c0_i32_1 = arith.constant 0 : i32
    return %c0_i32, %c0_i32_0 : i32, i32
  }
  func.func @transform_6(%arg0: i32) -> (i32, i32) {
    %c0_i32 = arith.constant 0 : i32
    %c0_i32_0 = arith.constant 0 : i32
    %c0_i32_1 = arith.constant 0 : i32
    return %c0_i32, %c0_i32_0 : i32, i32
  }
  func.func @transform_7(%arg0: i32) -> (i32, i32) {
    %c0_i32 = arith.constant 0 : i32
    %c0_i32_0 = arith.constant 0 : i32
    %c0_i32_1 = arith.constant 0 : i32
    return %c0_i32, %c0_i32_0 : i32, i32
  }
  func.func @transform_8(%arg0: i32) -> (i32, i32) {
    %c0_i32 = arith.constant 0 : i32
    %c0_i32_0 = arith.constant 0 : i32
    %c0_i32_1 = arith.constant 0 : i32
    return %c0_i32, %c0_i32_0 : i32, i32
  }
  func.func @transform_9(%arg0: i32) -> (i32, i32) {
    %c0_i32 = arith.constant 0 : i32
    %c0_i32_0 = arith.constant 0 : i32
    %c0_i32_1 = arith.constant 0 : i32
    return %c0_i32, %c0_i32_0 : i32, i32
  }
  func.func @transform_10(%arg0: i32) -> (i32, i32) {
    %c0_i32 = arith.constant 0 : i32
    %c0_i32_0 = arith.constant 0 : i32
    %c0_i32_1 = arith.constant 0 : i32
    return %c0_i32, %c0_i32_0 : i32, i32
  }
  func.func @transform_11(%arg0: i32) -> (i32, i32) {
    %c0_i32 = arith.constant 0 : i32
    %c0_i32_0 = arith.constant 0 : i32
    %c0_i32_1 = arith.constant 0 : i32
    return %c0_i32, %c0_i32_0 : i32, i32
  }
  func.func @transform_12(%arg0: i32) -> (i32, i32) {
    %c0_i32 = arith.constant 0 : i32
    %c0_i32_0 = arith.constant 0 : i32
    %c0_i32_1 = arith.constant 0 : i32
    return %c0_i32, %c0_i32_0 : i32, i32
  }
  func.func @transform_13(%arg0: i32) -> (i32, i32, i32) {
    %c0_i32 = arith.constant 0 : i32
    %c0_i32_0 = arith.constant 0 : i32
    %c0_i32_1 = arith.constant 0 : i32
    return %arg0, %c0_i32, %c0_i32_0 : i32, i32, i32
  }
}

</mosaic_0001>

<bundles_post_ra>
// kernel: tpu_custom_call.1
= control target key start
LH: loop header
LB: loop body
LE: loop exit
PB: predicated region body
PF: predicated region fallthrough
CT: control target
= control target key end

     0   :  { %s4831_s0 = inlined_call_operand.hbm [shape: f32[2,16,16,16], index: 0, kind: input, shape index: {}]   ;;  %s4832_s1 = inlined_call_operand.vmem [shape: bf16[16,8], index: 1, kind: input, shape index: {}]   ;;  %s4833_s2 = inlined_call_operand.vmem [shape: f32[1,8], index: 2, kind: input, shape index: {}]   ;;  %s4834_s3 = inlined_call_operand.vmem [shape: f32[1,8], index: 3, kind: input, shape index: {}]   ;;  %s4835_s4 = inlined_call_operand.vmem [shape: bf16[72,8], index: 4, kind: input, shape index: {}]   ;;  %s4836_s5 = inlined_call_operand.vmem [shape: f32[1,8], index: 5, kind: input, shape index: {}]   ;;  %s4837_s6 = inlined_call_operand.vmem [shape: f32[1,8], index: 6, kind: input, shape index: {}]   ;;  %s4838_s7 = inlined_call_operand.vmem [shape: bf16[8,32], index: 7, kind: input, shape index: {}]   ;;  %s4839_s8 = inlined_call_operand.vmem [shape: f32[1,32], index: 8, kind: input, shape index: {}]   ;;  %s4840_s9 = inlined_call_operand.vmem [shape: f32[1,32], index: 9, kind: input, shape index: {}]   ;;  %s4841_s10 = inlined_call_operand.vmem [shape: bf16[16,32], index: 10, kind: input, shape index: {}]   ;;  %s4842_s11 = inlined_call_operand.vmem [shape: f32[1,32], index: 11, kind: input, shape index: {}]   ;;  %s4843_s12 = inlined_call_operand.vmem [shape: f32[1,32], index: 12, kind: input, shape index: {}]   ;;  %s4844_s13 = inlined_call_operand.vmem [shape: f32[2,64,32], index: 13, kind: output, shape index: {}]  }
   0x1   :  { %4848 = sst [smem:[#allocation10_spill]] %s4844_s13 }
   0x2   :  { %18 = vsyncpa [#allocation5], 0 }
   0x3   :  { %20 = vsyncpa [#allocation5 + $0x1], 0  ;;  %s3714_s25 = smov 0   ;;  %s3716_s26 = smov 0  }
   0x4   :  { %s3718_s27 = smov 0   ;;  %s3720_s28 = smov 0  }
   0x5 LB: > { %4849 = sst [smem:[#allocation7_spill]] %s3627_s27  ;;  %s3733_s29 = sadd.s32 4294967295, %s3631_s28   ;;  %s3631_s28 = sphi %s3720_s28, %s4856_s28   ;;  %s3627_s27 = sphi %s3718_s27, %s4858_s27   ;;  %s3623_s26 = sphi %s3716_s26, %s4860_s26   ;;  %s3619_s25 = sphi %s3714_s25, %s4859_s25  }
   0x6   : > { %s3736_s30 = sadd.s32 1, %s3631_s28   ;;  %s33_s15 = sadd.s32 1, %s3627_s27 }
   0x7   : > { %4850 = sst [smem:[#allocation8_spill]] %s3736_s30  ;;  %s30_s14 = ssub.s32 %s3631_s28, %s3736_s30 }
   0x8   : > { %p31_p0 = scmp.eq.s32.totalorder %s30_s14, 0  ;;  %p40_p1 = scmp.ne.s32.totalorder %s3627_s27, %s3623_s26 }
   0x9   : > { %p41_p2 = scmp.eq.s32.totalorder %s3631_s28, 0  ;;  %p46_p3 = scmp.ne.s32.totalorder %s3623_s26, %s3619_s25 }
   0xa   : > { %s3746_s16 = scalar_select %p31_p0, %s3627_s27, %s33_s15  }
   0xb   : > { %p3748_p4 = por %p41_p2, %p40_p1  ;;  %p47_p5 = scmp.eq.s32.totalorder %s3733_s29, 0 }
   0xc   : > { %4851 = sst [smem:[#allocation9_spill]] %s3746_s16  ;;  %p3512_p6 = scmp.lt.s32.totalorder %s3631_s28, 2 }
   0xd   : > { %p3754_p7 = por %p47_p5, %p46_p3  ;;  %s384_s19 = sand.u32 1, %s3627_s27  }
   0xe   : > { %s3388_s20 = sshll.u32 %s384_s19, 8  ;;  %s3492_s21 = sshll.u32 %s3631_s28, 8 }
   0xf   : > { %s393_s24 = scalar_lea.hbm %s4831_s0, %s3492_s21  ;;  %s388_s25 = scalar_lea.vmem [#allocation4], %s3388_s20 }
  0x10   : > { %s396_s14 = sshll.u32 %s388_s25, 4  ;;  %s394_s15 = sshll.u32 %s393_s24, 4  ;;  %s397_s14 = int_to_ptr.vmem [resolvable:$true] %s396_s14  ;;  %s395_s15 = int_to_ptr.hbm [resolvable:$true] %s394_s15 }
  0x11   : > { %p3765_p8 = pnand %p3512_p6, %p3748_p4  ;;  %p3391_p9 = scmp.ge.s32.totalorder %s3631_s28, 1 }
  0x12   : > { %s385_s30 = scalar_lea.sflag [#allocation5], %s384_s19  ;;  %s3567_s27 = sshra.s32 %s395_s15, 4  ;;  %s3568_s27 = int_to_ptr.hbm [resolvable:$true] %s3567_s27 }
  0x13   : > { %s3569_s13 = scalar_lea.hbm %s3568_s27, 256  ;;  %p3571_p11 = pneg %p3765_p8 }
  0x14   : > { %p3570_p10 = scmp.ne.s32.totalorder %s3568_s27, %s3569_s13  ;;  %s3574_s22 = scalar_lea.hbm %s4831_s0, 512 }
  0x15   : > { %p3575_p0 = scmp.lt.s32.totalorder %s3568_s27, %s4831_s0  ;;  %p3576_p1 = scmp.lt.s32.totalorder %s3574_s22, %s3569_s13 }
  0x16   : > { %p3572_p12 = pnand %p3571_p11, %p3570_p10 }
  0x17   : > { %p3577_p2 = por %p3576_p1, %p3575_p0 }
  0x18   : > { %p3573_p13 = pneg %p3572_p12 }
  0x1a   : > { %p3578_p3 = pnand %p3577_p2, %p3573_p13 }
  0x1c   : > { %3581 = shalt.err (!%p3578_p3)
}
  0x1d   : > { %s3633_s19 = smov 128   ;;  %s3634_s24 = smov 8  }
  0x1e   : > { %3511 = dma.hbm_to_vmem [thread:$0]  (!%p3765_p8), %s395_s15, 4096, %s397_s14, %s385_s30, %s3633_s19, %s3633_s19, %s3634_s24  }
  0x1f   : > { %p404_p4 = scmp.lt.s32.totalorder %s3631_s28, 3 }
  0x21   : > { %p405_p5 = pnand %p3391_p9, %p404_p4 }
  0x22   : > { %s410_s25 = sand.u32 (!%p405_p5), 1, %s3623_s26  }
  0x23   : > { %408 = sbr.rel (%p405_p5) target bundleno = 961 (0x3c1), region = 72  ;;  %s3392_s20 = sshll.u32 (!%p405_p5), %s410_s25, 8 }
  0x24   : > { %s411_s27 = scalar_lea.sflag (!%p405_p5), [#allocation5], %s410_s25  ;;  %s3784_s13 = scalar_lea.vmem (!%p405_p5), [#allocation4], %s3392_s20 }
  0x28   : > { %3614 = dma.done.wait (%p3754_p7), %s411_s27, 4096  }
  0x29   : > { %3616 = vsyncadd (%p3754_p7), %s411_s27, 4294963200  ;;  %v3494_v0 = vld [vmem:[%s4832_s1] sm:$0xff]  ;;  %v510_v1 = vld [vmem:[%s3784_s13] sm:$0xff]  ;;  %vm566_vm0 = vcmask 130048   ;;  %vm464_vm1 = vcmask 64512   ;;  %vm467_vm2 = vcmask 58368  }
  0x2a   : > { %v511_v2 = vld [vmem:[%s3784_s13 + $0x8] sm:$0xff]  ;;  %v532_v4 = vld [vmem:[%s3784_s13 + $0xb0] sm:$0xff]  ;;  %v533_v5 = vld [vmem:[%s3784_s13 + $0xb8] sm:$0xff]  ;;  %622 = vmatpush.bf16.msra.mxu0 %v3494_v0  ;;  %3500 = vmatpush.bf16.msra.mxu3 %v3494_v0  ;;  %v3635_v25 = vmov 0.0   ;;  %vm473_vm3 = vcmask 57344   ;;  %s3636_s28 = smov 8  }
  0x2b   : > { %v542_v3 = vpack.c.bf16 %v511_v2, %v510_v1  ;;  %v553_v6 = vpack.c.bf16 %v533_v5, %v532_v4  ;;  %v512_v7 = vld [vmem:[%s3784_s13 + $0x10] sm:$0xff]  ;;  %v513_v8 = vld [vmem:[%s3784_s13 + $0x18] sm:$0xff]  ;;  %v534_v9 = vld [vmem:[%s3784_s13 + $0xc0] sm:$0xff]  ;;  %465 = vst.msk [vmem:[#allocation2] sm:$0xff] %vm464_vm1, %v3635_v25  ;;  %s3637_s15 = smov 16   ;;  %s3638_s17 = smov 40  }
  0x2c   : > { %v535_v10 = vld [vmem:[%s3784_s13 + $0xc8] sm:$0xff]  ;;  %v543_v11 = vpack.c.bf16 %v513_v8, %v512_v7  ;;  %v514_v13 = vld [vmem:[%s3784_s13 + $0x20] sm:$0xff]  ;;  %v536_v15 = vld [vmem:[%s3784_s13 + $0xd0] sm:$0xff]  ;;  %466 = vst.msk [vmem:[#allocation2 + $0x8] sm:$0xff] %vm464_vm1, %v3635_v25  ;;  %s3639_s23 = smov 24   ;;  %s3640_s19 = smov 32  }
  0x2d   : > { %3399 = vmatmul.msk.bf16.vlgmr.msra.gmra.mxu0 %vm566_vm0, %v542_v3  ;;  %3410 = vmatmul.msk.bf16.vlgmr.msra.gmra.mxu3 %vm566_vm0, %v553_v6  ;;  %v554_v12 = vpack.c.bf16 %v535_v10, %v534_v9  ;;  %v515_v14 = vld [vmem:[%s3784_s13 + $0x28] sm:$0xff]  ;;  %v537_v16 = vld [vmem:[%s3784_s13 + $0xd8] sm:$0xff]  ;;  %v516_v19 = vld [vmem:[%s3784_s13 + $0x30] sm:$0xff]  ;;  %468 = vst.msk [vmem:[#allocation2 + $0x10] sm:$0x3] %vm467_vm2, %v3635_v25  ;;  %s3641_s24 = smov 48  }
  0x2e   : > { %v544_v17 = vpack.c.bf16 %v515_v14, %v514_v13  ;;  %v555_v18 = vpack.c.bf16 %v537_v16, %v536_v15  ;;  %v517_v20 = vld [vmem:[%s3784_s13 + $0x38] sm:$0xff]  ;;  %v538_v21 = vld [vmem:[%s3784_s13 + $0xe0] sm:$0xff]  ;;  %v539_v22 = vld [vmem:[%s3784_s13 + $0xe8] sm:$0xff]  ;;  %470 = vst.msk [vmem:[#allocation2 + $0x198] sm:$0xff] %vm464_vm1, %v3635_v25  ;;  %s3642_s25 = smov 56   ;;  %s3643_s20 = smov 64  }
  0x2f   : > { %v545_v23 = vpack.c.bf16 %v517_v20, %v516_v19  ;;  %v556_v24 = vpack.c.bf16 %v539_v22, %v538_v21  ;;  %471 = vst.msk [vmem:[#allocation2 + $0x1a0] sm:$0xff] %vm464_vm1, %v3635_v25  ;;  %v518_v27 = vld [vmem:[%s3784_s13 + $0x40] sm:$0xff]  ;;  %v519_v28 = vld [vmem:[%s3784_s13 + $0x48] sm:$0xff]  ;;  %v520_v36 = vld [vmem:[%s3784_s13 + $0x50] sm:$0xff]  ;;  %vm2741_vm4 = vcmask 1043456   ;;  %vm2474_vm5 = vcmask 195584  }
  0x30   : > { %472 = vst.msk [vmem:[#allocation2 + $0x1a8] sm:$0x3] %vm467_vm2, %v3635_v25  ;;  %v546_v31 = vpack.c.bf16 %v519_v28, %v518_v27  ;;  %v521_v37 = vld [vmem:[%s3784_s13 + $0x58] sm:$0xff]  ;;  %v3881_v41 = vld [vmem:[%s4833_s2] ss:$0 sm:$0xff]  ;;  %v522_v53 = vld [vmem:[%s3784_s13 + $0x60] sm:$0xff] }
  0x31   : > { %474 = vst.msk [vmem:[#allocation2] sm:$0x1] %vm473_vm3, %v3635_v25  ;;  %v547_v38 = vpack.c.bf16 %v521_v37, %v520_v36  ;;  %v3890_v42 = vld [vmem:[%s4834_s3] ss:$0 sm:$0xff]  ;;  %v523_v54 = vld [vmem:[%s3784_s13 + $0x68] sm:$0xff]  ;;  %v525_v19 = vld [vmem:[%s3784_s13 + $0x78] sm:$0xff] }
  0x32   : > { %475 = vst.msk [vmem:[#allocation2 + $0x18] sm:$0x1] %vm473_vm3, %v3635_v25  ;;  %v548_v56 = vpack.c.bf16 %v523_v54, %v522_v53  ;;  %vm2507_vm6 = vcmask 261120   ;;  %vm2540_vm7 = vcmask 326656   ;;  %vm2573_vm8 = vcmask 392192   ;;  %p458_p6 = scmp.lt.s32.totalorder %s3733_s29, 1 }
  0x33   : > { %v905_v26 = vld [vmem:[#allocation2 + $0x1] sm:$0xff]  ;;  %476 = vst.msk [vmem:[#allocation2 + $0x30] sm:$0x1] %vm473_vm3, %v3635_v25  ;;  %vm2606_vm9 = vcmask 457728   ;;  %vm2639_vm10 = vcmask 523264   ;;  %vm2708_vm11 = vcmask 588800  }
  0x34   : > { %v906_v29 = vld [vmem:[#allocation2 + $0x9] sm:$0xff]  ;;  %v937_v30 = vpack.c.bf16 %v905_v26, %v905_v26  ;;  %477 = vst.msk [vmem:[#allocation2 + $0x48] sm:$0x1] %vm473_vm3, %v3635_v25  ;;  %s4862_s29 = smov (!%p458_p6, %s3733_s29), 1 }
  0x35   : > { %v938_v32 = vpack.c.bf16 %v906_v29, %v906_v29  ;;  %478 = vst.msk [vmem:[#allocation2 + $0x60] sm:$0x1] %vm473_vm3, %v3635_v25  ;;  %v969_v39 = vld [vmem:[#allocation2 + $0x2] sm:$0xff]  ;;  %s3493_s22 = sshll.u32 %s4862_s29, 6 }
  0x36   : > { %v1530_v33 = vunpack.c.l.b16 %v937_v30  ;;  %479 = vst.msk [vmem:[#allocation2 + $0x78] sm:$0x1] %vm473_vm3, %v3635_v25  ;;  %v1001_v40 = vpack.c.bf16 %v969_v39, %v969_v39 }
  0x37   : > { %v1531_v34 = vunpack.c.l.b16 %v938_v32  ;;  %480 = vst.msk [vmem:[#allocation2 + $0x90] sm:$0x1] %vm473_vm3, %v3635_v25 }
  0x38   : > { %481 = vst.msk [vmem:[#allocation2 + $0xa8] sm:$0x1] %vm473_vm3, %v3635_v25  ;;  %v1642_v46 = vunpack.c.l.b16 %v1001_v40 }
  0x39   : > { %v1562_v35 = vpack.c.b16 %v1531_v34, %v1530_v33  ;;  %482 = vst.msk [vmem:[#allocation2 + $0xc0] sm:$0x1] %vm473_vm3, %v3635_v25 }
  0x3a   : > { %483 = vst.msk [vmem:[#allocation2 + $0xd8] sm:$0x1] %vm473_vm3, %v3635_v25 }
  0x3b   : > { %1578 = vrot.lane.b32.xlu0 %v1562_v35, %s3636_s28  ;;  %484 = vst.msk [vmem:[#allocation2 + $0xf0] sm:$0x1] %vm473_vm3, %v3635_v25 }
  0x3c   : > { %485 = vst.msk [vmem:[#allocation2 + $0x108] sm:$0x1] %vm473_vm3, %v3635_v25 }
  0x3d   : > { %3400 = vmatmul.msk.bf16.gmra.mxu0 %vm566_vm0, %v543_v11  ;;  %3411 = vmatmul.msk.bf16.gmra.mxu3 %vm566_vm0, %v554_v12  ;;  %486 = vst.msk [vmem:[#allocation2 + $0x120] sm:$0x1] %vm473_vm3, %v3635_v25 }
  0x3e   : > { %487 = vst.msk [vmem:[#allocation2 + $0x138] sm:$0x1] %vm473_vm3, %v3635_v25 }
  0x3f   : > { %488 = vst.msk [vmem:[#allocation2 + $0x150] sm:$0x1] %vm473_vm3, %v3635_v25 }
  0x40   : > { %489 = vst.msk [vmem:[#allocation2 + $0x168] sm:$0x1] %vm473_vm3, %v3635_v25 }
  0x41   : > { %490 = vst.msk [vmem:[#allocation2 + $0x180] sm:$0x1] %vm473_vm3, %v3635_v25 }
  0x42   : > { %492 = vst.msk [vmem:[#allocation2 + $0x11] sm:$0x1] %vm473_vm3, %v3635_v25 }
  0x43   : > { %493 = vst.msk [vmem:[#allocation2 + $0x29] sm:$0x1] %vm473_vm3, %v3635_v25 }
  0x44   : > { %494 = vst.msk [vmem:[#allocation2 + $0x41] sm:$0x1] %vm473_vm3, %v3635_v25 }
  0x45   : > { %495 = vst.msk [vmem:[#allocation2 + $0x59] sm:$0x1] %vm473_vm3, %v3635_v25 }
  0x46   : > { %496 = vst.msk [vmem:[#allocation2 + $0x71] sm:$0x1] %vm473_vm3, %v3635_v25 }
  0x47   : > { %497 = vst.msk [vmem:[#allocation2 + $0x89] sm:$0x1] %vm473_vm3, %v3635_v25 }
  0x48   : > { %498 = vst.msk [vmem:[#allocation2 + $0xa1] sm:$0x1] %vm473_vm3, %v3635_v25 }
  0x49   : > { %499 = vst.msk [vmem:[#allocation2 + $0xb9] sm:$0x1] %vm473_vm3, %v3635_v25  ;;  %v970_v43 = vld [vmem:[#allocation2 + $0xa] sm:$0xff] }
  0x4a   : > { %500 = vst.msk [vmem:[#allocation2 + $0xd1] sm:$0x1] %vm473_vm3, %v3635_v25  ;;  %v1002_v45 = vpack.c.bf16 %v970_v43, %v970_v43 }
  0x4b   : > { %501 = vst.msk [vmem:[#allocation2 + $0xe9] sm:$0x1] %vm473_vm3, %v3635_v25 }
  0x4c   : > { %502 = vst.msk [vmem:[#allocation2 + $0x101] sm:$0x1] %vm473_vm3, %v3635_v25  ;;  %v1643_v48 = vunpack.c.l.b16 %v1002_v45 }
  0x4d   : > { %3401 = vmatmul.msk.bf16.gmra.mxu0 %vm566_vm0, %v544_v17  ;;  %3412 = vmatmul.msk.bf16.gmra.mxu3 %vm566_vm0, %v555_v18  ;;  %503 = vst.msk [vmem:[#allocation2 + $0x119] sm:$0x1] %vm473_vm3, %v3635_v25  ;;  %v524_v18 = vld [vmem:[%s3784_s13 + $0x70] sm:$0xff] }
  0x4e   : > { %504 = vst.msk [vmem:[#allocation2 + $0x131] sm:$0x1] %vm473_vm3, %v3635_v25  ;;  %v1674_v50 = vpack.c.b16 %v1643_v48, %v1642_v46 }
  0x4f   : > { %505 = vst.msk [vmem:[#allocation2 + $0x149] sm:$0x1] %vm473_vm3, %v3635_v25 }
  0x50   : > { %506 = vst.msk [vmem:[#allocation2 + $0x161] sm:$0x1] %vm473_vm3, %v3635_v25  ;;  %1690 = vrot.lane.b32.xlu0 %v1674_v50, %s3637_s15 }
  0x51   : > { %507 = vst.msk [vmem:[#allocation2 + $0x179] sm:$0x1] %vm473_vm3, %v3635_v25 }
  0x52   : > { %508 = vst.msk [vmem:[#allocation2 + $0x191] sm:$0x1] %vm473_vm3, %v3635_v25 }
  0x53   : > { %491 = vst.msk [vmem:[#allocation2 + $0x198] sm:$0x1] %vm473_vm3, %v3635_v25 }
  0x54   : > { %509 = vst.msk [vmem:[#allocation2 + $0x1a9] sm:$0x1] %vm473_vm3, %v3635_v25 }
  0x5d   : > { %3402 = vmatmul.msk.bf16.gmra.mxu0 %vm566_vm0, %v545_v23  ;;  %3413 = vmatmul.msk.bf16.gmra.mxu3 %vm566_vm0, %v556_v24  ;;  %v549_v23 = vpack.c.bf16 %v525_v19, %v524_v18 }
  0x6d   : > { %3403 = vmatmul.msk.bf16.gmra.mxu0 %vm566_vm0, %v546_v31 }
  0x7d   : > { %3404 = vmatmul.msk.bf16.gmra.mxu0 %vm566_vm0, %v547_v38 }
  0x8d   : > { %3405 = vmatmul.msk.bf16.gmra.mxu0 %vm566_vm0, %v548_v56 }
  0x9d   : > { %3406 = vmatmul.msk.bf16.gmra.mxu0 %vm566_vm0, %v549_v23 }
  0xaa   : > { %v624_v44 = vpop.f32.mrf.mxu0 }
  0xab   : > { %v708_v47 = vmul.f32 %v3881_v41, %v624_v44 }
  0xad   : > { %v744_v49 = vadd.f32 %v3890_v42, %v708_v47 }
  0xaf   : > { %v776_v51 = vmax.f32 %v744_v49, 0.0 }
  0xb0   : > { %v679_v52 = vpop.f32.mrf.mxu3 }
  0xb1   : > { %809 = vst.msk [vmem:[#allocation2 + $0x19] sm:$0xff] %vm464_vm1, %v776_v51  ;;  %v730_v55 = vmul.f32 %v3881_v41, %v679_v52 }
  0xb2   : > { %v626_v57 = vpop.f32.mrf.mxu0 }
  0xb3   : > { %v709_v58 = vmul.f32 %v3881_v41, %v626_v57  ;;  %v766_v59 = vadd.f32 %v3890_v42, %v730_v55 }
  0xb5   : > { %v745_v60 = vadd.f32 %v3890_v42, %v709_v58  ;;  %v798_v61 = vmax.f32 %v766_v59, 0.0 }
  0xb7   : > { %v777_v62 = vmax.f32 %v745_v60, 0.0  ;;  %831 = vst.msk [vmem:[#allocation2 + $0x121] sm:$0xff] %vm464_vm1, %v798_v61 }
  0xb8   : > { %v681_v63 = vpop.f32.mrf.mxu3  ;;  %v1033_v3 = vld [vmem:[#allocation2 + $0x18] sm:$0xff] }
  0xb9   : > { %810 = vst.msk [vmem:[#allocation2 + $0x21] sm:$0xff] %vm464_vm1, %v777_v62  ;;  %v731_v0 = vmul.f32 %v3881_v41, %v681_v63  ;;  %v1065_v7 = vpack.c.bf16 %v1033_v3, %v1033_v3  ;;  %v907_v27 = vld [vmem:[#allocation2 + $0x19] sm:$0xff] }
  0xba   : > { %v629_v1 = vpop.f32.mrf.mxu0  ;;  %v939_v35 = vpack.c.bf16 %v907_v27, %v907_v27  ;;  %v529_v27 = vld [vmem:[%s3784_s13 + $0x98] sm:$0xff] }
  0xbb   : > { %v767_v2 = vadd.f32 %v3890_v42, %v731_v0  ;;  %v710_v4 = vmul.f32 %v3881_v41, %v629_v1  ;;  %v1754_v20 = vunpack.c.l.b16 %v1065_v7 }
  0xbc   : > { %v1532_v49 = vunpack.c.l.b16 %v939_v35 }
  0xbd   : > { %v799_v5 = vmax.f32 %v767_v2, 0.0  ;;  %v746_v6 = vadd.f32 %v3890_v42, %v710_v4  ;;  %v526_v4 = vld [vmem:[%s3784_s13 + $0x80] sm:$0xff] }
  0xbe   : > { %v1246_v9 = vld [vmem:[#allocation2 + $0x120] sm:$0xff] }
  0xbf   : > { %832 = vst.msk [vmem:[#allocation2 + $0x129] sm:$0xff] %vm464_vm1, %v799_v5  ;;  %v778_v8 = vmax.f32 %v746_v6, 0.0  ;;  %v1278_v30 = vpack.c.bf16 %v1246_v9, %v1246_v9  ;;  %v1310_v46 = vld [vmem:[#allocation2 + $0x121] sm:$0xff]  ;;  %v527_v5 = vld [vmem:[%s3784_s13 + $0x88] sm:$0xff] }
  0xc0   : > { %v1161_v10 = vld [vmem:[#allocation2 + $0x1a] sm:$0xff]  ;;  %v1162_v11 = vld [vmem:[#allocation2 + $0x22] sm:$0xff]  ;;  %v684_v13 = vpop.f32.mrf.mxu3  ;;  %v1342_v57 = vpack.c.bf16 %v1310_v46, %v1310_v46  ;;  %v550_v7 = vpack.c.bf16 %v527_v5, %v526_v4 }
  0xc1   : > { %v1034_v12 = vld [vmem:[#allocation2 + $0x20] sm:$0xff]  ;;  %v1193_v14 = vpack.c.bf16 %v1161_v10, %v1161_v10  ;;  %v1194_v15 = vpack.c.bf16 %v1162_v11, %v1162_v11  ;;  %811 = vst.msk [vmem:[#allocation2 + $0x31] sm:$0xff] %vm464_vm1, %v778_v8  ;;  %v732_v22 = vmul.f32 %v3881_v41, %v684_v13  ;;  %v2110_v43 = vunpack.c.l.b16 %v1278_v30 }
  0xc2   : > { %v1066_v16 = vpack.c.bf16 %v1034_v12, %v1034_v12  ;;  %v908_v17 = vld [vmem:[#allocation2 + $0x21] sm:$0xff]  ;;  %v631_v21 = vpop.f32.mrf.mxu0  ;;  %v2222_v0 = vunpack.c.l.b16 %v1342_v57  ;;  %3407 = vmatmul.msk.bf16.gmra.mxu0 %vm566_vm0, %v550_v7  ;;  %v530_v57 = vld [vmem:[%s3784_s13 + $0xa0] sm:$0xff] }
  0xc3   : > { %v1978_v24 = vunpack.c.l.b16 %v1193_v14  ;;  %v1979_v25 = vunpack.c.l.b16 %v1194_v15  ;;  %v711_v28 = vmul.f32 %v3881_v41, %v631_v21  ;;  %v940_v29 = vpack.c.bf16 %v908_v17, %v908_v17 }
  0xc4   : > { %v1755_v26 = vunpack.c.l.b16 %v1066_v16  ;;  %v768_v31 = vadd.f32 %v3890_v42, %v732_v22 }
  0xc5   : > { %v2010_v32 = vpack.c.b16 %v1979_v25, %v1978_v24  ;;  %v747_v34 = vadd.f32 %v3890_v42, %v711_v28  ;;  %v1533_v40 = vunpack.c.l.b16 %v940_v29 }
  0xc6   : > { %v3940_v33 = vpack.c.b16 %v1755_v26, %v1754_v20  ;;  %v1247_v36 = vld [vmem:[#allocation2 + $0x128] sm:$0xff]  ;;  %v800_v37 = vmax.f32 %v768_v31, 0.0  ;;  %v528_v26 = vld [vmem:[%s3784_s13 + $0x90] sm:$0xff] }
  0xc7   : > { %2026 = vrot.lane.b32.xlu2 %v2010_v32, %s3638_s17  ;;  %v1279_v38 = vpack.c.bf16 %v1247_v36, %v1247_v36  ;;  %v779_v39 = vmax.f32 %v747_v34, 0.0  ;;  %1692 = vrot.lane.b32.xlu0 %v2010_v32, %s3637_s15  ;;  %v1311_v47 = vld [vmem:[#allocation2 + $0x129] sm:$0xff]  ;;  %v1563_v55 = vpack.c.b16 %v1533_v40, %v1532_v49  ;;  %v551_v29 = vpack.c.bf16 %v529_v27, %v528_v26 }
  0xc8   : > { %1802 = vrot.lane.b32.xlu1 %v3940_v33, %s3639_s23  ;;  %833 = vst.msk [vmem:[#allocation2 + $0x139] sm:$0xff] %vm464_vm1, %v800_v37  ;;  %v686_v44 = vpop.f32.mrf.mxu3  ;;  %v1374_v50 = vld [vmem:[#allocation2 + $0x122] sm:$0xff]  ;;  %v1375_v51 = vld [vmem:[#allocation2 + $0x12a] sm:$0xff]  ;;  %v1343_v58 = vpack.c.bf16 %v1311_v47, %v1311_v47 }
  0xc9   : > { %v2111_v45 = vunpack.c.l.b16 %v1279_v38  ;;  %812 = vst.msk [vmem:[#allocation2 + $0x39] sm:$0xff] %vm464_vm1, %v779_v39  ;;  %v733_v48 = vmul.f32 %v3881_v41, %v686_v44  ;;  %v1406_v59 = vpack.c.bf16 %v1374_v50, %v1374_v50  ;;  %v1407_v60 = vpack.c.bf16 %v1375_v51, %v1375_v51  ;;  %v1226_v13 = vld [vmem:[#allocation2 + $0x30] sm:$0xff] }
  0xca   : > { %v634_v52 = vpop.f32.mrf.mxu0  ;;  %v2223_v1 = vunpack.c.l.b16 %v1343_v58  ;;  %v1290_v15 = vld [vmem:[#allocation2 + $0x31] sm:$0xff]  ;;  %v1258_v17 = vpack.c.bf16 %v1226_v13, %v1226_v13 }
  0xcb   : > { %v769_v53 = vadd.f32 %v3890_v42, %v733_v48  ;;  %v712_v54 = vmul.f32 %v3881_v41, %v634_v52  ;;  %v2132_v56 = vpack.c.b16 %v2111_v45, %v2110_v43  ;;  %v2334_v2 = vunpack.c.l.b16 %v1406_v59  ;;  %v531_v58 = vld [vmem:[%s3784_s13 + $0xa8] sm:$0xff] }
  0xcc   : > { %v2335_v3 = vunpack.c.l.b16 %v1407_v60  ;;  %v2244_v9 = vpack.c.b16 %v2223_v1, %v2222_v0  ;;  %v1322_v19 = vpack.c.bf16 %v1290_v15, %v1290_v15  ;;  %v2090_v21 = vunpack.c.l.b16 %v1258_v17 }
  0xcd   : > { %v801_v61 = vmax.f32 %v769_v53, 0.0  ;;  %v748_v62 = vadd.f32 %v3890_v42, %v712_v54  ;;  %v552_v60 = vpack.c.bf16 %v531_v58, %v530_v57 }
  0xce   : > { %v2356_v10 = vpack.c.b16 %v2335_v3, %v2334_v2  ;;  %v2202_v23 = vunpack.c.l.b16 %v1322_v19 }
  0xcf   : > { %1580 = vrot.lane.b32.xlu2 %v1563_v55, %s3636_s28  ;;  %834 = vst.msk [vmem:[#allocation2 + $0x141] sm:$0xff] %vm464_vm1, %v801_v61  ;;  %v780_v63 = vmax.f32 %v748_v62, 0.0  ;;  %2158 = vrot.lane.b32.xlu0 %v2132_v56, %s3641_s24  ;;  %v1312_v44 = vld [vmem:[#allocation2 + $0x139] sm:$0xff] }
  0xd0   : > { %1914 = vrot.lane.b32.xlu1 %v1563_v55, %s3640_s19  ;;  %v1227_v14 = vld [vmem:[#allocation2 + $0x38] sm:$0xff]  ;;  %v689_v25 = vpop.f32.mrf.mxu3  ;;  %v1344_v48 = vpack.c.bf16 %v1312_v44, %v1312_v44 }
  0xd1   : > { %813 = vst.msk [vmem:[#allocation2 + $0x49] sm:$0xff] %vm464_vm1, %v780_v63  ;;  %v1291_v16 = vld [vmem:[#allocation2 + $0x39] sm:$0xff]  ;;  %v1259_v18 = vpack.c.bf16 %v1227_v14, %v1227_v14  ;;  %v734_v28 = vmul.f32 %v3881_v41, %v689_v25 }
  0xd2   : > { %v636_v6 = vpop.f32.mrf.mxu0  ;;  %v1323_v20 = vpack.c.bf16 %v1291_v16, %v1291_v16  ;;  %v1354_v30 = vld [vmem:[#allocation2 + $0x32] sm:$0xff]  ;;  %v1355_v31 = vld [vmem:[#allocation2 + $0x3a] sm:$0xff]  ;;  %3408 = vmatmul.msk.bf16.gmra.mxu0 %vm566_vm0, %v551_v29  ;;  %v2224_v53 = vunpack.c.l.b16 %v1344_v48 }
  0xd3   : > { %v713_v8 = vmul.f32 %v3881_v41, %v636_v6  ;;  %v2091_v22 = vunpack.c.l.b16 %v1259_v18  ;;  %v770_v34 = vadd.f32 %v3890_v42, %v734_v28  ;;  %v1386_v36 = vpack.c.bf16 %v1354_v30, %v1354_v30 }
  0xd4   : > { %v2203_v24 = vunpack.c.l.b16 %v1323_v20  ;;  %v1387_v37 = vpack.c.bf16 %v1355_v31, %v1355_v31 }
  0xd5   : > { %v749_v11 = vadd.f32 %v3890_v42, %v713_v8  ;;  %v2122_v32 = vpack.c.b16 %v2091_v22, %v2090_v21  ;;  %v802_v38 = vmax.f32 %v770_v34, 0.0  ;;  %v2314_v40 = vunpack.c.l.b16 %v1386_v36  ;;  %v1057_v8 = vld [vmem:[#allocation2 + $0x138] sm:$0xff] }
  0xd6   : > { %v2234_v35 = vpack.c.b16 %v2203_v24, %v2202_v23  ;;  %v2315_v43 = vunpack.c.l.b16 %v1387_v37  ;;  %v1313_v45 = vld [vmem:[#allocation2 + $0x141] sm:$0xff]  ;;  %v1089_v14 = vpack.c.bf16 %v1057_v8, %v1057_v8 }
  0xd7   : > { %2270 = vrot.lane.b32.xlu2 %v2244_v9, %s3642_s25  ;;  %v781_v12 = vmax.f32 %v749_v11, 0.0  ;;  %2048 = vrot.lane.b32.xlu0 %v2356_v10, %s3638_s17  ;;  %835 = vst.msk [vmem:[#allocation2 + $0x151] sm:$0xff] %vm464_vm1, %v802_v38  ;;  %v1345_v49 = vpack.c.bf16 %v1313_v45, %v1313_v45  ;;  %v1376_v52 = vld [vmem:[#allocation2 + $0x13a] sm:$0xff]  ;;  %v1377_v55 = vld [vmem:[#allocation2 + $0x142] sm:$0xff] }
  0xd8   : > { %2382 = vrot.lane.b32.xlu1 %v2356_v10, %s3643_s20  ;;  %v691_v39 = vpop.f32.mrf.mxu3  ;;  %v2346_v50 = vpack.c.b16 %v2315_v43, %v2314_v40  ;;  %v1408_v61 = vpack.c.bf16 %v1376_v52, %v1376_v52  ;;  %v1409_v62 = vpack.c.bf16 %v1377_v55, %v1377_v55  ;;  %v1778_v19 = vunpack.c.l.b16 %v1089_v14  ;;  %v1037_v21 = vld [vmem:[#allocation2 + $0x48] sm:$0xff] }
  0xd9   : > { %814 = vst.msk [vmem:[#allocation2 + $0x51] sm:$0xff] %vm464_vm1, %v781_v12  ;;  %v735_v46 = vmul.f32 %v3881_v41, %v691_v39  ;;  %v2225_v54 = vunpack.c.l.b16 %v1345_v49  ;;  %v1069_v24 = vpack.c.bf16 %v1037_v21, %v1037_v21  ;;  %v1292_v29 = vld [vmem:[#allocation2 + $0x49] sm:$0xff] }
  0xda   : > { %v2336_v2 = vunpack.c.l.b16 %v1408_v61  ;;  %v2337_v3 = vunpack.c.l.b16 %v1409_v62 }
  0xdb   : > { %v771_v47 = vadd.f32 %v3890_v42, %v735_v46  ;;  %v3990_v0 = vpack.c.b16 %v2225_v54, %v2224_v53  ;;  %v1758_v27 = vunpack.c.l.b16 %v1069_v24 }
  0xdd   : > { %v803_v51 = vmax.f32 %v771_v47, 0.0 }
  0xde   : > { %v1250_v58 = vld [vmem:[#allocation2 + $0x150] sm:$0xff] }
  0xdf   : > { %1936 = vrot.lane.b32.xlu2 %v2244_v9, %s3640_s19  ;;  %1602 = vrot.lane.b32.xlu0 %v2244_v9, %s3636_s28  ;;  %836 = vst.msk [vmem:[#allocation2 + $0x159] sm:$0xff] %vm464_vm1, %v803_v51  ;;  %v1058_v9 = vld [vmem:[#allocation2 + $0x140] sm:$0xff] }
  0xe0   : > { %1824 = vrot.lane.b32.xlu1 %v2132_v56, %s3639_s23  ;;  %v639_v56 = vpop.f32.mrf.mxu0  ;;  %v1356_v5 = vld [vmem:[#allocation2 + $0x4a] sm:$0xff]  ;;  %v1357_v6 = vld [vmem:[#allocation2 + $0x52] sm:$0xff]  ;;  %v1090_v15 = vpack.c.bf16 %v1058_v9, %v1058_v9  ;;  %v694_v31 = vpop.f32.mrf.mxu3 }
  0xe1   : > { %v714_v59 = vmul.f32 %v3881_v41, %v639_v56  ;;  %v1388_v12 = vpack.c.bf16 %v1356_v5, %v1356_v5  ;;  %v1389_v13 = vpack.c.bf16 %v1357_v6, %v1357_v6  ;;  %v1038_v22 = vld [vmem:[#allocation2 + $0x50] sm:$0xff] }
  0xe2   : > { %3409 = vmatmul.msk.bf16.gmra.mxu0 %vm566_vm0, %v552_v60  ;;  %v1779_v20 = vunpack.c.l.b16 %v1090_v15  ;;  %v1070_v25 = vpack.c.bf16 %v1038_v22, %v1038_v22  ;;  %v1293_v30 = vld [vmem:[#allocation2 + $0x51] sm:$0xff]  ;;  %v1282_v60 = vpack.c.bf16 %v1250_v58, %v1250_v58 }
  0xe3   : > { %v750_v63 = vadd.f32 %v3890_v42, %v714_v59  ;;  %v2316_v17 = vunpack.c.l.b16 %v1388_v12  ;;  %v2317_v18 = vunpack.c.l.b16 %v1389_v13  ;;  %v1325_v36 = vpack.c.bf16 %v1293_v30, %v1293_v30 }
  0xe4   : > { %v1798_v26 = vpack.c.b16 %v1779_v20, %v1778_v19  ;;  %v1759_v28 = vunpack.c.l.b16 %v1070_v25  ;;  %v2114_v5 = vunpack.c.l.b16 %v1282_v60 }
  0xe5   : > { %v782_v1 = vmax.f32 %v750_v63, 0.0  ;;  %v4005_v23 = vpack.c.b16 %v2317_v18, %v2316_v17  ;;  %v2205_v40 = vunpack.c.l.b16 %v1325_v36  ;;  %v540_v63 = vld [vmem:[%s3784_s13 + $0xf0] sm:$0xff] }
  0xe6   : > { %v1788_v34 = vpack.c.b16 %v1759_v28, %v1758_v27  ;;  %v1378_v43 = vld [vmem:[#allocation2 + $0x152] sm:$0xff]  ;;  %v1379_v44 = vld [vmem:[#allocation2 + $0x15a] sm:$0xff] }
  0xe7   : > { %2138 = vrot.lane.b32.xlu2 %v2122_v32, %s3641_s24  ;;  %2250 = vrot.lane.b32.xlu0 %v2234_v35, %s3642_s25  ;;  %815 = vst.msk [vmem:[#allocation2 + $0x61] sm:$0xff] %vm464_vm1, %v782_v1  ;;  %v1410_v49 = vpack.c.bf16 %v1378_v43, %v1378_v43  ;;  %v1251_v59 = vld [vmem:[#allocation2 + $0x158] sm:$0xff]  ;;  %v541_v1 = vld [vmem:[%s3784_s13 + $0xf8] sm:$0xff] }
  0xe8   : > { %1714 = vrot.lane.b32.xlu1 %v2356_v10, %s3637_s15  ;;  %v641_v4 = vpop.f32.mrf.mxu0  ;;  %v2357_v10 = vpack.c.b16 %v2337_v3, %v2336_v2  ;;  %v696_v46 = vpop.f32.mrf.mxu3  ;;  %v1283_v61 = vpack.c.bf16 %v1251_v59, %v1251_v59  ;;  %v557_v3 = vpack.c.bf16 %v541_v1, %v540_v63  ;;  %v1314_v27 = vld [vmem:[#allocation2 + $0x151] sm:$0xff]  ;;  %v1315_v28 = vld [vmem:[#allocation2 + $0x159] sm:$0xff] }
  0xe9   : > { %v715_v7 = vmul.f32 %v3881_v41, %v641_v4  ;;  %v737_v48 = vmul.f32 %v3881_v41, %v696_v46  ;;  %v2338_v56 = vunpack.c.l.b16 %v1410_v49 }
  0xea   : > { %3414 = vmatmul.msk.bf16.gmra.mxu3 %vm566_vm0, %v557_v3  ;;  %v2115_v6 = vunpack.c.l.b16 %v1283_v61  ;;  %v3497_v61 = vld [vmem:[%s4835_s4 + $0x10] sm:$0xff] }
  0xeb   : > { %v751_v11 = vadd.f32 %v3890_v42, %v715_v7  ;;  %v773_v53 = vadd.f32 %v3890_v42, %v737_v48 }
  0xed   : > { %v783_v16 = vmax.f32 %v751_v11, 0.0  ;;  %v805_v55 = vmax.f32 %v773_v53, 0.0  ;;  %v2134_v11 = vpack.c.b16 %v2115_v6, %v2114_v5 }
  0xee   : > { %v1230_v7 = vld [vmem:[#allocation2 + $0x60] sm:$0xff] }
  0xef   : > { %1916 = vrot.lane.b32.xlu2 %v2234_v35, %s3640_s19  ;;  %2028 = vrot.lane.b32.xlu0 %v2346_v50, %s3638_s17  ;;  %816 = vst.msk [vmem:[#allocation2 + $0x69] sm:$0xff] %vm464_vm1, %v783_v16  ;;  %v1262_v12 = vpack.c.bf16 %v1230_v7, %v1230_v7  ;;  %v4040_v16 = vpop.permute.xlu0 %1578  ;;  %v1103_v25 = vld [vmem:[#allocation2 + $0x61] sm:$0xff] }
  0xf0   : > { %2362 = vrot.lane.b32.xlu1 %v2346_v50, %s3643_s20  ;;  %v644_v45 = vpop.f32.mrf.mxu0  ;;  %838 = vst.msk [vmem:[#allocation2 + $0x171] sm:$0xff] %vm464_vm1, %v805_v55  ;;  %v3496_v7 = vld [vmem:[%s4835_s4 + $0x8] sm:$0xff] }
  0xf1   : > { %v716_v47 = vmul.f32 %v3881_v41, %v644_v45  ;;  %v2094_v18 = vunpack.c.l.b16 %v1262_v12 }
  0xf3   : > { %v752_v52 = vadd.f32 %v3890_v42, %v716_v47 }
  0xf5   : > { %v784_v54 = vmax.f32 %v752_v52, 0.0 }
  0xf6   : > { %v1231_v8 = vld [vmem:[#allocation2 + $0x68] sm:$0xff] }
  0xf7   : > { %1694 = vrot.lane.b32.xlu2 %v2346_v50, %s3637_s15  ;;  %2272 = vrot.lane.b32.xlu0 %v3990_v0, %s3642_s25  ;;  %v1411_v50 = vpack.c.bf16 %v1379_v44, %v1379_v44  ;;  %817 = vst.msk [vmem:[#allocation2 + $0x79] sm:$0xff] %vm464_vm1, %v784_v54  ;;  %v1263_v13 = vpack.c.bf16 %v1231_v8, %v1231_v8  ;;  %v1358_v20 = vld [vmem:[#allocation2 + $0x62] sm:$0xff]  ;;  %v1359_v21 = vld [vmem:[#allocation2 + $0x6a] sm:$0xff]  ;;  %v4056_v47 = vpop.permute.xlu0 %1690 }
  0xf8   : > { %1804 = vrot.lane.b32.xlu1 %v2122_v32, %s3639_s23  ;;  %v736_v32 = vmul.f32 %v3881_v41, %v694_v31  ;;  %v646_v62 = vpop.f32.mrf.mxu0  ;;  %v1390_v30 = vpack.c.bf16 %v1358_v20, %v1358_v20  ;;  %v1391_v31 = vpack.c.bf16 %v1359_v21, %v1359_v21 }
  0xf9   : > { %v2339_v57 = vunpack.c.l.b16 %v1411_v50  ;;  %v2095_v19 = vunpack.c.l.b16 %v1263_v13 }
  0xfa   : > { %v772_v37 = vadd.f32 %v3890_v42, %v736_v32  ;;  %v2318_v45 = vunpack.c.l.b16 %v1390_v30  ;;  %v2319_v46 = vunpack.c.l.b16 %v1391_v31 }
  0xfb   : > { %v2358_v2 = vpack.c.b16 %v2339_v57, %v2338_v56  ;;  %v3498_v56 = vld [vmem:[%s4835_s4 + $0x18] sm:$0xff] }
  0xfc   : > { %v804_v38 = vmax.f32 %v772_v37, 0.0 }
  0xfe   : > { %837 = vst.msk [vmem:[#allocation2 + $0x169] sm:$0xff] %vm464_vm1, %v804_v38  ;;  %v1296_v21 = vld [vmem:[#allocation2 + $0x79] sm:$0xff] }
  0xff   : > { %2384 = vrot.lane.b32.xlu2 %v2357_v10, %s3643_s20  ;;  %1938 = vrot.lane.b32.xlu0 %v3990_v0, %s3640_s19  ;;  %v1328_v31 = vpack.c.bf16 %v1296_v21, %v1296_v21 }
 0x100   : > { %1582 = vrot.lane.b32.xlu1 %v2234_v35, %s3636_s28  ;;  %v1324_v35 = vpack.c.bf16 %v1292_v29, %v1292_v29  ;;  %v649_v14 = vpop.f32.mrf.mxu0  ;;  %v2124_v29 = vpack.c.b16 %v2095_v19, %v2094_v18 }
 0x101   : > { %v718_v15 = vmul.f32 %v3881_v41, %v649_v14 }
 0x102   : > { %v2204_v39 = vunpack.c.l.b16 %v1324_v35  ;;  %v1135_v35 = vpack.c.bf16 %v1103_v25, %v1103_v25 }
 0x103   : > { %v754_v17 = vadd.f32 %v3890_v42, %v718_v15 }
 0x104   : > { %v2235_v51 = vpack.c.b16 %v2205_v40, %v2204_v39  ;;  %v1346_v39 = vpack.c.bf16 %v1314_v27, %v1314_v27  ;;  %v1347_v40 = vpack.c.bf16 %v1315_v28, %v1315_v28  ;;  %v1872_v48 = vunpack.c.l.b16 %v1135_v35  ;;  %v842_v28 = vld [vmem:[#allocation2 + $0x8] sm:$0xff] }
 0x105   : > { %v786_v22 = vmax.f32 %v754_v17, 0.0  ;;  %v1316_v15 = vld [vmem:[#allocation2 + $0x169] sm:$0xff]  ;;  %v1317_v17 = vld [vmem:[#allocation2 + $0x171] sm:$0xff] }
 0x106   : > { %v2226_v53 = vunpack.c.l.b16 %v1346_v39  ;;  %v2227_v54 = vunpack.c.l.b16 %v1347_v40  ;;  %v1348_v25 = vpack.c.bf16 %v1316_v15, %v1316_v15  ;;  %v2208_v40 = vunpack.c.l.b16 %v1328_v31 }
 0x107   : > { %1826 = vrot.lane.b32.xlu2 %v1798_v26, %s3639_s23  ;;  %2364 = vrot.lane.b32.xlu0 %v4005_v23, %s3643_s20  ;;  %819 = vst.msk [vmem:[#allocation2 + $0x91] sm:$0xff] %vm464_vm1, %v786_v22 }
 0x108   : > { %2160 = vrot.lane.b32.xlu1 %v1798_v26, %s3641_s24  ;;  %v1104_v26 = vld [vmem:[#allocation2 + $0x69] sm:$0xff]  ;;  %v651_v32 = vpop.f32.mrf.mxu0  ;;  %v2246_v59 = vpack.c.b16 %v2227_v54, %v2226_v53 }
 0x109   : > { %v1136_v36 = vpack.c.bf16 %v1104_v26, %v1104_v26  ;;  %v719_v37 = vmul.f32 %v3881_v41, %v651_v32  ;;  %v1349_v26 = vpack.c.bf16 %v1317_v17, %v1317_v17 }
 0x10b   : > { %v755_v43 = vadd.f32 %v3890_v42, %v719_v37  ;;  %v1873_v49 = vunpack.c.l.b16 %v1136_v36  ;;  %v874_v36 = vpack.c.bf16 %v842_v28, %v842_v28  ;;  %v2229_v39 = vunpack.c.l.b16 %v1349_v26 }
 0x10d   : > { %v787_v50 = vmax.f32 %v755_v43, 0.0  ;;  %v1901_v57 = vpack.c.b16 %v1873_v49, %v1872_v48  ;;  %v1232_v48 = vld [vmem:[#allocation2 + $0x78] sm:$0xff]  ;;  %v1451_v54 = vunpack.c.l.b16 %v874_v36 }
 0x10f   : > { %1716 = vrot.lane.b32.xlu2 %v2357_v10, %s3637_s15  ;;  %1806 = vrot.lane.b32.xlu0 %v1788_v34, %s3639_s23  ;;  %820 = vst.msk [vmem:[#allocation2 + $0x99] sm:$0xff] %vm464_vm1, %v787_v50 }
 0x110   : > { %2050 = vrot.lane.b32.xlu1 %v2357_v10, %s3638_s17  ;;  %v654_v55 = vpop.f32.mrf.mxu0 }
 0x111   : > { %v720_v58 = vmul.f32 %v3881_v41, %v654_v55 }
 0x113   : > { %v756_v60 = vadd.f32 %v3890_v42, %v720_v58 }
 0x116   : > { %v1299_v31 = vld [vmem:[#allocation2 + $0x99] sm:$0xff] }
 0x117   : > { %2252 = vrot.lane.b32.xlu2 %v2235_v51, %s3642_s25  ;;  %1584 = vrot.lane.b32.xlu0 %v2235_v51, %s3636_s28 }
 0x118   : > { %1604 = vrot.lane.b32.xlu1 %v3990_v0, %s3636_s28  ;;  %v717_v0 = vmul.f32 %v3881_v41, %v646_v62  ;;  %v788_v62 = vmax.f32 %v756_v60, 0.0  ;;  %v656_v6 = vpop.f32.mrf.mxu0  ;;  %v866_v60 = vld [vmem:[#allocation2 + $0x128] sm:$0xff] }
 0x11a   : > { %v753_v4 = vadd.f32 %v3890_v42, %v717_v0  ;;  %v1253_v0 = vld [vmem:[#allocation2 + $0x170] sm:$0xff]  ;;  %821 = vst.msk [vmem:[#allocation2 + $0xa9] sm:$0xff] %vm464_vm1, %v788_v62  ;;  %v1264_v62 = vpack.c.bf16 %v1232_v48, %v1232_v48  ;;  %v1331_v48 = vpack.c.bf16 %v1299_v31, %v1299_v31 }
 0x11c   : > { %v785_v9 = vmax.f32 %v753_v4, 0.0 }
 0x11e   : > { %818 = vst.msk [vmem:[#allocation2 + $0x81] sm:$0xff] %vm464_vm1, %v785_v9  ;;  %v1285_v9 = vpack.c.bf16 %v1253_v0, %v1253_v0 }
 0x11f   : > { %2030 = vrot.lane.b32.xlu2 %v4005_v23, %s3638_s17  ;;  %2386 = vrot.lane.b32.xlu0 %v2358_v2, %s3643_s20 }
 0x120   : > { %2140 = vrot.lane.b32.xlu1 %v1788_v34, %s3641_s24  ;;  %v2680_v34 = vld [vmem:[%s4835_s4 + $0x20] sm:$0xf]  ;;  %v2117_v14 = vunpack.c.l.b16 %v1285_v9  ;;  %v659_v27 = vpop.f32.mrf.mxu0 }
 0x121   : > { %v4036_v10 = vpop.permute.xlu2 %2026  ;;  %v2698_v38 = vunpack.c.l.b16 %v2680_v34  ;;  %v722_v34 = vmul.f32 %v3881_v41, %v659_v27 }
 0x123   : > { %v2703_v44 = vpack.c.b16 %v2698_v38, %v2698_v38  ;;  %v758_v35 = vadd.f32 %v3890_v42, %v722_v34  ;;  %v2228_v38 = vunpack.c.l.b16 %v1348_v25 }
 0x125   : > { %v1297_v22 = vld [vmem:[#allocation2 + $0x81] sm:$0xff] }
 0x126   : > { %v1329_v32 = vpack.c.bf16 %v1297_v22, %v1297_v22  ;;  %v1233_v50 = vld [vmem:[#allocation2 + $0x80] sm:$0xff] }
 0x127   : > { %2162 = vrot.lane.b32.xlu2 %v2134_v11, %s3641_s24  ;;  %1828 = vrot.lane.b32.xlu0 %v2134_v11, %s3639_s23  ;;  %v721_v11 = vmul.f32 %v3881_v41, %v656_v6  ;;  %v1361_v53 = vld [vmem:[#allocation2 + $0x82] sm:$0xff] }
 0x128   : > { %1918 = vrot.lane.b32.xlu1 %v2235_v51, %s3640_s19  ;;  %v2743_v51 = vsel %vm2741_vm4, %v2703_v44, 0  ;;  %v2209_v43 = vunpack.c.l.b16 %v1329_v32  ;;  %v790_v44 = vmax.f32 %v758_v35, 0.0 }
 0x129   : > { %v1581_v24 = vpop.permute.xlu2 %1580  ;;  %2748 = vmatpush.bf16.msra.mxu1 %v2743_v51  ;;  %3501 = vmatpush.bf16.msra.mxu2 %v2743_v51  ;;  %v757_v12 = vadd.f32 %v3890_v42, %v721_v11  ;;  %v1360_v51 = vld [vmem:[#allocation2 + $0x7a] sm:$0xff] }
 0x12a   : > { %v2399_v3 = vsel %vm464_vm1, %v3940_v33, %v1581_v24  ;;  %v3495_v33 = vld [vmem:[%s4835_s4] sm:$0xff]  ;;  %823 = vst.msk [vmem:[#allocation2 + $0xc1] sm:$0xff] %vm464_vm1, %v790_v44  ;;  %v4117_v58 = vpack.c.b16 %v2209_v43, %v2208_v40  ;;  %v1392_v0 = vpack.c.bf16 %v1360_v51, %v1360_v51 }
 0x12b   : > { %v789_v18 = vmax.f32 %v757_v12, 0.0 }
 0x12d   : > { %2749 = vmatpush.bf16.msra.mxu1 %v3498_v56  ;;  %3502 = vmatpush.bf16.msra.mxu2 %v3498_v56  ;;  %822 = vst.msk [vmem:[#allocation2 + $0xb1] sm:$0xff] %vm464_vm1, %v789_v18  ;;  %v2247_v56 = vpack.c.b16 %v2229_v39, %v2228_v38  ;;  %v1363_v38 = vld [vmem:[#allocation2 + $0x9a] sm:$0xff] }
 0x12e   : > { %v1395_v51 = vpack.c.bf16 %v1363_v38, %v1363_v38 }
 0x12f   : > { %2052 = vrot.lane.b32.xlu2 %v2358_v2, %s3638_s17  ;;  %2142 = vrot.lane.b32.xlu0 %v2124_v29, %s3641_s24  ;;  %v1252_v2 = vld [vmem:[#allocation2 + $0x168] sm:$0xff] }
 0x130   : > { %1696 = vrot.lane.b32.xlu1 %v4005_v23, %s3637_s15  ;;  %v4062_v23 = vpack.c.b16 %v2319_v46, %v2318_v45  ;;  %v1284_v8 = vpack.c.bf16 %v1252_v2, %v1252_v2  ;;  %v1265_v2 = vpack.c.bf16 %v1233_v50, %v1233_v50 }
 0x131   : > { %v4059_v52 = vpop.permute.xlu2 %2270  ;;  %2750 = vmatpush.bf16.msra.mxu1 %v3497_v61  ;;  %3503 = vmatpush.bf16.msra.mxu2 %v3497_v61 }
 0x132   : > { %v2116_v13 = vunpack.c.l.b16 %v1284_v8  ;;  %v898_v8 = vpack.c.bf16 %v866_v60, %v866_v60 }
 0x134   : > { %v2135_v30 = vpack.c.b16 %v2117_v14, %v2116_v13  ;;  %v2097_v13 = vunpack.c.l.b16 %v1265_v2  ;;  %v2320_v14 = vunpack.c.l.b16 %v1392_v0  ;;  %v1475_v21 = vunpack.c.l.b16 %v898_v8  ;;  %v845_v8 = vld [vmem:[#allocation2 + $0x30] sm:$0xff] }
 0x135   : > { %2751 = vmatpush.bf16.msra.mxu1 %v3496_v7  ;;  %3504 = vmatpush.bf16.msra.mxu2 %v3496_v7 }
 0x137   : > { %2366 = vrot.lane.b32.xlu2 %v4062_v23, %s3643_s20  ;;  %1920 = vrot.lane.b32.xlu0 %v1901_v57, %s3640_s19 }
 0x138   : > { %2274 = vrot.lane.b32.xlu1 %v2246_v59, %s3642_s25 }
 0x139   : > { %v4076_v63 = vpop.permute.xlu2 %1936  ;;  %v1693_v4 = vpop.permute.xlu0 %1692  ;;  %2752 = vmatpush.bf16.msra.mxu1 %v3495_v33  ;;  %3505 = vmatpush.bf16.msra.mxu2 %v3495_v33  ;;  %v2096_v33 = vunpack.c.l.b16 %v1264_v62 }
 0x13a   : > { %v4078_v1 = vpop.permute.xlu1 %1802  ;;  %v4084_v5 = vsel %vm566_vm0, %v2399_v3, %v1693_v4  ;;  %v1393_v3 = vpack.c.bf16 %v1361_v53, %v1361_v53 }
 0x13b   : > { %v2125_v26 = vpack.c.b16 %v2097_v13, %v2096_v33 }
 0x13c   : > { %v2321_v15 = vunpack.c.l.b16 %v1393_v3  ;;  %v1043_v3 = vld [vmem:[#allocation2 + $0x90] sm:$0xff] }
 0x13d   : > { %v1075_v13 = vpack.c.bf16 %v1043_v3, %v1043_v3 }
 0x13e   : > { %v2349_v27 = vpack.c.b16 %v2321_v15, %v2320_v14  ;;  %v846_v15 = vld [vmem:[#allocation2 + $0x38] sm:$0xff] }
 0x13f   : > { %1808 = vrot.lane.b32.xlu2 %v2124_v29, %s3639_s23  ;;  %1698 = vrot.lane.b32.xlu0 %v4062_v23, %s3637_s15  ;;  %v841_v29 = vld [vmem:[#allocation2] sm:$0xff] }
 0x140   : > { %1940 = vrot.lane.b32.xlu1 %v2246_v59, %s3640_s19  ;;  %v873_v37 = vpack.c.bf16 %v841_v29, %v841_v29  ;;  %v865_v59 = vld [vmem:[#allocation2 + $0x120] sm:$0xff] }
 0x141   : > { %v4098_v19 = vpop.permute.xlu2 %2138  ;;  %v4102_v24 = vpop.permute.xlu0 %2158  ;;  %v897_v7 = vpack.c.bf16 %v865_v59, %v865_v59 }
 0x142   : > { %v4100_v20 = vpop.permute.xlu1 %1914  ;;  %v1450_v55 = vunpack.c.l.b16 %v873_v37  ;;  %v1362_v37 = vld [vmem:[#allocation2 + $0x92] sm:$0xff] }
 0x143   : > { %v1474_v18 = vunpack.c.l.b16 %v897_v7 }
 0x144   : > { %v1482_v6 = vpack.c.b16 %v1451_v54, %v1450_v55 }
 0x147   : > { %1586 = vrot.lane.b32.xlu2 %v1901_v57, %s3636_s28  ;;  %2164 = vrot.lane.b32.xlu0 %v2135_v30, %s3641_s24  ;;  %v1494_v30 = vpack.c.b16 %v1475_v21, %v1474_v18  ;;  %v877_v18 = vpack.c.bf16 %v845_v8, %v845_v8  ;;  %v878_v21 = vpack.c.bf16 %v846_v15, %v846_v15  ;;  %v867_v15 = vld [vmem:[#allocation2 + $0x138] sm:$0xff] }
 0x148   : > { %2254 = vrot.lane.b32.xlu1 %v1901_v57, %s3642_s25  ;;  %v661_v57 = vpop.f32.mrf.mxu0 }
 0x149   : > { %v4110_v45 = vpop.permute.xlu2 %1916  ;;  %v4114_v49 = vpop.permute.xlu0 %2048  ;;  %v723_v61 = vmul.f32 %v3881_v41, %v661_v57  ;;  %v1454_v31 = vunpack.c.l.b16 %v877_v18 }
 0x14a   : > { %v4112_v46 = vpop.permute.xlu1 %2382 }
 0x14b   : > { %v759_v4 = vadd.f32 %v3890_v42, %v723_v61 }
 0x14d   : > { %v791_v9 = vmax.f32 %v759_v4, 0.0  ;;  %v1044_v4 = vld [vmem:[#allocation2 + $0x98] sm:$0xff] }
 0x14e   : > { %v1076_v14 = vpack.c.bf16 %v1044_v4, %v1044_v4  ;;  %v1173_v4 = vld [vmem:[#allocation2 + $0xaa] sm:$0xff] }
 0x14f   : > { %2276 = vrot.lane.b32.xlu2 %v2247_v56, %s3642_s25  ;;  %2256 = vrot.lane.b32.xlu0 %v4117_v58, %s3642_s25  ;;  %824 = vst.msk [vmem:[#allocation2 + $0xc9] sm:$0xff] %vm464_vm1, %v791_v9  ;;  %v2211_v56 = vunpack.c.l.b16 %v1331_v48  ;;  %v4171_v9 = vld [vmem:[%s4833_s2] ss:$0 sm:$0xff] }
 0x150   : > { %2032 = vrot.lane.b32.xlu1 %v4062_v23, %s3638_s17  ;;  %v2396_v23 = vsel %vm464_vm1, %v1482_v6, %v4040_v16  ;;  %v664_v22 = vpop.f32.mrf.mxu0  ;;  %v1298_v16 = vld [vmem:[#allocation2 + $0x91] sm:$0xff] }
 0x151   : > { %v4126_v11 = vpop.permute.xlu2 %1694  ;;  %v1603_v17 = vpop.permute.xlu0 %1602  ;;  %v724_v25 = vmul.f32 %v3881_v41, %v664_v22  ;;  %v2443_v28 = vsel %vm566_vm0, %v2396_v23, %v4056_v47  ;;  %v1330_v44 = vpack.c.bf16 %v1298_v16, %v1298_v16 }
 0x152   : > { %v4128_v12 = vpop.permute.xlu1 %1824  ;;  %v2476_v34 = vsel %vm2474_vm5, %v2443_v28, %v4078_v1  ;;  %v2432_v35 = vsel %vm464_vm1, %v1494_v30, %v1603_v17  ;;  %v1394_v1 = vpack.c.bf16 %v1362_v37, %v1362_v37  ;;  %v4177_v17 = vld [vmem:[%s4834_s3] ss:$0 sm:$0xff]  ;;  %v1765_v28 = vunpack.c.l.b16 %v1076_v14  ;;  %v1301_v30 = vld [vmem:[#allocation2 + $0xb1] sm:$0xff] }
 0x153   : > { %v760_v29 = vadd.f32 %v3890_v42, %v724_v25  ;;  %v2509_v39 = vsel %vm2507_vm6, %v2476_v34, %v4100_v20  ;;  %v2210_v20 = vunpack.c.l.b16 %v1330_v44 }
 0x154   : > { %v2542_v54 = vsel %vm2540_vm7, %v2509_v39, %v4036_v10  ;;  %v2323_v10 = vunpack.c.l.b16 %v1395_v51 }
 0x155   : > { %v792_v32 = vmax.f32 %v760_v29, 0.0  ;;  %v2575_v57 = vsel %vm2573_vm8, %v2542_v54, %v4098_v19  ;;  %v2238_v19 = vpack.c.b16 %v2211_v56, %v2210_v20  ;;  %v1300_v29 = vld [vmem:[#allocation2 + $0xa9] sm:$0xff] }
 0x156   : > { %v1332_v34 = vpack.c.bf16 %v1300_v29, %v1300_v29  ;;  %v1237_v54 = vld [vmem:[#allocation2 + $0xb0] sm:$0xff] }
 0x157   : > { %2144 = vrot.lane.b32.xlu2 %v2125_v26, %s3641_s24  ;;  %2034 = vrot.lane.b32.xlu0 %v2349_v27, %s3638_s17  ;;  %825 = vst.msk [vmem:[#allocation2 + $0xd9] sm:$0xff] %vm464_vm1, %v792_v32  ;;  %v1455_v32 = vunpack.c.l.b16 %v878_v21  ;;  %v899_v21 = vpack.c.bf16 %v867_v15, %v867_v15 }
 0x158   : > { %2368 = vrot.lane.b32.xlu1 %v2349_v27, %s3643_s20  ;;  %v666_v50 = vpop.f32.mrf.mxu0 }
 0x159   : > { %v4143_v47 = vpop.permute.xlu2 %2384  ;;  %v2251_v43 = vpop.permute.xlu0 %2250  ;;  %v725_v53 = vmul.f32 %v3881_v41, %v666_v50  ;;  %v2322_v41 = vunpack.c.l.b16 %v1394_v1  ;;  %v1484_v39 = vpack.c.b16 %v1455_v32, %v1454_v31 }
 0x15a   : > { %v1715_v36 = vpop.permute.xlu1 %1714  ;;  %v2608_v60 = vsel %vm2606_vm9, %v2575_v57, %v2251_v43 }
 0x15b   : > { %v2467_v40 = vsel %vm566_vm0, %v2432_v35, %v1715_v36  ;;  %v761_v55 = vadd.f32 %v3890_v42, %v725_v53  ;;  %v4166_v7 = vpack.c.b16 %v2323_v10, %v2322_v41  ;;  %v1333_v35 = vpack.c.bf16 %v1301_v30, %v1301_v30  ;;  %v1236_v53 = vld [vmem:[#allocation2 + $0xa8] sm:$0xff] }
 0x15c   : > { %v1268_v10 = vpack.c.bf16 %v1236_v53, %v1236_v53 }
 0x15d   : > { %v793_v59 = vmax.f32 %v761_v55, 0.0  ;;  %v2213_v43 = vunpack.c.l.b16 %v1333_v35  ;;  %v1239_v35 = vld [vmem:[#allocation2 + $0xc8] sm:$0xff] }
 0x15f   : > { %1922 = vrot.lane.b32.xlu2 %v4117_v58, %s3640_s19  ;;  %1700 = vrot.lane.b32.xlu0 %v2349_v27, %s3637_s15  ;;  %826 = vst.msk [vmem:[#allocation2 + $0xe1] sm:$0xff] %vm464_vm1, %v793_v59  ;;  %v1764_v27 = vunpack.c.l.b16 %v1075_v13  ;;  %v1269_v59 = vpack.c.bf16 %v1237_v54, %v1237_v54  ;;  %v1205_v13 = vpack.c.bf16 %v1173_v4, %v1173_v4 }
 0x160   : > { %1810 = vrot.lane.b32.xlu1 %v2125_v26, %s3639_s23  ;;  %v669_v6 = vpop.f32.mrf.mxu0 }
 0x161   : > { %v1827_v42 = vpop.permute.xlu2 %1826  ;;  %v4161_v2 = vpop.permute.xlu0 %2028  ;;  %v726_v33 = vmul.f32 %v4171_v9, %v669_v6  ;;  %v4193_v37 = vpack.c.b16 %v1765_v28, %v1764_v27  ;;  %v1174_v6 = vld [vmem:[#allocation2 + $0xb2] sm:$0xff]  ;;  %v1990_v30 = vunpack.c.l.b16 %v1205_v13 }
 0x162   : > { %v2363_v61 = vpop.permute.xlu1 %2362  ;;  %v2500_v62 = vsel %vm2474_vm5, %v2467_v40, %v1827_v42  ;;  %v2212_v40 = vunpack.c.l.b16 %v1332_v34  ;;  %v1206_v14 = vpack.c.bf16 %v1174_v6, %v1174_v6  ;;  %v1238_v34 = vld [vmem:[#allocation2 + $0xc0] sm:$0xff] }
 0x163   : > { %v2641_v0 = vsel %vm2639_vm10, %v2608_v60, %v2363_v61  ;;  %v762_v23 = vadd.f32 %v4177_v17, %v726_v33 }
 0x164   : > { %3431 = vmatmul.msk.bf16.vlgmr.msra.gmra.mxu1 %vm2708_vm11, %v2641_v0  ;;  %v4210_v57 = vpack.c.b16 %v2213_v43, %v2212_v40  ;;  %v2101_v0 = vunpack.c.l.b16 %v1269_v59  ;;  %v1991_v31 = vunpack.c.l.b16 %v1206_v14  ;;  %v1270_v40 = vpack.c.bf16 %v1238_v34, %v1238_v34  ;;  %v1303_v59 = vld [vmem:[#allocation2 + $0xc9] sm:$0xff] }
 0x165   : > { %v794_v22 = vmax.f32 %v762_v23, 0.0  ;;  %v868_v23 = vld [vmem:[#allocation2 + $0x140] sm:$0xff]  ;;  %v1271_v43 = vpack.c.bf16 %v1239_v35, %v1239_v35  ;;  %v1335_v6 = vpack.c.bf16 %v1303_v59, %v1303_v59 }
 0x166   : > { %v1241_v59 = vld [vmem:[#allocation2 + $0xe0] sm:$0xff] }
 0x167   : > { %2258 = vrot.lane.b32.xlu2 %v2238_v19, %s3642_s25  ;;  %2370 = vrot.lane.b32.xlu0 %v4166_v7, %s3643_s20  ;;  %827 = vst.msk [vmem:[#allocation2 + $0xf1] sm:$0xff] %vm464_vm1, %v794_v22  ;;  %v900_v22 = vpack.c.bf16 %v868_v23, %v868_v23  ;;  %v2215_v15 = vunpack.c.l.b16 %v1335_v6 }
 0x168   : > { %1588 = vrot.lane.b32.xlu1 %v4117_v58, %s3636_s28  ;;  %v671_v58 = vpop.f32.mrf.mxu0 }
 0x169   : > { %v4185_v25 = vpop.permute.xlu2 %1716  ;;  %v4189_v16 = vpop.permute.xlu0 %2272  ;;  %v727_v36 = vmul.f32 %v4171_v9, %v671_v58 }
 0x16a   : > { %v4187_v26 = vpop.permute.xlu1 %1804 }
 0x16b   : > { %v763_v38 = vadd.f32 %v4177_v17, %v727_v36 }
 0x16d   : > { %v795_v44 = vmax.f32 %v763_v38, 0.0  ;;  %v1477_v38 = vunpack.c.l.b16 %v900_v22 }
 0x16f   : > { %1812 = vrot.lane.b32.xlu2 %v4193_v37, %s3639_s23  ;;  %1924 = vrot.lane.b32.xlu0 %v2238_v19, %s3640_s19  ;;  %828 = vst.msk [vmem:[#allocation2 + $0xf9] sm:$0xff] %vm464_vm1, %v795_v44 }
 0x170   : > { %2146 = vrot.lane.b32.xlu1 %v4193_v37, %s3641_s24  ;;  %v674_v56 = vpop.f32.mrf.mxu0 }
 0x171   : > { %v4201_v48 = vpop.permute.xlu2 %2252  ;;  %v1939_v51 = vpop.permute.xlu0 %1938  ;;  %v728_v41 = vmul.f32 %v4171_v9, %v674_v56  ;;  %v2103_v56 = vunpack.c.l.b16 %v1271_v43 }
 0x172   : > { %v1583_v50 = vpop.permute.xlu1 %1582  ;;  %v2533_v55 = vsel %vm2507_vm6, %v2500_v62, %v1939_v51  ;;  %v2100_v62 = vunpack.c.l.b16 %v1268_v10  ;;  %v1366_v51 = vld [vmem:[#allocation2 + $0xc2] sm:$0xff] }
 0x173   : > { %v2402_v1 = vsel %vm464_vm1, %v1484_v39, %v1583_v50  ;;  %v764_v60 = vadd.f32 %v4177_v17, %v728_v41  ;;  %v2016_v39 = vpack.c.b16 %v1991_v31, %v1990_v30  ;;  %v1367_v41 = vld [vmem:[#allocation2 + $0xca] sm:$0xff]  ;;  %v1302_v10 = vld [vmem:[#allocation2 + $0xc1] sm:$0xff] }
 0x174   : > { %v4208_v20 = vsel %vm566_vm0, %v2402_v1, %v4126_v11  ;;  %v2127_v33 = vpack.c.b16 %v2101_v0, %v2100_v62  ;;  %v1398_v62 = vpack.c.bf16 %v1366_v51, %v1366_v51  ;;  %v1399_v0 = vpack.c.bf16 %v1367_v41, %v1367_v41  ;;  %v1369_v31 = vld [vmem:[#allocation2 + $0xe2] sm:$0xff] }
 0x175   : > { %v796_v42 = vmax.f32 %v764_v60, 0.0  ;;  %v2478_v60 = vsel %vm2474_vm5, %v4084_v5, %v4187_v26  ;;  %v1334_v4 = vpack.c.bf16 %v1302_v10, %v1302_v10 }
 0x176   : > { %v2327_v13 = vunpack.c.l.b16 %v1399_v0  ;;  %v989_v41 = vld [vmem:[#allocation2 + $0xf2] sm:$0xff]  ;;  %v990_v10 = vld [vmem:[#allocation2 + $0xfa] sm:$0xff] }
 0x177   : > { %1590 = vrot.lane.b32.xlu2 %v2238_v19, %s3636_s28  ;;  %2260 = vrot.lane.b32.xlu0 %v4210_v57, %s3642_s25  ;;  %829 = vst.msk [vmem:[#allocation2 + $0x109] sm:$0xff] %vm464_vm1, %v796_v42  ;;  %v2214_v14 = vunpack.c.l.b16 %v1334_v4 }
 0x178   : > { %2036 = vrot.lane.b32.xlu1 %v4166_v7, %s3638_s17  ;;  %v676_v19 = vpop.f32.mrf.mxu0 }
 0x179   : > { %v4219_v11 = vpop.permute.xlu2 %2030  ;;  %v4223_v3 = vpop.permute.xlu0 %2364  ;;  %v729_v8 = vmul.f32 %v4171_v9, %v676_v19  ;;  %v2511_v19 = vsel %vm2507_vm6, %v2478_v60, %v4110_v45  ;;  %v2240_v22 = vpack.c.b16 %v2215_v15, %v2214_v14 }
 0x17a   : > { %v4221_v61 = vpop.permute.xlu1 %2160  ;;  %v699_v60 = vpop.f32.mrf.mxu3 }
 0x17b   : > { %v765_v18 = vadd.f32 %v4177_v17, %v729_v8  ;;  %v738_v4 = vmul.f32 %v4171_v9, %v699_v60  ;;  %v848_v60 = vld [vmem:[#allocation2 + $0x50] sm:$0xff] }
 0x17d   : > { %v797_v27 = vmax.f32 %v765_v18, 0.0 }
 0x17f   : > { %2148 = vrot.lane.b32.xlu2 %v2127_v33, %s3641_s24  ;;  %1814 = vrot.lane.b32.xlu0 %v2127_v33, %s3639_s23  ;;  %830 = vst.msk [vmem:[#allocation2 + $0x111] sm:$0xff] %vm464_vm1, %v797_v27  ;;  %v2326_v33 = vunpack.c.l.b16 %v1398_v62 }
 0x180   : > { %1702 = vrot.lane.b32.xlu1 %v4166_v7, %s3637_s15  ;;  %v1476_v7 = vunpack.c.l.b16 %v899_v21 }
 0x181   : > { %v2163_v28 = vpop.permute.xlu2 %2162  ;;  %v4233_v32 = vpop.permute.xlu0 %1806  ;;  %v2352_v21 = vpack.c.b16 %v2327_v13, %v2326_v33  ;;  %v1273_v33 = vpack.c.bf16 %v1241_v59, %v1241_v59 }
 0x182   : > { %v2051_v29 = vpop.permute.xlu1 %2050  ;;  %v1495_v44 = vpack.c.b16 %v1477_v38, %v1476_v7  ;;  %v1401_v7 = vpack.c.bf16 %v1369_v31, %v1369_v31 }
 0x183   : > { %v2566_v58 = vsel %vm2540_vm7, %v2533_v55, %v2051_v29  ;;  %v2102_v55 = vunpack.c.l.b16 %v1270_v40  ;;  %v1304_v29 = vld [vmem:[#allocation2 + $0xd9] sm:$0xff] }
 0x184   : > { %v4237_v36 = vsel %vm2573_vm8, %v2566_v58, %v2163_v28  ;;  %v1336_v58 = vpack.c.bf16 %v1304_v29, %v1304_v29 }
 0x185   : > { %v2128_v8 = vpack.c.b16 %v2103_v56, %v2102_v55  ;;  %v2329_v56 = vunpack.c.l.b16 %v1401_v7 }
 0x186   : > { %v2216_v40 = vunpack.c.l.b16 %v1336_v58  ;;  %v1054_v51 = vld [vmem:[#allocation2 + $0x110] sm:$0xff] }
 0x187   : > { %2038 = vrot.lane.b32.xlu2 %v2016_v39, %s3638_s17  ;;  %1592 = vrot.lane.b32.xlu0 %v4210_v57, %s3636_s28  ;;  %v1086_v0 = vpack.c.bf16 %v1054_v51, %v1054_v51  ;;  %v1181_v15 = vld [vmem:[#allocation2 + $0x10a] sm:$0xff] }
 0x188   : > { %2372 = vrot.lane.b32.xlu1 %v2016_v39, %s3643_s20 }
 0x189   : > { %v4243_v50 = vpop.permute.xlu2 %2052  ;;  %v4246_v54 = vpop.permute.xlu0 %1584  ;;  %v1775_v14 = vunpack.c.l.b16 %v1086_v0 }
 0x18a   : > { %v1605_v1 = vpop.permute.xlu1 %1604 }
 0x18b   : > { %v2435_v53 = vsel %vm464_vm1, %v1495_v44, %v1605_v1  ;;  %v1240_v44 = vld [vmem:[#allocation2 + $0xd8] sm:$0xff]  ;;  %v1053_v1 = vld [vmem:[#allocation2 + $0x108] sm:$0xff] }
 0x18c   : > { %v2469_v42 = vsel %vm566_vm0, %v2435_v53, %v4185_v25  ;;  %v2544_v25 = vsel %vm2540_vm7, %v2511_v19, %v4161_v2  ;;  %v1085_v62 = vpack.c.bf16 %v1053_v1, %v1053_v1  ;;  %v1021_v19 = vpack.c.bf16 %v989_v41, %v989_v41 }
 0x18e   : > { %v1774_v13 = vunpack.c.l.b16 %v1085_v62 }
 0x18f   : > { %1704 = vrot.lane.b32.xlu2 %v2016_v39, %s3637_s15  ;;  %2150 = vrot.lane.b32.xlu0 %v2128_v8, %s3641_s24 }
 0x190   : > { %1926 = vrot.lane.b32.xlu1 %v4210_v57, %s3640_s19 }
 0x191   : > { %v4259_v5 = vpop.permute.xlu2 %2366  ;;  %v4264_v23 = vpop.permute.xlu0 %2386 }
 0x192   : > { %v2141_v26 = vpop.permute.xlu1 %2140 }
 0x193   : > { %v2577_v45 = vsel %vm2573_vm8, %v2544_v25, %v2141_v26  ;;  %v774_v25 = vadd.f32 %v4177_v17, %v738_v4 }
 0x194   : > { %v2610_v18 = vsel %vm2606_vm9, %v2577_v45, %v4201_v48  ;;  %v1305_v48 = vld [vmem:[#allocation2 + $0xe1] sm:$0xff]  ;;  %v1182_v45 = vld [vmem:[#allocation2 + $0x112] sm:$0xff] }
 0x195   : > { %v2643_v57 = vsel %vm2639_vm10, %v2610_v18, %v4223_v3  ;;  %v1368_v3 = vld [vmem:[#allocation2 + $0xda] sm:$0xff]  ;;  %v1337_v34 = vpack.c.bf16 %v1305_v48, %v1305_v48  ;;  %v806_v18 = vmax.f32 %v774_v25, 0.0  ;;  %v1214_v7 = vpack.c.bf16 %v1182_v45, %v1182_v45 }
 0x196   : > { %3432 = vmatmul.msk.bf16.gmra.mxu1 %vm2708_vm11, %v2643_v57  ;;  %v1400_v35 = vpack.c.bf16 %v1368_v3, %v1368_v3  ;;  %v2105_v3 = vunpack.c.l.b16 %v1273_v33  ;;  %v1118_v33 = vld [vmem:[#allocation2 + $0x111] sm:$0xff]  ;;  %v2480_v45 = vsel %vm2474_vm5, %v4208_v20, %v4233_v32 }
 0x197   : > { %2374 = vrot.lane.b32.xlu2 %v2352_v21, %s3643_s20  ;;  %2040 = vrot.lane.b32.xlu0 %v2352_v21, %s3638_s17  ;;  %v2217_v43 = vunpack.c.l.b16 %v1337_v34  ;;  %v926_v34 = vld [vmem:[#allocation2 + $0xf9] sm:$0xff]  ;;  %839 = vst.msk [vmem:[#allocation2 + $0x181] sm:$0xff] %vm464_vm1, %v806_v18  ;;  %v1999_v59 = vunpack.c.l.b16 %v1214_v7 }
 0x198   : > { %2262 = vrot.lane.b32.xlu1 %v2240_v22, %s3642_s25  ;;  %v2328_v55 = vunpack.c.l.b16 %v1400_v35  ;;  %v1213_v35 = vpack.c.bf16 %v1181_v15, %v1181_v15  ;;  %v1381_v7 = vld [vmem:[#allocation2 + $0x172] sm:$0xff] }
 0x199   : > { %v4274_v2 = vpop.permute.xlu2 %1808  ;;  %v1829_v28 = vpop.permute.xlu0 %1828  ;;  %v4291_v6 = vpack.c.b16 %v2217_v43, %v2216_v40 }
 0x19a   : > { %v4276_v27 = vpop.permute.xlu1 %1918  ;;  %v4279_v30 = vsel %vm2474_vm5, %v2469_v42, %v1829_v28  ;;  %v1272_v42 = vpack.c.bf16 %v1240_v44, %v1240_v44  ;;  %v4293_v26 = vpack.c.b16 %v2329_v56, %v2328_v55  ;;  %v1662_v28 = vunpack.c.l.b16 %v1021_v19  ;;  %v701_v40 = vpop.f32.mrf.mxu3 }
 0x19b   : > { %v4312_v44 = vpack.c.b16 %v1775_v14, %v1774_v13  ;;  %v739_v1 = vmul.f32 %v4171_v9, %v701_v40  ;;  %v958_v56 = vpack.c.bf16 %v926_v34, %v926_v34  ;;  %v880_v13 = vpack.c.bf16 %v848_v60, %v848_v60 }
 0x19c   : > { %v2104_v48 = vunpack.c.l.b16 %v1272_v42 }
 0x19d   : > { %v775_v41 = vadd.f32 %v4177_v17, %v739_v1  ;;  %v1551_v4 = vunpack.c.l.b16 %v958_v56 }
 0x19f   : > { %1928 = vrot.lane.b32.xlu2 %v2240_v22, %s3640_s19  ;;  %1706 = vrot.lane.b32.xlu0 %v2352_v21, %s3637_s15  ;;  %v807_v9 = vmax.f32 %v775_v41, 0.0  ;;  %v1413_v41 = vpack.c.bf16 %v1381_v7, %v1381_v7 }
 0x1a0   : > { %1816 = vrot.lane.b32.xlu1 %v2128_v8, %s3639_s23  ;;  %v1022_v8 = vpack.c.bf16 %v990_v10, %v990_v10  ;;  %v1998_v10 = vunpack.c.l.b16 %v1213_v35 }
 0x1a1   : > { %v4284_v38 = vpop.permute.xlu2 %1586  ;;  %v4288_v53 = vpop.permute.xlu0 %2142  ;;  %840 = vst.msk [vmem:[#allocation2 + $0x189] sm:$0xff] %vm464_vm1, %v807_v9 }
 0x1a2   : > { %v4286_v39 = vpop.permute.xlu1 %1696  ;;  %v1663_v29 = vunpack.c.l.b16 %v1022_v8  ;;  %v1117_v8 = vld [vmem:[#allocation2 + $0x109] sm:$0xff]  ;;  %v4328_v14 = vpack.c.b16 %v1999_v59, %v1998_v10 }
 0x1a4   : > { %v4315_v51 = vpack.c.b16 %v1663_v29, %v1662_v28  ;;  %v1150_v28 = vpack.c.bf16 %v1118_v33, %v1118_v33 }
 0x1a7   : > { %2264 = vrot.lane.b32.xlu2 %v4291_v6, %s3642_s25  ;;  %2376 = vrot.lane.b32.xlu0 %v4293_v26, %s3643_s20 }
 0x1a8   : > { %1594 = vrot.lane.b32.xlu1 %v2240_v22, %s3636_s28  ;;  %v925_v22 = vld [vmem:[#allocation2 + $0xf1] sm:$0xff] }
 0x1a9   : > { %v4301_v57 = vpop.permute.xlu2 %2276  ;;  %v4305_v58 = vpop.permute.xlu0 %1920  ;;  %v957_v55 = vpack.c.bf16 %v925_v22, %v925_v22  ;;  %v1380_v22 = vld [vmem:[#allocation2 + $0x16a] sm:$0xff] }
 0x1aa   : > { %v2275_v21 = vpop.permute.xlu1 %2274 }
 0x1ab   : > { %v2632_v31 = vsel %vm2606_vm9, %v4237_v36, %v2275_v21  ;;  %v2129_v36 = vpack.c.b16 %v2105_v3, %v2104_v48  ;;  %v1550_v0 = vunpack.c.l.b16 %v957_v55  ;;  %v1149_v21 = vpack.c.bf16 %v1117_v8, %v1117_v8 }
 0x1ac   : > { %v4310_v43 = vsel %vm2639_vm10, %v2632_v31, %v4264_v23  ;;  %v847_v23 = vld [vmem:[#allocation2 + $0x48] sm:$0xff]  ;;  %v1457_v48 = vunpack.c.l.b16 %v880_v13  ;;  %v1887_v31 = vunpack.c.l.b16 %v1150_v28  ;;  %v1412_v55 = vpack.c.bf16 %v1380_v22, %v1380_v22 }
 0x1ad   : > { %v879_v25 = vpack.c.bf16 %v847_v23, %v847_v23  ;;  %v4337_v18 = vpack.c.b16 %v1551_v4, %v1550_v0  ;;  %v1886_v3 = vunpack.c.l.b16 %v1149_v21  ;;  %v997_v4 = vld [vmem:[#allocation2 + $0x152] sm:$0xff] }
 0x1ae   : > { %v2340_v60 = vunpack.c.l.b16 %v1412_v55  ;;  %v1029_v13 = vpack.c.bf16 %v997_v4, %v997_v4 }
 0x1af   : > { %1710 = vrot.lane.b32.xlu2 %v4315_v51, %s3637_s15  ;;  %1822 = vrot.lane.b32.xlu0 %v4312_v44, %s3639_s23  ;;  %v1456_v29 = vunpack.c.l.b16 %v879_v25  ;;  %v4358_v56 = vpack.c.b16 %v1887_v31, %v1886_v3  ;;  %v849_v3 = vld [vmem:[#allocation2 + $0x60] sm:$0xff]  ;;  %v850_v31 = vld [vmem:[#allocation2 + $0x68] sm:$0xff] }
 0x1b0   : > { %2152 = vrot.lane.b32.xlu1 %v2129_v36, %s3641_s24 }
 0x1b1   : > { %v2145_v42 = vpop.permute.xlu2 %2144  ;;  %v4325_v19 = vpop.permute.xlu0 %1698  ;;  %v1485_v40 = vpack.c.b16 %v1457_v48, %v1456_v29  ;;  %v1670_v48 = vunpack.c.l.b16 %v1029_v13 }
 0x1b2   : > { %v1941_v62 = vpop.permute.xlu1 %1940 }
 0x1b3   : > { %v2535_v17 = vsel %vm2507_vm6, %v4279_v30, %v1941_v62  ;;  %v2513_v30 = vsel %vm2507_vm6, %v2480_v45, %v4276_v27  ;;  %v1242_v62 = vld [vmem:[#allocation2 + $0xf0] sm:$0xff] }
 0x1b4   : > { %v2568_v15 = vsel %vm2540_vm7, %v2535_v17, %v4243_v50  ;;  %v2546_v50 = vsel %vm2540_vm7, %v2513_v30, %v4219_v11  ;;  %v998_v17 = vld [vmem:[#allocation2 + $0x15a] sm:$0xff]  ;;  %v1274_v33 = vpack.c.bf16 %v1242_v62, %v1242_v62 }
 0x1b5   : > { %v2579_v20 = vsel %vm2573_vm8, %v2546_v50, %v4288_v53  ;;  %v2405_v53 = vsel %vm464_vm1, %v1485_v40, %v4246_v54  ;;  %v881_v40 = vpack.c.bf16 %v849_v3, %v849_v3 }
 0x1b6   : > { %v2449_v59 = vsel %vm566_vm0, %v2405_v53, %v4286_v39  ;;  %v2106_v21 = vunpack.c.l.b16 %v1274_v33 }
 0x1b7   : > { %2046 = vrot.lane.b32.xlu2 %v4328_v14, %s3638_s17  ;;  %1930 = vrot.lane.b32.xlu0 %v4291_v6, %s3640_s19  ;;  %v2482_v54 = vsel %vm2474_vm5, %v2449_v59, %v4274_v2  ;;  %v1125_v59 = vld [vmem:[#allocation2 + $0x169] sm:$0xff]  ;;  %v1458_v62 = vunpack.c.l.b16 %v881_v40 }
 0x1b8   : > { %1598 = vrot.lane.b32.xlu1 %v4337_v18, %s3636_s28  ;;  %v2515_v9 = vsel %vm2507_vm6, %v2482_v54, %v4305_v58  ;;  %v1318_v54 = vld [vmem:[#allocation2 + $0x181] sm:$0xff] }
 0x1b9   : > { %v4349_v32 = vpop.permute.xlu2 %1922  ;;  %v2165_v35 = vpop.permute.xlu0 %2164  ;;  %v1350_v4 = vpack.c.bf16 %v1318_v54, %v1318_v54 }
 0x1ba   : > { %v2255_v27 = vpop.permute.xlu1 %2254  ;;  %v2601_v1 = vsel %vm2573_vm8, %v2568_v15, %v2165_v35  ;;  %v1030_v15 = vpack.c.bf16 %v998_v17, %v998_v17 }
 0x1bb   : > { %v2612_v34 = vsel %vm2606_vm9, %v2579_v20, %v2255_v27  ;;  %v4362_v10 = vsel %vm2606_vm9, %v2601_v1, %v4301_v57  ;;  %v2341_v57 = vunpack.c.l.b16 %v1413_v41  ;;  %v933_v20 = vld [vmem:[#allocation2 + $0x151] sm:$0xff]  ;;  %v934_v27 = vld [vmem:[#allocation2 + $0x159] sm:$0xff]  ;;  %v882_v1 = vpack.c.bf16 %v850_v31, %v850_v31 }
 0x1bc   : > { %v2645_v11 = vsel %vm2639_vm10, %v2612_v34, %v4259_v5  ;;  %v1671_v50 = vunpack.c.l.b16 %v1030_v15  ;;  %v965_v34 = vpack.c.bf16 %v933_v20, %v933_v20  ;;  %v966_v35 = vpack.c.bf16 %v934_v27, %v934_v27 }
 0x1bd   : > { %3433 = vmatmul.msk.bf16.gmra.mxu1 %vm2708_vm11, %v2645_v11  ;;  %v4378_v8 = vpack.c.b16 %v2341_v57, %v2340_v60  ;;  %v1126_v57 = vld [vmem:[#allocation2 + $0x171] sm:$0xff] }
 0x1be   : > { %v1688_v7 = vpack.c.b16 %v1671_v50, %v1670_v48  ;;  %v1558_v53 = vunpack.c.l.b16 %v965_v34  ;;  %v1559_v41 = vunpack.c.l.b16 %v966_v35  ;;  %v1254_v34 = vld [vmem:[#allocation2 + $0x180] sm:$0xff]  ;;  %v1255_v35 = vld [vmem:[#allocation2 + $0x188] sm:$0xff] }
 0x1bf   : > { %1818 = vrot.lane.b32.xlu2 %v2129_v36, %s3639_s23  ;;  %1712 = vrot.lane.b32.xlu0 %v4328_v14, %s3637_s15  ;;  %v1243_v36 = vld [vmem:[#allocation2 + $0xf8] sm:$0xff]  ;;  %v1286_v54 = vpack.c.bf16 %v1254_v34, %v1254_v34 }
 0x1c0   : > { %1934 = vrot.lane.b32.xlu1 %v4358_v56, %s3640_s19  ;;  %v1275_v25 = vpack.c.bf16 %v1243_v36, %v1243_v36  ;;  %v1459_v36 = vunpack.c.l.b16 %v882_v1  ;;  %v1576_v33 = vpack.c.b16 %v1559_v41, %v1558_v53  ;;  %v851_v1 = vld [vmem:[#allocation2 + $0x78] sm:$0xff]  ;;  %v852_v53 = vld [vmem:[#allocation2 + $0x80] sm:$0xff] }
 0x1c1   : > { %v4373_v5 = vpop.permute.xlu2 %2258  ;;  %v2257_v39 = vpop.permute.xlu0 %2256 }
 0x1c2   : > { %v2033_v23 = vpop.permute.xlu1 %2032  ;;  %v2107_v28 = vunpack.c.l.b16 %v1275_v25  ;;  %v1158_v25 = vpack.c.bf16 %v1126_v57, %v1126_v57  ;;  %v1486_v15 = vpack.c.b16 %v1459_v36, %v1458_v62  ;;  %v883_v57 = vpack.c.bf16 %v851_v1, %v851_v1 }
 0x1c3   : > { %v2548_v0 = vsel %vm2540_vm7, %v2515_v9, %v2033_v23  ;;  %v1319_v23 = vld [vmem:[#allocation2 + $0x189] sm:$0xff] }
 0x1c4   : > { %v2581_v2 = vsel %vm2573_vm8, %v2548_v0, %v2145_v42  ;;  %v4394_v22 = vpack.c.b16 %v2107_v28, %v2106_v21  ;;  %v1061_v9 = vld [vmem:[#allocation2 + $0x168] sm:$0xff]  ;;  %v1157_v0 = vpack.c.bf16 %v1125_v59, %v1125_v59  ;;  %v1351_v17 = vpack.c.bf16 %v1319_v23, %v1319_v23  ;;  %v4424_v59 = vld [vmem:[%s4836_s5] ss:$0 sm:$0xff] }
 0x1c5   : > { %v2614_v58 = vsel %vm2606_vm9, %v2581_v2, %v2257_v39  ;;  %v1062_v39 = vld [vmem:[#allocation2 + $0x170] sm:$0xff]  ;;  %v1093_v2 = vpack.c.bf16 %v1061_v9, %v1061_v9  ;;  %v2408_v28 = vsel %vm464_vm1, %v1486_v15, %v4284_v38  ;;  %v1895_v50 = vunpack.c.l.b16 %v1158_v25 }
 0x1c6   : > { %v1094_v13 = vpack.c.bf16 %v1062_v39, %v1062_v39  ;;  %v2231_v21 = vunpack.c.l.b16 %v1351_v17  ;;  %v2451_v3 = vsel %vm566_vm0, %v2408_v28, %v4325_v19  ;;  %v1287_v23 = vpack.c.bf16 %v1255_v35, %v1255_v35 }
 0x1c7   : > { %1600 = vrot.lane.b32.xlu2 %v4358_v56, %s3636_s28  ;;  %2266 = vrot.lane.b32.xlu0 %v4337_v18, %s3642_s25  ;;  %v1782_v20 = vunpack.c.l.b16 %v1093_v2  ;;  %v884_v9 = vpack.c.bf16 %v852_v53, %v852_v53  ;;  %v1382_v2 = vld [vmem:[#allocation2 + $0x182] sm:$0xff] }
 0x1c8   : > { %2388 = vrot.lane.b32.xlu1 %v4378_v8, %s3643_s20  ;;  %v1783_v27 = vunpack.c.l.b16 %v1094_v13  ;;  %v2119_v17 = vunpack.c.l.b16 %v1287_v23  ;;  %v1383_v13 = vld [vmem:[#allocation2 + $0x18a] sm:$0xff] }
 0x1c9   : > { %v4388_v45 = vpop.permute.xlu2 %1812  ;;  %v4390_v29 = vpop.permute.xlu0 %2034 }
 0x1ca   : > { %v2369_v30 = vpop.permute.xlu1 %2368  ;;  %v4419_v38 = vpack.c.b16 %v1783_v27, %v1782_v20  ;;  %v1414_v20 = vpack.c.bf16 %v1382_v2, %v1382_v2  ;;  %v1415_v27 = vpack.c.bf16 %v1383_v13, %v1383_v13 }
 0x1cb   : > { %v2647_v42 = vsel %vm2639_vm10, %v2614_v58, %v2369_v30  ;;  %v1894_v58 = vunpack.c.l.b16 %v1157_v0  ;;  %v2230_v30 = vunpack.c.l.b16 %v1350_v4  ;;  %v2118_v4 = vunpack.c.l.b16 %v1286_v54 }
 0x1cc   : > { %v2343_v1 = vunpack.c.l.b16 %v1415_v27 }
 0x1cd   : > { %3434 = vmatmul.msk.bf16.gmra.mxu1 %vm2708_vm11, %v2647_v42  ;;  %v4417_v40 = vpack.c.b16 %v2231_v21, %v2230_v30  ;;  %v1912_v41 = vpack.c.b16 %v1895_v50, %v1894_v58  ;;  %v1460_v30 = vunpack.c.l.b16 %v883_v57  ;;  %v1461_v21 = vunpack.c.l.b16 %v884_v9 }
 0x1cf   : > { %2154 = vrot.lane.b32.xlu2 %v4394_v22, %s3641_s24  ;;  %1718 = vrot.lane.b32.xlu0 %v1688_v7, %s3637_s15 }
 0x1d0   : > { %2042 = vrot.lane.b32.xlu1 %v4293_v26, %s3638_s17 }
 0x1d1   : > { %v4401_v11 = vpop.permute.xlu2 %1590  ;;  %v4403_v60 = vpop.permute.xlu0 %1700 }
 0x1d2   : > { %v1811_v55 = vpop.permute.xlu1 %1810 }
 0x1d3   : > { %v2484_v7 = vsel %vm2474_vm5, %v2451_v3, %v1811_v55  ;;  %v4434_v55 = vld [vmem:[%s4837_s6] ss:$0 sm:$0xff]  ;;  %v1487_v3 = vpack.c.b16 %v1461_v21, %v1460_v30 }
 0x1d4   : > { %v2517_v19 = vsel %vm2507_vm6, %v2484_v7, %v4349_v32  ;;  %v2342_v7 = vunpack.c.l.b16 %v1414_v20 }
 0x1d5   : > { %v2550_v0 = vsel %vm2540_vm7, %v2517_v19, %v4390_v29  ;;  %v2136_v29 = vpack.c.b16 %v2119_v17, %v2118_v4  ;;  %v1320_v4 = vld [vmem:[#allocation2 + $0x199] sm:$0xff]  ;;  %v1321_v17 = vld [vmem:[#allocation2 + $0x1a1] sm:$0xff] }
 0x1d6   : > { %v4460_v19 = vpack.c.b16 %v2343_v1, %v2342_v7  ;;  %v855_v1 = vld [vmem:[#allocation2 + $0xa8] sm:$0xff] }
 0x1d7   : > { %1606 = vrot.lane.b32.xlu2 %v1576_v33, %s3636_s28  ;;  %2054 = vrot.lane.b32.xlu0 %v4378_v8, %s3638_s17 }
 0x1d8   : > { %2378 = vrot.lane.b32.xlu1 %v4315_v51, %s3643_s20 }
 0x1d9   : > { %v4412_v42 = vpop.permute.xlu2 %2148  ;;  %v2371_v31 = vpop.permute.xlu0 %2370 }
 0x1da   : > { %v1589_v48 = vpop.permute.xlu1 %1588 }
 0x1db   : > { %v2411_v54 = vsel %vm464_vm1, %v1487_v3, %v1589_v48  ;;  %v1384_v3 = vld [vmem:[#allocation2 + $0x19a] sm:$0xff] }
 0x1dc   : > { %v2453_v57 = vsel %vm566_vm0, %v2411_v54, %v4403_v60 }
 0x1dd   : > { %v2486_v48 = vsel %vm2474_vm5, %v2453_v57, %v4388_v45 }
 0x1df   : > { %1942 = vrot.lane.b32.xlu2 %v1912_v41, %s3640_s19  ;;  %2278 = vrot.lane.b32.xlu0 %v4417_v40, %s3642_s25 }
 0x1e0   : > { %1830 = vrot.lane.b32.xlu1 %v4419_v38, %s3639_s23 }
 0x1e1   : > { %v2754_v39 = vpop.f32.mrf.mxu1  ;;  %v4439_v36 = vpop.permute.xlu2 %2038 }
 0x1e2   : > { %v2838_v62 = vmul.f32 %v4424_v59, %v2754_v39  ;;  %v2147_v32 = vpop.permute.xlu1 %2146  ;;  %v1925_v25 = vpop.permute.xlu0 %1924 }
 0x1e3   : > { %v2583_v33 = vsel %vm2573_vm8, %v2550_v0, %v2147_v32 }
 0x1e4   : > { %v2874_v15 = vadd.f32 %v4434_v55, %v2838_v62  ;;  %v2616_v58 = vsel %vm2606_vm9, %v2583_v33, %v4373_v5  ;;  %v2519_v62 = vsel %vm2507_vm6, %v2486_v48, %v1925_v25  ;;  %v887_v48 = vpack.c.bf16 %v855_v1, %v855_v1 }
 0x1e5   : > { %v2649_v28 = vsel %vm2639_vm10, %v2616_v58, %v2371_v31 }
 0x1e6   : > { %v2906_v50 = vmax.f32 %v2874_v15, 0.0  ;;  %3435 = vmatmul.msk.bf16.gmra.mxu1 %vm2708_vm11, %v2649_v28 }
 0x1e7   : > { %1596 = vrot.lane.b32.xlu2 %v4291_v6, %s3636_s28  ;;  %1820 = vrot.lane.b32.xlu0 %v4394_v22, %s3639_s23 }
 0x1e8   : > { %2938 = vst.msk [vmem:[#allocation3] sm:$0xff] %vm464_vm1, %v2906_v50  ;;  %2166 = vrot.lane.b32.xlu1 %v2136_v29, %s3641_s24  ;;  %v1256_v50 = vld [vmem:[#allocation2 + $0x198] sm:$0xff] }
 0x1e9   : > { %v2756_v5 = vpop.f32.mrf.mxu1  ;;  %v4456_v34 = vpop.permute.xlu2 %1704  ;;  %v1288_v20 = vpack.c.bf16 %v1256_v50, %v1256_v50 }
 0x1ea   : > { %v2839_v31 = vmul.f32 %v4424_v59, %v2756_v5  ;;  %v2037_v35 = vpop.permute.xlu1 %2036  ;;  %v2261_v53 = vpop.permute.xlu0 %2260 }
 0x1eb   : > { %v2552_v60 = vsel %vm2540_vm7, %v2519_v62, %v2037_v35 }
 0x1ec   : > { %v2875_v23 = vadd.f32 %v4434_v55, %v2839_v31  ;;  %v2585_v0 = vsel %vm2573_vm8, %v2552_v60, %v4412_v42  ;;  %v1352_v42 = vpack.c.bf16 %v1320_v4, %v1320_v4  ;;  %v1385_v31 = vld [vmem:[#allocation2 + $0x1a2] sm:$0xff]  ;;  %v1464_v60 = vunpack.c.l.b16 %v887_v48 }
 0x1ee   : > { %v2907_v6 = vmax.f32 %v2875_v23, 0.0  ;;  %v2232_v13 = vunpack.c.l.b16 %v1352_v42 }
 0x1ef   : > { %2390 = vrot.lane.b32.xlu2 %v4460_v19, %s3643_s20  ;;  %1608 = vrot.lane.b32.xlu0 %v1912_v41, %s3636_s28 }
 0x1f0   : > { %2939 = vst.msk [vmem:[#allocation3 + $0x8] sm:$0xff] %vm464_vm1, %v2907_v6  ;;  %1708 = vrot.lane.b32.xlu1 %v4293_v26, %s3637_s15  ;;  %v2618_v26 = vsel %vm2606_vm9, %v2585_v0, %v2261_v53  ;;  %v856_v53 = vld [vmem:[#allocation2 + $0xb0] sm:$0xff]  ;;  %v1417_v6 = vpack.c.bf16 %v1385_v31, %v1385_v31 }
 0x1f1   : > { %v2375_v9 = vpop.permute.xlu2 %2374 }
 0x1f2   : > { %v1703_v39 = vpop.permute.xlu1 %1702  ;;  %v1815_v32 = vpop.permute.xlu0 %1814 }
 0x1f7   : > { %2044 = vrot.lane.b32.xlu2 %v4315_v51, %s3638_s17  ;;  %2156 = vrot.lane.b32.xlu0 %v4312_v44, %s3641_s24  ;;  %v1353_v51 = vpack.c.bf16 %v1321_v17, %v1321_v17 }
 0x1f8   : > { %1932 = vrot.lane.b32.xlu1 %v4337_v18, %s3640_s19  ;;  %v2414_v18 = vsel %vm464_vm1, %v4193_v37, %v4401_v11  ;;  %v1257_v37 = vld [vmem:[#allocation2 + $0x1a0] sm:$0xff] }
 0x1f9   : > { %v4483_v45 = vpop.permute.xlu2 %1928  ;;  %v2455_v2 = vsel %vm566_vm0, %v2414_v18, %v1703_v39  ;;  %v2233_v15 = vunpack.c.l.b16 %v1353_v51  ;;  %v888_v39 = vpack.c.bf16 %v856_v53, %v856_v53 }
 0x1fa   : > { %v2373_v41 = vpop.permute.xlu1 %2372  ;;  %v1593_v33 = vpop.permute.xlu0 %1592  ;;  %v2488_v30 = vsel %vm2474_vm5, %v2455_v2, %v1815_v32  ;;  %v2345_v32 = vunpack.c.l.b16 %v1417_v6 }
 0x1fb   : > { %v2651_v25 = vsel %vm2639_vm10, %v2618_v26, %v2373_v41  ;;  %v2249_v27 = vpack.c.b16 %v2233_v15, %v2232_v13  ;;  %v1465_v0 = vunpack.c.l.b16 %v888_v39 }
 0x1fc   : > { %3436 = vmatmul.msk.bf16.gmra.mxu1 %vm2708_vm11, %v2651_v25 }
 0x1fd   : > { %v1489_v25 = vpack.c.b16 %v1465_v0, %v1464_v60 }
 0x1ff   : > { %1832 = vrot.lane.b32.xlu2 %v2136_v29, %s3639_s23  ;;  %1944 = vrot.lane.b32.xlu0 %v4417_v40, %s3640_s19  ;;  %v1289_v29 = vpack.c.bf16 %v1257_v37, %v1257_v37  ;;  %v2120_v40 = vunpack.c.l.b16 %v1288_v20  ;;  %v2417_v18 = vsel %vm464_vm1, %v1489_v25, %v1593_v33 }
 0x200   : > { %1720 = vrot.lane.b32.xlu1 %v4378_v8, %s3637_s15  ;;  %v2457_v13 = vsel %vm566_vm0, %v2417_v18, %v4456_v34  ;;  %s4855_s15 = sld [smem:[#allocation10_spill]] }
 0x201   : > { %v4497_v21 = vpop.permute.xlu2 %2264  ;;  %v2121_v5 = vunpack.c.l.b16 %v1289_v29 }
 0x202   : > { %v1927_v58 = vpop.permute.xlu1 %1926  ;;  %v2151_v28 = vpop.permute.xlu0 %2150 }
 0x203   : > { %v2521_v11 = vsel %vm2507_vm6, %v2488_v30, %v1927_v58  ;;  %v2137_v57 = vpack.c.b16 %v2121_v5, %v2120_v40 }
 0x204   : > { %v2554_v8 = vsel %vm2540_vm7, %v2521_v11, %v4439_v36 }
 0x205   : > { %v2587_v35 = vsel %vm2573_vm8, %v2554_v8, %v2151_v28 }
 0x207   : > { %2380 = vrot.lane.b32.xlu2 %v4328_v14, %s3643_s20  ;;  %2280 = vrot.lane.b32.xlu0 %v2249_v27, %s3642_s25  ;;  %v1416_v14 = vpack.c.bf16 %v1384_v3, %v1384_v3 }
 0x208   : > { %2268 = vrot.lane.b32.xlu1 %v4358_v56, %s3642_s25 }
 0x209   : > { %v1711_v56 = vpop.permute.xlu2 %1710  ;;  %v2344_v62 = vunpack.c.l.b16 %v1416_v14 }
 0x20a   : > { %v2263_v7 = vpop.permute.xlu1 %2262  ;;  %v2041_v36 = vpop.permute.xlu0 %2040 }
 0x20b   : > { %v2620_v54 = vsel %vm2606_vm9, %v2587_v35, %v2263_v7  ;;  %v2361_v17 = vpack.c.b16 %v2345_v32, %v2344_v62  ;;  %v857_v35 = vld [vmem:[#allocation2 + $0xc0] sm:$0xff]  ;;  %v858_v7 = vld [vmem:[#allocation2 + $0xc8] sm:$0xff] }
 0x20c   : > { %v2653_v23 = vsel %vm2639_vm10, %v2620_v54, %v2375_v9  ;;  %v889_v53 = vpack.c.bf16 %v857_v35, %v857_v35  ;;  %v890_v54 = vpack.c.bf16 %v858_v7, %v858_v7 }
 0x20d   : > { %3437 = vmatmul.msk.bf16.gmra.mxu1 %vm2708_vm11, %v2653_v23 }
 0x20e   : > { %v1467_v62 = vunpack.c.l.b16 %v890_v54 }
 0x20f   : > { %2168 = vrot.lane.b32.xlu2 %v2137_v57, %s3641_s24 }
 0x210   : > { %2056 = vrot.lane.b32.xlu1 %v4460_v19, %s3638_s17  ;;  %s4772_s17 = scalar_lea.vmem %s4855_s15, %s3493_s22 }
 0x211   : > { %v2047_v51 = vpop.permute.xlu2 %2046 }
 0x212   : > { %v1817_v26 = vpop.permute.xlu1 %1816  ;;  %v4514_v41 = vpop.permute.xlu0 %1706 }
 0x213   : > { %v2759_v9 = vpop.f32.mrf.mxu1  ;;  %v2490_v30 = vsel %vm2474_vm5, %v2457_v13, %v1817_v26 }
 0x214   : > { %v2840_v4 = vmul.f32 %v4424_v59, %v2759_v9  ;;  %v2523_v33 = vsel %vm2507_vm6, %v2490_v30, %v4483_v45 }
 0x215   : > { %v2556_v29 = vsel %vm2540_vm7, %v2523_v33, %v2041_v36 }
 0x216   : > { %v2876_v42 = vadd.f32 %v4434_v55, %v2840_v4 }
 0x218   : > { %v2908_v19 = vmax.f32 %v2876_v42, 0.0  ;;  %2392 = vrot.lane.b32.xlu1 %v2361_v17, %s3643_s20 }
 0x219   : > { %v1819_v11 = vpop.permute.xlu2 %1818 }
 0x21a   : > { %2940 = vst.msk [vmem:[#allocation3 + $0x10] sm:$0xff] %vm464_vm1, %v2908_v19  ;;  %v1595_v2 = vpop.permute.xlu1 %1594  ;;  %v2377_v15 = vpop.permute.xlu0 %2376 }
 0x21b   : > { %v2761_v58 = vpop.f32.mrf.mxu1 }
 0x21c   : > { %v2841_v28 = vmul.f32 %v4424_v59, %v2761_v58 }
 0x21e   : > { %v2877_v50 = vadd.f32 %v4434_v55, %v2841_v28 }
 0x220   : > { %v2909_v37 = vmax.f32 %v2877_v50, 0.0 }
 0x221   : > { %v1601_v3 = vpop.permute.xlu2 %1600 }
 0x222   : > { %2941 = vst.msk [vmem:[#allocation3 + $0x18] sm:$0xff] %vm464_vm1, %v2909_v37  ;;  %v2153_v20 = vpop.permute.xlu1 %2152  ;;  %v1823_v27 = vpop.permute.xlu0 %1822  ;;  %v2429_v6 = vsel %vm464_vm1, %v4312_v44, %v1601_v3 }
 0x223   : > { %v2589_v34 = vsel %vm2573_vm8, %v2556_v29, %v2153_v20 }
 0x224   : > { %v2622_v8 = vsel %vm2606_vm9, %v2589_v34, %v4497_v21 }
 0x225   : > { %v2655_v40 = vsel %vm2639_vm10, %v2622_v8, %v2377_v15 }
 0x226   : > { %3438 = vmatmul.msk.bf16.gmra.mxu1 %vm2708_vm11, %v2655_v40 }
 0x229   : > { %v2155_v48 = vpop.permute.xlu2 %2154 }
 0x22a   : > { %v1599_v5 = vpop.permute.xlu1 %1598  ;;  %v1931_v45 = vpop.permute.xlu0 %1930 }
 0x22b   : > { %v2426_v31 = vsel %vm464_vm1, %v4394_v22, %v1599_v5 }
 0x22c   : > { %v2463_v1 = vsel %vm566_vm0, %v2426_v31, %v1711_v56  ;;  %v1466_v56 = vunpack.c.l.b16 %v889_v53  ;;  %v870_v53 = vld [vmem:[#allocation2 + $0x158] sm:$0xff] }
 0x22d   : > { %v2496_v23 = vsel %vm2474_vm5, %v2463_v1, %v1823_v27  ;;  %v869_v1 = vld [vmem:[#allocation2 + $0x150] sm:$0xff] }
 0x22e   : > { %v1490_v44 = vpack.c.b16 %v1467_v62, %v1466_v56 }
 0x230   : > { %v2420_v17 = vsel %vm464_vm1, %v1490_v44, %v1595_v2 }
 0x231   : > { %v1607_v42 = vpop.permute.xlu2 %1606 }
 0x232   : > { %v1935_v36 = vpop.permute.xlu1 %1934  ;;  %v1713_v14 = vpop.permute.xlu0 %1712 }
 0x233   : > { %v2529_v21 = vsel %vm2507_vm6, %v2496_v23, %v1935_v36  ;;  %v2465_v22 = vsel %vm566_vm0, %v2429_v6, %v1713_v14  ;;  %v901_v36 = vpack.c.bf16 %v869_v1, %v869_v1  ;;  %v902_v23 = vpack.c.bf16 %v870_v53, %v870_v53  ;;  %v3469_v1 = vld [vmem:[%s3784_s13 + $0x31] ss:$2 sm:$0xff] }
 0x234   : > { %v2562_v57 = vsel %vm2540_vm7, %v2529_v21, %v2047_v51  ;;  %v2498_v0 = vsel %vm2474_vm5, %v2465_v22, %v4128_v12  ;;  %v2459_v12 = vsel %vm566_vm0, %v2420_v17, %v4514_v41 }
 0x235   : > { %v2595_v39 = vsel %vm2573_vm8, %v2562_v57, %v4102_v24  ;;  %v2531_v9 = vsel %vm2507_vm6, %v2498_v0, %v4076_v63  ;;  %v2492_v63 = vsel %vm2474_vm5, %v2459_v12, %v1819_v11  ;;  %v1478_v14 = vunpack.c.l.b16 %v901_v36  ;;  %v859_v57 = vld [vmem:[#allocation2 + $0xd8] sm:$0xff] }
 0x236   : > { %v2628_v32 = vsel %vm2606_vm9, %v2595_v39, %v4059_v52  ;;  %v2525_v2 = vsel %vm2507_vm6, %v2492_v63, %v1931_v45  ;;  %v1479_v6 = vunpack.c.l.b16 %v902_v23  ;;  %v891_v62 = vpack.c.bf16 %v859_v57, %v859_v57 }
 0x237   : > { %v2661_v60 = vsel %vm2639_vm10, %v2628_v32, %v4112_v46  ;;  %v2564_v46 = vsel %vm2540_vm7, %v2531_v9, %v4114_v49 }
 0x238   : > { %3441 = vmatmul.msk.bf16.vlgmr.msra.gmra.mxu2 %vm2708_vm11, %v2661_v60  ;;  %v2597_v18 = vsel %vm2573_vm8, %v2564_v46, %v4221_v61 }
 0x239   : > { %v2630_v41 = vsel %vm2606_vm9, %v2597_v18, %v4189_v16  ;;  %v1943_v33 = vpop.permute.xlu2 %1942 }
 0x23a   : > { %v4553_v26 = vpop.permute.xlu1 %2388  ;;  %v2267_v24 = vpop.permute.xlu0 %2266  ;;  %v2663_v28 = vsel %vm2639_vm10, %v2630_v41, %v4143_v47 }
 0x23b   : > { %v2764_v4 = vpop.f32.mrf.mxu1  ;;  %v2667_v44 = vsel %vm2639_vm10, %v4362_v10, %v4553_v26 }
 0x23c   : > { %v2842_v52 = vmul.f32 %v4424_v59, %v2764_v4  ;;  %v1468_v4 = vunpack.c.l.b16 %v891_v62 }
 0x23e   : > { %v2878_v25 = vadd.f32 %v4434_v55, %v2842_v52 }
 0x240   : > { %v2910_v51 = vmax.f32 %v2878_v25, 0.0 }
 0x241   : > { %v1597_v40 = vpop.permute.xlu2 %1596 }
 0x242   : > { %2942 = vst.msk [vmem:[#allocation3 + $0x20] sm:$0xff] %vm464_vm1, %v2910_v51  ;;  %v2043_v19 = vpop.permute.xlu1 %2042  ;;  %v1719_v13 = vpop.permute.xlu0 %1718 }
 0x243   : > { %v2766_v15 = vpop.f32.mrf.mxu1  ;;  %v2558_v58 = vsel %vm2540_vm7, %v2525_v2, %v2043_v19 }
 0x244   : > { %v2843_v49 = vmul.f32 %v4424_v59, %v2766_v15  ;;  %v2591_v61 = vsel %vm2573_vm8, %v2558_v58, %v2155_v48  ;;  %v860_v48 = vld [vmem:[#allocation2 + $0xe0] sm:$0xff] }
 0x245   : > { %v2624_v11 = vsel %vm2606_vm9, %v2591_v61, %v2267_v24  ;;  %v892_v32 = vpack.c.bf16 %v860_v48, %v860_v48 }
 0x246   : > { %v2879_v30 = vadd.f32 %v4434_v55, %v2843_v49 }
 0x247   : > { %v1469_v17 = vunpack.c.l.b16 %v892_v32 }
 0x248   : > { %v2911_v50 = vmax.f32 %v2879_v30, 0.0  ;;  %3442 = vmatmul.msk.bf16.gmra.mxu2 %vm2708_vm11, %v2663_v28 }
 0x249   : > { %v2391_v54 = vpop.permute.xlu2 %2390  ;;  %v1491_v63 = vpack.c.b16 %v1469_v17, %v1468_v4 }
 0x24a   : > { %2943 = vst.msk [vmem:[#allocation3 + $0x28] sm:$0xff] %vm464_vm1, %v2911_v50  ;;  %v2379_v37 = vpop.permute.xlu1 %2378  ;;  %v2055_v34 = vpop.permute.xlu0 %2054 }
 0x24b   : > { %v2769_v20 = vpop.f32.mrf.mxu1  ;;  %v2657_v29 = vsel %vm2639_vm10, %v2624_v11, %v2379_v37  ;;  %v3130_v37 = vld [vmem:[%s3784_s13] ss:$2 sm:$0xff]  ;;  %v3451_v11 = vld [vmem:[%s3784_s13 + $0x10] ss:$2 sm:$0xff] }
 0x24c   : > { %v2844_v16 = vmul.f32 %v4424_v59, %v2769_v20  ;;  %3439 = vmatmul.msk.bf16.gmra.mxu1 %vm2708_vm11, %v2657_v29  ;;  %v3452_v20 = vld [vmem:[%s3784_s13 + $0x20] ss:$2 sm:$0xff]  ;;  %v3453_v29 = vld [vmem:[%s3784_s13 + $0x30] ss:$2 sm:$0xff] }
 0x24d   : > { %v3196_v23 = vadd.f32 %v3469_v1, %v3453_v29 }
 0x24e   : > { %v2880_v27 = vadd.f32 %v4434_v55, %v2844_v16  ;;  %v3466_v16 = vld [vmem:[%s3784_s13 + $0x1] ss:$2 sm:$0xff] }
 0x250   : > { %v2912_v47 = vmax.f32 %v2880_v27, 0.0 }
 0x251   : > { %v2045_v0 = vpop.permute.xlu2 %2044 }
 0x252   : > { %2944 = vst.msk [vmem:[#allocation3 + $0x30] sm:$0xff] %vm464_vm1, %v2912_v47  ;;  %v1831_v8 = vpop.permute.xlu1 %1830  ;;  %v2279_v31 = vpop.permute.xlu0 %2278  ;;  %v3061_v47 = vld [vmem:[%s4838_s7] sm:$0xf] }
 0x253   : > { %v2771_v5 = vpop.f32.mrf.mxu1 }
 0x254   : > { %v2845_v3 = vmul.f32 %v4424_v59, %v2771_v5  ;;  %v3193_v5 = vadd.f32 %v3466_v16, %v3130_v37 }
 0x256   : > { %v2881_v45 = vadd.f32 %v4434_v55, %v2845_v3 }
 0x258   : > { %v2913_v35 = vmax.f32 %v2881_v45, 0.0  ;;  %3443 = vmatmul.msk.bf16.gmra.mxu2 %vm2708_vm11, %v4310_v43  ;;  %v1496_v43 = vpack.c.b16 %v1479_v6, %v1478_v14 }
 0x259   : > { %v1833_v15 = vpop.permute.xlu2 %1832 }
 0x25a   : > { %2945 = vst.msk [vmem:[#allocation3 + $0x38] sm:$0xff] %vm464_vm1, %v2913_v35  ;;  %v2167_v7 = vpop.permute.xlu1 %2166  ;;  %v1821_v21 = vpop.permute.xlu0 %1820  ;;  %v2438_v9 = vsel %vm464_vm1, %v1496_v43, %v1607_v42  ;;  %v2423_v42 = vsel %vm464_vm1, %v1491_v63, %v1597_v40  ;;  %v3468_v40 = vld [vmem:[%s3784_s13 + $0x21] ss:$2 sm:$0xff] }
 0x25b   : > { %v2471_v52 = vsel %vm566_vm0, %v2438_v9, %v1719_v13  ;;  %v3195_v53 = vadd.f32 %v3468_v40, %v3452_v20  ;;  %v3470_v40 = vld [vmem:[%s3784_s13 + $0x41] ss:$2 sm:$0xff] }
 0x25c   : > { %v2504_v25 = vsel %vm2474_vm5, %v2471_v52, %v1831_v8  ;;  %v3499_v8 = vld [vmem:[%s4841_s10] sm:$0xff] }
 0x25d   : > { %v2537_v10 = vsel %vm2507_vm6, %v2504_v25, %v1943_v33  ;;  %3248 = vmatpush.bf16.msrb.mxu3 %v3499_v8  ;;  %v3457_v8 = vld [vmem:[%s3784_s13 + $0x70] ss:$2 sm:$0xff] }
 0x25e   : > { %v2570_v19 = vsel %vm2540_vm7, %v2537_v10, %v2055_v34  ;;  %v3467_v34 = vld [vmem:[%s3784_s13 + $0x11] ss:$2 sm:$0xff] }
 0x25f   : > { %v2603_v58 = vsel %vm2573_vm8, %v2570_v19, %v2167_v7  ;;  %v3194_v3 = vadd.f32 %v3467_v34, %v3451_v11  ;;  %v3075_v7 = vsel %vm2741_vm4, %v3061_v47, 0  ;;  %v2972_v19 = vld [vmem:[#allocation3 + $0x10] ss:$2 sm:$0xff]  ;;  %v3454_v34 = vld [vmem:[%s3784_s13 + $0x40] ss:$2 sm:$0xff] }
 0x260   : > { %v2636_v61 = vsel %vm2606_vm9, %v2603_v58, %v2279_v31  ;;  %3084 = vmatpush.bf16.msrb.mxu2 %v3075_v7  ;;  %v3456_v47 = vld [vmem:[%s3784_s13 + $0x60] ss:$2 sm:$0xff] }
 0x261   : > { %v2669_v33 = vsel %vm2639_vm10, %v2636_v61, %v2391_v54  ;;  %v2381_v54 = vpop.permute.xlu2 %2380  ;;  %v3002_v61 = vld [vmem:[#allocation3 + $0x1] ss:$2 sm:$0xff] }
 0x262   : > { %v1709_v22 = vpop.permute.xlu1 %1708  ;;  %v1609_v12 = vpop.permute.xlu0 %1608 }
 0x263   : > { %v2774_v39 = vpop.f32.mrf.mxu1  ;;  %v2461_v2 = vsel %vm566_vm0, %v2423_v42, %v1709_v22  ;;  %v2441_v14 = vsel %vm464_vm1, %v4419_v38, %v1609_v12  ;;  %v3210_v22 = vadd.f32 %v3196_v23, %v3195_v53  ;;  %v3008_v42 = vld [vmem:[#allocation3 + $0x31] ss:$2 sm:$0xff] }
 0x264   : > { %v2846_v56 = vmul.f32 %v4424_v59, %v2774_v39  ;;  %v2494_v41 = vsel %vm2474_vm5, %v2461_v2, %v1821_v21  ;;  %v3209_v21 = vadd.f32 %v3194_v3, %v3193_v5  ;;  %v3004_v2 = vld [vmem:[#allocation3 + $0x11] ss:$2 sm:$0xff]  ;;  %v3472_v3 = vld [vmem:[%s3784_s13 + $0x61] ss:$2 sm:$0xff] }
 0x265   : > { %v3471_v5 = vld [vmem:[%s3784_s13 + $0x51] ss:$2 sm:$0xff]  ;;  %v3199_v7 = vadd.f32 %v3472_v3, %v3456_v47 }
 0x266   : > { %v2882_v60 = vadd.f32 %v4434_v55, %v2846_v56  ;;  %v3217_v62 = vpack.c.bf16 %v3210_v22, %v3209_v21 }
 0x268   : > { %v2914_v24 = vmax.f32 %v2882_v60, 0.0  ;;  %3444 = vmatmul.msk.bf16.gmra.mxu2 %vm2708_vm11, %v2667_v44  ;;  %3486 = vmatmul.msk.bf16.vlgmr.msrb.gmra.mxu3 %vm566_vm0, %v3217_v62 }
 0x26a   : > { %2946 = vst.msk [vmem:[#allocation3 + $0x40] sm:$0xff] %vm464_vm1, %v2914_v24  ;;  %v1933_v46 = vpop.permute.xlu1 %1932  ;;  %v2157_v28 = vpop.permute.xlu0 %2156 }
 0x26b   : > { %v2776_v51 = vpop.f32.mrf.mxu1  ;;  %v2527_v30 = vsel %vm2507_vm6, %v2494_v41, %v1933_v46  ;;  %v2169_v24 = vpop.permute.xlu2 %2168 }
 0x26c   : > { %v2847_v18 = vmul.f32 %v4424_v59, %v2776_v51  ;;  %v2560_v50 = vsel %vm2540_vm7, %v2527_v30, %v2045_v0  ;;  %v2970_v30 = vld [vmem:[#allocation3] ss:$2 sm:$0xff] }
 0x26d   : > { %v2593_v45 = vsel %vm2573_vm8, %v2560_v50, %v2157_v28  ;;  %v3034_v28 = vadd.f32 %v3004_v2, %v2972_v19  ;;  %v3033_v37 = vadd.f32 %v3002_v61, %v2970_v30 }
 0x26e   : > { %v2883_v26 = vadd.f32 %v4434_v55, %v2847_v18 }
 0x26f   : > { %v3049_v29 = vadd.f32 %v3034_v28, %v3033_v37 }
 0x270   : > { %v2915_v13 = vmax.f32 %v2883_v26, 0.0  ;;  %v2976_v26 = vld [vmem:[#allocation3 + $0x30] ss:$2 sm:$0xff] }
 0x272   : > { %2947 = vst.msk [vmem:[#allocation3 + $0x48] sm:$0xff] %vm464_vm1, %v2915_v13  ;;  %v1721_v49 = vpop.permute.xlu1 %1720  ;;  %v1945_v56 = vpop.permute.xlu0 %1944  ;;  %v2974_v13 = vld [vmem:[#allocation3 + $0x20] ss:$2 sm:$0xff] }
 0x273   : > { %v2473_v48 = vsel %vm566_vm0, %v2441_v14, %v1721_v49  ;;  %v3036_v49 = vadd.f32 %v3008_v42, %v2976_v26 }
 0x274   : > { %v2506_v32 = vsel %vm2474_vm5, %v2473_v48, %v1833_v15  ;;  %v3006_v15 = vld [vmem:[#allocation3 + $0x21] ss:$2 sm:$0xff] }
 0x275   : > { %v2539_v0 = vsel %vm2507_vm6, %v2506_v32, %v1945_v56  ;;  %v3035_v50 = vadd.f32 %v3006_v15, %v2974_v13 }
 0x277   : > { %v3050_v11 = vadd.f32 %v3036_v49, %v3035_v50 }
 0x278   : > { %3445 = vmatmul.msk.bf16.gmra.mxu2 %vm2708_vm11, %v2669_v33 }
 0x279   : > { %v2779_v27 = vpop.f32.mrf.mxu1  ;;  %v3057_v16 = vpack.c.bf16 %v3050_v11, %v3049_v29  ;;  %v2978_v32 = vld [vmem:[#allocation3 + $0x40] ss:$2 sm:$0xff] }
 0x27a   : > { %v2848_v31 = vmul.f32 %v4424_v59, %v2779_v27  ;;  %v2269_v35 = vpop.permute.xlu1 %2268  ;;  %v2281_v52 = vpop.permute.xlu0 %2280  ;;  %v3455_v27 = vld [vmem:[%s3784_s13 + $0x50] ss:$2 sm:$0xff] }
 0x27b   : > { %v2626_v36 = vsel %vm2606_vm9, %v2593_v45, %v2269_v35  ;;  %v3473_v45 = vld [vmem:[%s3784_s13 + $0x71] ss:$2 sm:$0xff]  ;;  %v3198_v35 = vadd.f32 %v3471_v5, %v3455_v27 }
 0x27c   : > { %v2884_v6 = vadd.f32 %v4434_v55, %v2848_v31  ;;  %v2659_v57 = vsel %vm2639_vm10, %v2626_v36, %v2381_v54  ;;  %v3197_v31 = vadd.f32 %v3470_v40, %v3454_v34  ;;  %v3200_v1 = vadd.f32 %v3473_v45, %v3457_v8 }
 0x27d   : > { %3440 = vmatmul.msk.bf16.gmra.mxu1 %vm2708_vm11, %v2659_v57 }
 0x27e   : > { %v2916_v39 = vmax.f32 %v2884_v6, 0.0  ;;  %v3211_v53 = vadd.f32 %v3198_v35, %v3197_v31  ;;  %v3212_v54 = vadd.f32 %v3200_v1, %v3199_v7  ;;  %v3458_v1 = vld [vmem:[%s3784_s13 + $0x80] ss:$2 sm:$0xff] }
 0x280   : > { %2948 = vst.msk [vmem:[#allocation3 + $0x50] sm:$0xff] %vm464_vm1, %v2916_v39  ;;  %v3218_v36 = vpack.c.bf16 %v3212_v54, %v3211_v53  ;;  %v3459_v53 = vld [vmem:[%s3784_s13 + $0x90] ss:$2 sm:$0xff]  ;;  %v3460_v54 = vld [vmem:[%s3784_s13 + $0xa0] ss:$2 sm:$0xff] }
 0x281   : > { %v2781_v43 = vpop.f32.mrf.mxu1 }
 0x282   : > { %v2849_v38 = vmul.f32 %v4424_v59, %v2781_v43  ;;  %v2057_v60 = vpop.permute.xlu1 %2056  ;;  %3487 = vmatmul.msk.bf16.gmra.mxu3 %vm566_vm0, %v3218_v36 }
 0x283   : > { %v2572_v9 = vsel %vm2540_vm7, %v2539_v0, %v2057_v60 }
 0x284   : > { %v2885_v44 = vadd.f32 %v4434_v55, %v2849_v38  ;;  %v2605_v17 = vsel %vm2573_vm8, %v2572_v9, %v2169_v24  ;;  %v3010_v38 = vld [vmem:[#allocation3 + $0x41] ss:$2 sm:$0xff] }
 0x285   : > { %v2638_v25 = vsel %vm2606_vm9, %v2605_v17, %v2281_v52  ;;  %v3037_v24 = vadd.f32 %v3010_v38, %v2978_v32 }
 0x286   : > { %v2917_v4 = vmax.f32 %v2885_v44, 0.0 }
 0x288   : > { %2949 = vst.msk [vmem:[#allocation3 + $0x58] sm:$0xff] %vm464_vm1, %v2917_v4 }
 0x28a   : > { %v2393_v46 = vpop.permute.xlu1 %2392  ;;  %v2784_v12 = vpop.f32.mrf.mxu1 }
 0x28b   : > { %v2850_v51 = vmul.f32 %v4424_v59, %v2784_v12  ;;  %v2671_v18 = vsel %vm2639_vm10, %v2638_v25, %v2393_v46 }
 0x28c   : > { %3446 = vmatmul.msk.bf16.gmra.mxu2 %vm2708_vm11, %v2671_v18 }
 0x28d   : > { %v2886_v63 = vadd.f32 %v4434_v55, %v2850_v51 }
 0x28f   : > { %v2918_v10 = vmax.f32 %v2886_v63, 0.0  ;;  %v2980_v56 = vld [vmem:[#allocation3 + $0x50] ss:$2 sm:$0xff]  ;;  %v3012_v62 = vld [vmem:[#allocation3 + $0x51] ss:$2 sm:$0xff] }
 0x290   : > { %v3038_v0 = vadd.f32 %v3012_v62, %v2980_v56 }
 0x291   : > { %2950 = vst.msk [vmem:[#allocation3 + $0x60] sm:$0xff] %vm464_vm1, %v2918_v10 }
 0x292   : > { %v2786_v58 = vpop.f32.mrf.mxu1  ;;  %v3051_v46 = vadd.f32 %v3038_v0, %v3037_v24 }
 0x293   : > { %v2851_v41 = vmul.f32 %v4424_v59, %v2786_v58 }
 0x295   : > { %v2887_v33 = vadd.f32 %v4434_v55, %v2851_v41 }
 0x297   : > { %v2919_v20 = vmax.f32 %v2887_v33, 0.0 }
 0x299   : > { %2951 = vst.msk [vmem:[#allocation3 + $0x68] sm:$0xff] %vm464_vm1, %v2919_v20 }
 0x29c   : > { %3447 = vmatmul.msk.bf16.vlgmr.msrb.gmra.mxu2 %vm464_vm1, %v3057_v16 }
 0x2a0   : > { %v2982_v43 = vld [vmem:[#allocation3 + $0x60] ss:$2 sm:$0xff]  ;;  %v3014_v60 = vld [vmem:[#allocation3 + $0x61] ss:$2 sm:$0xff] }
 0x2a1   : > { %v3039_v4 = vadd.f32 %v3014_v60, %v2982_v43 }
 0x2a3   : > { %v2789_v23 = vpop.f32.mrf.mxu1 }
 0x2a4   : > { %v2852_v21 = vmul.f32 %v4424_v59, %v2789_v23  ;;  %v3461_v23 = vld [vmem:[%s3784_s13 + $0xb0] ss:$2 sm:$0xff] }
 0x2a6   : > { %v2888_v14 = vadd.f32 %v4434_v55, %v2852_v21  ;;  %v3474_v21 = vld [vmem:[%s3784_s13 + $0x81] ss:$2 sm:$0xff] }
 0x2a8   : > { %v2920_v6 = vmax.f32 %v2888_v14, 0.0  ;;  %v3475_v14 = vld [vmem:[%s3784_s13 + $0x91] ss:$2 sm:$0xff] }
 0x2aa   : > { %2952 = vst.msk [vmem:[#allocation3 + $0x70] sm:$0xff] %vm464_vm1, %v2920_v6  ;;  %v3476_v6 = vld [vmem:[%s3784_s13 + $0xa1] ss:$2 sm:$0xff] }
 0x2ab   : > { %v2791_v57 = vpop.f32.mrf.mxu1 }
 0x2ac   : > { %v2853_v48 = vmul.f32 %v4424_v59, %v2791_v57  ;;  %v3477_v57 = vld [vmem:[%s3784_s13 + $0xb1] ss:$2 sm:$0xff] }
 0x2ad   : > { %v3204_v56 = vadd.f32 %v3477_v57, %v3461_v23 }
 0x2ae   : > { %v2889_v22 = vadd.f32 %v4434_v55, %v2853_v48  ;;  %v3201_v48 = vadd.f32 %v3474_v21, %v3458_v1 }
 0x2b0   : > { %v2921_v39 = vmax.f32 %v2889_v22, 0.0  ;;  %v3202_v22 = vadd.f32 %v3475_v14, %v3459_v53 }
 0x2b2   : > { %2953 = vst.msk [vmem:[#allocation3 + $0x78] sm:$0xff] %vm464_vm1, %v2921_v39  ;;  %v3203_v39 = vadd.f32 %v3476_v6, %v3460_v54  ;;  %v3213_v43 = vadd.f32 %v3202_v22, %v3201_v48 }
 0x2b4   : > { %v3214_v38 = vadd.f32 %v3204_v56, %v3203_v39  ;;  %v4743_v39 = vld [vmem:[%s4842_s11] ss:$0 sm:$0xff] }
 0x2b6   : > { %v3219_v0 = vpack.c.bf16 %v3214_v38, %v3213_v43  ;;  %v4756_v38 = vld [vmem:[%s4843_s12] ss:$0 sm:$0xff] }
 0x2b8   : > { %3488 = vmatmul.msk.bf16.gmra.mxu3 %vm566_vm0, %v3219_v0 }
 0x2b9   : > { %v2984_v44 = vld [vmem:[#allocation3 + $0x70] ss:$2 sm:$0xff]  ;;  %v3016_v9 = vld [vmem:[#allocation3 + $0x71] ss:$2 sm:$0xff] }
 0x2ba   : > { %v3040_v17 = vadd.f32 %v3016_v9, %v2984_v44 }
 0x2bb   : > { %v2804_v52 = vpop.f32.mrf.mxu2 }
 0x2bc   : > { %v2858_v25 = vmul.f32 %v4424_v59, %v2804_v52  ;;  %v3052_v12 = vadd.f32 %v3040_v17, %v3039_v4 }
 0x2be   : > { %v2894_v51 = vadd.f32 %v4434_v55, %v2858_v25  ;;  %v3058_v18 = vpack.c.bf16 %v3052_v12, %v3051_v46 }
 0x2c0   : > { %v2926_v63 = vmax.f32 %v2894_v51, 0.0  ;;  %3448 = vmatmul.msk.bf16.gmra.mxu2 %vm464_vm1, %v3058_v18  ;;  %v3462_v51 = vld [vmem:[%s3784_s13 + $0xc0] ss:$2 sm:$0xff]  ;;  %v3463_v18 = vld [vmem:[%s3784_s13 + $0xd0] ss:$2 sm:$0xff] }
 0x2c2   : > { %2958 = vst.msk [vmem:[#allocation3 + $0xa0] sm:$0xff] %vm464_vm1, %v2926_v63  ;;  %v3464_v63 = vld [vmem:[%s3784_s13 + $0xe0] ss:$2 sm:$0xff] }
 0x2c3   : > { %v2806_v10 = vpop.f32.mrf.mxu2 }
 0x2c4   : > { %v2859_v26 = vmul.f32 %v4424_v59, %v2806_v10 }
 0x2c6   : > { %v2895_v42 = vadd.f32 %v4434_v55, %v2859_v26  ;;  %v3465_v26 = vld [vmem:[%s3784_s13 + $0xf0] ss:$2 sm:$0xff] }
 0x2c8   : > { %v2927_v19 = vmax.f32 %v2895_v42, 0.0 }
 0x2c9   : > { %v2794_v2 = vpop.f32.mrf.mxu1 }
 0x2ca   : > { %2959 = vst.msk [vmem:[#allocation3 + $0xa8] sm:$0xff] %vm464_vm1, %v2927_v19  ;;  %v2854_v13 = vmul.f32 %v4424_v59, %v2794_v2  ;;  %v3478_v2 = vld [vmem:[%s3784_s13 + $0xc1] ss:$2 sm:$0xff] }
 0x2cb   : > { %v2809_v15 = vpop.f32.mrf.mxu2 }
 0x2cc   : > { %v2890_v58 = vadd.f32 %v4434_v55, %v2854_v13  ;;  %v2860_v49 = vmul.f32 %v4424_v59, %v2809_v15  ;;  %v3479_v13 = vld [vmem:[%s3784_s13 + $0xd1] ss:$2 sm:$0xff]  ;;  %v3480_v15 = vld [vmem:[%s3784_s13 + $0xe1] ss:$2 sm:$0xff] }
 0x2ce   : > { %v2922_v41 = vmax.f32 %v2890_v58, 0.0  ;;  %v2896_v30 = vadd.f32 %v4434_v55, %v2860_v49  ;;  %v3481_v49 = vld [vmem:[%s3784_s13 + $0xf1] ss:$2 sm:$0xff] }
 0x2d0   : > { %2954 = vst.msk [vmem:[#allocation3 + $0x80] sm:$0xff] %vm464_vm1, %v2922_v41  ;;  %v2928_v61 = vmax.f32 %v2896_v30, 0.0  ;;  %v3205_v41 = vadd.f32 %v3478_v2, %v3462_v51  ;;  %v3206_v30 = vadd.f32 %v3479_v13, %v3463_v18 }
 0x2d1   : > { %v2796_v28 = vpop.f32.mrf.mxu1 }
 0x2d2   : > { %2960 = vst.msk [vmem:[#allocation3 + $0xb0] sm:$0xff] %vm464_vm1, %v2928_v61  ;;  %v2855_v50 = vmul.f32 %v4424_v59, %v2796_v28  ;;  %v3207_v61 = vadd.f32 %v3480_v15, %v3464_v63 }
 0x2d3   : > { %v2811_v33 = vpop.f32.mrf.mxu2 }
 0x2d4   : > { %v2891_v37 = vadd.f32 %v4434_v55, %v2855_v50  ;;  %v2861_v11 = vmul.f32 %v4424_v59, %v2811_v33  ;;  %v3208_v50 = vadd.f32 %v3481_v49, %v3465_v26 }
 0x2d6   : > { %v2923_v20 = vmax.f32 %v2891_v37, 0.0  ;;  %v2897_v29 = vadd.f32 %v4434_v55, %v2861_v11  ;;  %v3215_v37 = vadd.f32 %v3206_v30, %v3205_v41 }
 0x2d8   : > { %2955 = vst.msk [vmem:[#allocation3 + $0x88] sm:$0xff] %vm464_vm1, %v2923_v20  ;;  %v2929_v16 = vmax.f32 %v2897_v29, 0.0  ;;  %v3216_v20 = vadd.f32 %v3208_v50, %v3207_v61 }
 0x2da   : > { %2961 = vst.msk [vmem:[#allocation3 + $0xb8] sm:$0xff] %vm464_vm1, %v2929_v16  ;;  %v3220_v16 = vpack.c.bf16 %v3216_v20, %v3215_v37 }
 0x2db   : > { %v2814_v34 = vpop.f32.mrf.mxu2 }
 0x2dc   : > { %v2862_v27 = vmul.f32 %v4424_v59, %v2814_v34  ;;  %3489 = vmatmul.msk.bf16.gmra.mxu3 %vm566_vm0, %v3220_v16 }
 0x2de   : > { %v2898_v47 = vadd.f32 %v4434_v55, %v2862_v27 }
 0x2e0   : > { %v2930_v8 = vmax.f32 %v2898_v47, 0.0  ;;  %v2990_v47 = vld [vmem:[#allocation3 + $0xa0] ss:$2 sm:$0xff] }
 0x2e1   : > { %v2992_v34 = vld [vmem:[#allocation3 + $0xb0] ss:$2 sm:$0xff]  ;;  %v3024_v27 = vld [vmem:[#allocation3 + $0xb1] ss:$2 sm:$0xff] }
 0x2e2   : > { %2962 = vst.msk [vmem:[#allocation3 + $0xc0] sm:$0xff] %vm464_vm1, %v2930_v8  ;;  %v2986_v8 = vld [vmem:[#allocation3 + $0x80] ss:$2 sm:$0xff] }
 0x2e3   : > { %v2816_v40 = vpop.f32.mrf.mxu2 }
 0x2e4   : > { %v2863_v5 = vmul.f32 %v4424_v59, %v2816_v40  ;;  %v3018_v40 = vld [vmem:[#allocation3 + $0x81] ss:$2 sm:$0xff] }
 0x2e5   : > { %v3041_v1 = vadd.f32 %v3018_v40, %v2986_v8 }
 0x2e6   : > { %v2899_v3 = vadd.f32 %v4434_v55, %v2863_v5  ;;  %v3022_v5 = vld [vmem:[#allocation3 + $0xa1] ss:$2 sm:$0xff] }
 0x2e7   : > { %v3043_v54 = vadd.f32 %v3022_v5, %v2990_v47 }
 0x2e8   : > { %v2931_v45 = vmax.f32 %v2899_v3, 0.0 }
 0x2ea   : > { %2963 = vst.msk [vmem:[#allocation3 + $0xc8] sm:$0xff] %vm464_vm1, %v2931_v45  ;;  %v3044_v45 = vadd.f32 %v3024_v27, %v2992_v34 }
 0x2eb   : > { %v2819_v31 = vpop.f32.mrf.mxu2  ;;  %v3250_v48 = vpop.f32.mrf.mxu3 }
 0x2ec   : > { %v2864_v35 = vmul.f32 %v4424_v59, %v2819_v31  ;;  %v3054_v21 = vadd.f32 %v3044_v45, %v3043_v54  ;;  %v3274_v43 = vmul.f32 %v4743_v39, %v3250_v48 }
 0x2ee   : > { %v2900_v7 = vadd.f32 %v4434_v55, %v2864_v35 }
 0x2f0   : > { %v2932_v36 = vmax.f32 %v2900_v7, 0.0 }
 0x2f2   : > { %2964 = vst.msk [vmem:[#allocation3 + $0xd0] sm:$0xff] %vm464_vm1, %v2932_v36 }
 0x2f3   : > { %v2821_v62 = vpop.f32.mrf.mxu2 }
 0x2f4   : > { %v2865_v32 = vmul.f32 %v4424_v59, %v2821_v62 }
 0x2f6   : > { %v2901_v60 = vadd.f32 %v4434_v55, %v2865_v32  ;;  %v4750_v32 = vld [vmem:[%s4839_s8] ss:$0 sm:$0xff] }
 0x2f8   : > { %v2933_v44 = vmax.f32 %v2901_v60, 0.0 }
 0x2fa   : > { %2965 = vst.msk [vmem:[#allocation3 + $0xd8] sm:$0xff] %vm464_vm1, %v2933_v44  ;;  %v2799_v9 = vpop.f32.mrf.mxu1  ;;  %v3286_v44 = vadd.f32 %v4756_v38, %v3274_v43 }
 0x2fb   : > { %v2856_v24 = vmul.f32 %v4424_v59, %v2799_v9  ;;  %v2824_v4 = vpop.f32.mrf.mxu2  ;;  %v3252_v9 = vpop.f32.mrf.mxu3 }
 0x2fc   : > { %v2866_v17 = vmul.f32 %v4424_v59, %v2824_v4  ;;  %v3275_v18 = vmul.f32 %v4743_v39, %v3252_v9 }
 0x2fd   : > { %v2892_v52 = vadd.f32 %v4434_v55, %v2856_v24 }
 0x2fe   : > { %v2902_v25 = vadd.f32 %v4434_v55, %v2866_v17  ;;  %v3287_v49 = vadd.f32 %v4756_v38, %v3275_v18 }
 0x2ff   : > { %v2924_v46 = vmax.f32 %v2892_v52, 0.0  ;;  %v2994_v52 = vld [vmem:[#allocation3 + $0xc0] ss:$2 sm:$0xff] }
 0x300   : > { %v2934_v12 = vmax.f32 %v2902_v25, 0.0 }
 0x301   : > { %2956 = vst.msk [vmem:[#allocation3 + $0x90] sm:$0xff] %vm464_vm1, %v2924_v46  ;;  %v2996_v24 = vld [vmem:[#allocation3 + $0xd0] ss:$2 sm:$0xff]  ;;  %v3028_v4 = vld [vmem:[#allocation3 + $0xd1] ss:$2 sm:$0xff] }
 0x302   : > { %2966 = vst.msk [vmem:[#allocation3 + $0xe0] sm:$0xff] %vm464_vm1, %v2934_v12  ;;  %v2801_v10 = vpop.f32.mrf.mxu1  ;;  %v3026_v46 = vld [vmem:[#allocation3 + $0xc1] ss:$2 sm:$0xff]  ;;  %v3046_v63 = vadd.f32 %v3028_v4, %v2996_v24 }
 0x303   : > { %v2857_v42 = vmul.f32 %v4424_v59, %v2801_v10  ;;  %v2826_v19 = vpop.f32.mrf.mxu2 }
 0x304   : > { %v2867_v58 = vmul.f32 %v4424_v59, %v2826_v19  ;;  %v3045_v19 = vadd.f32 %v3026_v46, %v2994_v52 }
 0x305   : > { %v2893_v28 = vadd.f32 %v4434_v55, %v2857_v42  ;;  %v3255_v37 = vpop.f32.mrf.mxu3 }
 0x306   : > { %v2903_v33 = vadd.f32 %v4434_v55, %v2867_v58  ;;  %v3055_v41 = vadd.f32 %v3046_v63, %v3045_v19 }
 0x307   : > { %v2925_v11 = vmax.f32 %v2893_v28, 0.0 }
 0x308   : > { %v2935_v29 = vmax.f32 %v2903_v33, 0.0 }
 0x309   : > { %2957 = vst.msk [vmem:[#allocation3 + $0x98] sm:$0xff] %vm464_vm1, %v2925_v11  ;;  %v3276_v11 = vmul.f32 %v4743_v39, %v3255_v37 }
 0x30a   : > { %2967 = vst.msk [vmem:[#allocation3 + $0xe8] sm:$0xff] %vm464_vm1, %v2935_v29 }
 0x30b   : > { %v3288_v16 = vadd.f32 %v4756_v38, %v3276_v11 }
 0x30d   : > { %v3257_v34 = vpop.f32.mrf.mxu3 }
 0x30e   : > { %v3277_v8 = vmul.f32 %v4743_v39, %v3257_v34 }
 0x30f   : > { %v2829_v3 = vpop.f32.mrf.mxu2 }
 0x310   : > { %v2868_v31 = vmul.f32 %v4424_v59, %v2829_v3  ;;  %v2988_v35 = vld [vmem:[#allocation3 + $0x90] ss:$2 sm:$0xff]  ;;  %v3020_v7 = vld [vmem:[#allocation3 + $0x91] ss:$2 sm:$0xff]  ;;  %v3289_v45 = vadd.f32 %v4756_v38, %v3277_v8 }
 0x311   : > { %v3042_v53 = vadd.f32 %v3020_v7, %v2988_v35  ;;  %v3566_v59 = vld [vmem:[%s4836_s5] ss:$0 sm:$0xff]  ;;  %v2998_v25 = vld [vmem:[#allocation3 + $0xe0] ss:$2 sm:$0xff]  ;;  %v3030_v12 = vld [vmem:[#allocation3 + $0xe1] ss:$2 sm:$0xff] }
 0x312   : > { %v2904_v36 = vadd.f32 %v4434_v55, %v2868_v31  ;;  %v3047_v2 = vadd.f32 %v3030_v12, %v2998_v25 }
 0x313   : > { %v3053_v23 = vadd.f32 %v3042_v53, %v3041_v1 }
 0x314   : > { %v2936_v14 = vmax.f32 %v2904_v36, 0.0 }
 0x315   : > { %v3059_v6 = vpack.c.bf16 %v3054_v21, %v3053_v23 }
 0x316   : > { %2968 = vst.msk [vmem:[#allocation3 + $0xf0] sm:$0xff] %vm464_vm1, %v2936_v14 }
 0x317   : > { %v2831_v57 = vpop.f32.mrf.mxu2  ;;  %3449 = vmatmul.msk.bf16.gmra.mxu2 %vm464_vm1, %v3059_v6 }
 0x318   : > { %v2869_v22 = vmul.f32 %v3566_v59, %v2831_v57 }
 0x31a   : > { %v2905_v56 = vadd.f32 %v4434_v55, %v2869_v22  ;;  %v4762_v55 = vld [vmem:[%s4840_s9] ss:$0 sm:$0xff] }
 0x31c   : > { %v2937_v62 = vmax.f32 %v2905_v56, 0.0 }
 0x31e   : > { %2969 = vst.msk [vmem:[#allocation3 + $0xf8] sm:$0xff] %vm464_vm1, %v2937_v62 }
 0x31f   : > { %v3086_v60 = vpop.f32.mrf.mxu2 }
 0x320   : > { %v3110_v0 = vmul.f32 %v4750_v32, %v3086_v60 }
 0x322   : > { %v3122_v17 = vadd.f32 %v4762_v55, %v3110_v0 }
 0x324   : > { %v3294_v51 = vadd.f32 %v3286_v44, %v3122_v17 }
 0x325   : > { %v3000_v10 = vld [vmem:[#allocation3 + $0xf0] ss:$2 sm:$0xff]  ;;  %v3032_v26 = vld [vmem:[#allocation3 + $0xf1] ss:$2 sm:$0xff] }
 0x326   : > { %v3302_v42 = vmax.f32 %v3294_v51, 0.0  ;;  %v3048_v13 = vadd.f32 %v3032_v26, %v3000_v10 }
 0x327   : > { %v3088_v15 = vpop.f32.mrf.mxu2 }
 0x328   : > { %3310 = vst.msk [vmem:[%s4772_s17] sm:$0xff] %vm2507_vm6, %v3302_v42  ;;  %v3111_v58 = vmul.f32 %v4750_v32, %v3088_v15  ;;  %v3056_v30 = vadd.f32 %v3048_v13, %v3047_v2 }
 0x32a   : > { %v3123_v61 = vadd.f32 %v4762_v55, %v3111_v58  ;;  %v3060_v28 = vpack.c.bf16 %v3056_v30, %v3055_v41 }
 0x32c   : > { %v3295_v50 = vadd.f32 %v3287_v49, %v3123_v61  ;;  %3450 = vmatmul.msk.bf16.gmra.mxu2 %vm464_vm1, %v3060_v28 }
 0x32e   : > { %v3303_v33 = vmax.f32 %v3295_v50, 0.0 }
 0x330   : > { %3311 = vst.msk [vmem:[%s4772_s17 + $0x8] sm:$0xff] %vm2507_vm6, %v3303_v33 }
 0x33b   : > { %v3260_v1 = vpop.f32.mrf.mxu3 }
 0x33c   : > { %v3278_v53 = vmul.f32 %v4743_v39, %v3260_v1 }
 0x33e   : > { %v3290_v36 = vadd.f32 %v4756_v38, %v3278_v53 }
 0x343   : > { %v3091_v20 = vpop.f32.mrf.mxu2  ;;  %v3262_v14 = vpop.f32.mrf.mxu3 }
 0x344   : > { %v3112_v29 = vmul.f32 %v4750_v32, %v3091_v20  ;;  %v3279_v48 = vmul.f32 %v4743_v39, %v3262_v14 }
 0x346   : > { %v3124_v27 = vadd.f32 %v4762_v55, %v3112_v29  ;;  %v3291_v56 = vadd.f32 %v4756_v38, %v3279_v48 }
 0x348   : > { %v3296_v47 = vadd.f32 %v3288_v16, %v3124_v27 }
 0x34a   : > { %v3304_v40 = vmax.f32 %v3296_v47, 0.0 }
 0x34b   : > { %v3093_v5 = vpop.f32.mrf.mxu2 }
 0x34c   : > { %3312 = vst.msk [vmem:[%s4772_s17 + $0x10] sm:$0xff] %vm2507_vm6, %v3304_v40  ;;  %v3113_v3 = vmul.f32 %v4750_v32, %v3093_v5 }
 0x34e   : > { %v3125_v31 = vadd.f32 %v4762_v55, %v3113_v3 }
 0x350   : > { %v3297_v35 = vadd.f32 %v3289_v45, %v3125_v31 }
 0x352   : > { %v3305_v7 = vmax.f32 %v3297_v35, 0.0 }
 0x354   : > { %3313 = vst.msk [vmem:[%s4772_s17 + $0x18] sm:$0xff] %vm2507_vm6, %v3305_v7 }
 0x35f   : > { %v3265_v0 = vpop.f32.mrf.mxu3 }
 0x360   : > { %v3280_v44 = vmul.f32 %v4743_v39, %v3265_v0 }
 0x362   : > { %v3292_v24 = vadd.f32 %v4756_v38, %v3280_v44 }
 0x367   : > { %v3267_v52 = vpop.f32.mrf.mxu3 }
 0x368   : > { %v3281_v12 = vmul.f32 %v4743_v39, %v3267_v52 }
 0x36a   : > { %v3293_v63 = vadd.f32 %v4756_v38, %v3281_v12 }
 0x39a   : > { %v3096_v54 = vpop.f32.mrf.mxu2 }
 0x39b   : > { %v3114_v23 = vmul.f32 %v4750_v32, %v3096_v54 }
 0x39d   : > { %v3126_v21 = vadd.f32 %v4762_v55, %v3114_v23 }
 0x39f   : > { %v3298_v6 = vadd.f32 %v3290_v36, %v3126_v21 }
 0x3a1   : > { %v3306_v57 = vmax.f32 %v3298_v6, 0.0 }
 0x3a2   : > { %v3098_v59 = vpop.f32.mrf.mxu2 }
 0x3a3   : > { %3314 = vst.msk [vmem:[%s4772_s17 + $0x20] sm:$0xff] %vm2507_vm6, %v3306_v57  ;;  %v3115_v22 = vmul.f32 %v4750_v32, %v3098_v59 }
 0x3a5   : > { %v3127_v62 = vadd.f32 %v4762_v55, %v3115_v22 }
 0x3a7   : > { %v3299_v43 = vadd.f32 %v3291_v56, %v3127_v62 }
 0x3a9   : > { %v3307_v60 = vmax.f32 %v3299_v43, 0.0 }
 0x3ab   : > { %3315 = vst.msk [vmem:[%s4772_s17 + $0x28] sm:$0xff] %vm2507_vm6, %v3307_v60 }
 0x3af   : > { %v3101_v9 = vpop.f32.mrf.mxu2 }
 0x3b0   : > { %v3116_v4 = vmul.f32 %v4750_v32, %v3101_v9 }
 0x3b2   : > { %v3128_v17 = vadd.f32 %v4762_v55, %v3116_v4 }
 0x3b4   : > { %v3300_v25 = vadd.f32 %v3292_v24, %v3128_v17 }
 0x3b6   : > { %v3308_v46 = vmax.f32 %v3300_v25, 0.0 }
 0x3b7   : > { %v3103_v51 = vpop.f32.mrf.mxu2 }
 0x3b8   : > { %3316 = vst.msk [vmem:[%s4772_s17 + $0x30] sm:$0xff] %vm2507_vm6, %v3308_v46  ;;  %v3117_v18 = vmul.f32 %v4750_v32, %v3103_v51 }
 0x3ba   : > { %v3129_v10 = vadd.f32 %v4762_v55, %v3117_v18 }
 0x3bc   : > { %v3301_v26 = vadd.f32 %v3293_v63, %v3129_v10 }
 0x3be   : > { %v3309_v42 = vmax.f32 %v3301_v26, 0.0 }
 0x3c0   : > { %3317 = vst.msk [vmem:[%s4772_s17 + $0x38] sm:$0xff] %vm2507_vm6, %v3309_v42 }
 0x3c1 PF: > { %s4856_s28 = sld [smem:[#allocation8_spill]]  ;;  %s4859_s25 = smov %s3623_s26 }
 0x3c2   : > { %s4857_s29 = sld [smem:[#allocation7_spill]] }
 0x3c3   : > { %s4858_s27 = sld [smem:[#allocation9_spill]] }
 0x3c7   : > { %p23_p7 = scmp.ge.s32.totalorder %s4856_s28, 4  }
 0x3c8   : > { %s4860_s26 = smov %s4857_s29 }
 0x3c9   :  { %25 = sbr.rel (!%p23_p7) target bundleno = 5 (0x5), region = 177 }
 0x3ce   :  { %3339 = vsyncpa [#allocation5], 1 }
 0x3cf   :  { %3341 = vsyncpa [#allocation5 + $0x1], 1 }

// kernel: tpu_custom_call.1
= control target key start
LH: loop header
LB: loop body
LE: loop exit
PB: predicated region body
PF: predicated region fallthrough
CT: control target
= control target key end

     0   :  { %s4831_s0 = inlined_call_operand.hbm [shape: f32[2,16,16,16], index: 0, kind: input, shape index: {}]   ;;  %s4832_s1 = inlined_call_operand.vmem [shape: bf16[16,8], index: 1, kind: input, shape index: {}]   ;;  %s4833_s2 = inlined_call_operand.vmem [shape: f32[1,8], index: 2, kind: input, shape index: {}]   ;;  %s4834_s3 = inlined_call_operand.vmem [shape: f32[1,8], index: 3, kind: input, shape index: {}]   ;;  %s4835_s4 = inlined_call_operand.vmem [shape: bf16[72,8], index: 4, kind: input, shape index: {}]   ;;  %s4836_s5 = inlined_call_operand.vmem [shape: f32[1,8], index: 5, kind: input, shape index: {}]   ;;  %s4837_s6 = inlined_call_operand.vmem [shape: f32[1,8], index: 6, kind: input, shape index: {}]   ;;  %s4838_s7 = inlined_call_operand.vmem [shape: bf16[8,32], index: 7, kind: input, shape index: {}]   ;;  %s4839_s8 = inlined_call_operand.vmem [shape: f32[1,32], index: 8, kind: input, shape index: {}]   ;;  %s4840_s9 = inlined_call_operand.vmem [shape: f32[1,32], index: 9, kind: input, shape index: {}]   ;;  %s4841_s10 = inlined_call_operand.vmem [shape: bf16[16,32], index: 10, kind: input, shape index: {}]   ;;  %s4842_s11 = inlined_call_operand.vmem [shape: f32[1,32], index: 11, kind: input, shape index: {}]   ;;  %s4843_s12 = inlined_call_operand.vmem [shape: f32[1,32], index: 12, kind: input, shape index: {}]   ;;  %s4844_s13 = inlined_call_operand.vmem [shape: f32[2,64,32], index: 13, kind: output, shape index: {}]  }
   0x1   :  { %4848 = sst [smem:[#allocation10_spill]] %s4844_s13 }
   0x2   :  { %18 = vsyncpa [#allocation5], 0 }
   0x3   :  { %20 = vsyncpa [#allocation5 + $0x1], 0  ;;  %s3714_s25 = smov 0   ;;  %s3716_s26 = smov 0  }
   0x4   :  { %s3718_s27 = smov 0   ;;  %s3720_s28 = smov 0  }
   0x5 LB: > { %4849 = sst [smem:[#allocation7_spill]] %s3627_s27  ;;  %s3733_s29 = sadd.s32 4294967295, %s3631_s28   ;;  %s3631_s28 = sphi %s3720_s28, %s4856_s28   ;;  %s3627_s27 = sphi %s3718_s27, %s4858_s27   ;;  %s3623_s26 = sphi %s3716_s26, %s4860_s26   ;;  %s3619_s25 = sphi %s3714_s25, %s4859_s25  }
   0x6   : > { %s3736_s30 = sadd.s32 1, %s3631_s28   ;;  %s33_s15 = sadd.s32 1, %s3627_s27 }
   0x7   : > { %4850 = sst [smem:[#allocation8_spill]] %s3736_s30  ;;  %s30_s14 = ssub.s32 %s3631_s28, %s3736_s30 }
   0x8   : > { %p31_p0 = scmp.eq.s32.totalorder %s30_s14, 0  ;;  %p40_p1 = scmp.ne.s32.totalorder %s3627_s27, %s3623_s26 }
   0x9   : > { %p41_p2 = scmp.eq.s32.totalorder %s3631_s28, 0  ;;  %p46_p3 = scmp.ne.s32.totalorder %s3623_s26, %s3619_s25 }
   0xa   : > { %s3746_s16 = scalar_select %p31_p0, %s3627_s27, %s33_s15  }
   0xb   : > { %p3748_p4 = por %p41_p2, %p40_p1  ;;  %p47_p5 = scmp.eq.s32.totalorder %s3733_s29, 0 }
   0xc   : > { %4851 = sst [smem:[#allocation9_spill]] %s3746_s16  ;;  %p3512_p6 = scmp.lt.s32.totalorder %s3631_s28, 2 }
   0xd   : > { %p3754_p7 = por %p47_p5, %p46_p3  ;;  %s384_s19 = sand.u32 1, %s3627_s27  }
   0xe   : > { %s3388_s20 = sshll.u32 %s384_s19, 8  ;;  %s3492_s21 = sshll.u32 %s3631_s28, 8 }
   0xf   : > { %s393_s24 = scalar_lea.hbm %s4831_s0, %s3492_s21  ;;  %s388_s25 = scalar_lea.vmem [#allocation4], %s3388_s20 }
  0x10   : > { %s396_s14 = sshll.u32 %s388_s25, 4  ;;  %s394_s15 = sshll.u32 %s393_s24, 4  ;;  %s397_s14 = int_to_ptr.vmem [resolvable:$true] %s396_s14  ;;  %s395_s15 = int_to_ptr.hbm [resolvable:$true] %s394_s15 }
  0x11   : > { %p3765_p8 = pnand %p3512_p6, %p3748_p4  ;;  %p3391_p9 = scmp.ge.s32.totalorder %s3631_s28, 1 }
  0x12   : > { %s385_s30 = scalar_lea.sflag [#allocation5], %s384_s19  ;;  %s3567_s27 = sshra.s32 %s395_s15, 4  ;;  %s3568_s27 = int_to_ptr.hbm [resolvable:$true] %s3567_s27 }
  0x13   : > { %s3569_s13 = scalar_lea.hbm %s3568_s27, 256  ;;  %p3571_p11 = pneg %p3765_p8 }
  0x14   : > { %p3570_p10 = scmp.ne.s32.totalorder %s3568_s27, %s3569_s13  ;;  %s3574_s22 = scalar_lea.hbm %s4831_s0, 512 }
  0x15   : > { %p3575_p0 = scmp.lt.s32.totalorder %s3568_s27, %s4831_s0  ;;  %p3576_p1 = scmp.lt.s32.totalorder %s3574_s22, %s3569_s13 }
  0x16   : > { %p3572_p12 = pnand %p3571_p11, %p3570_p10 }
  0x17   : > { %p3577_p2 = por %p3576_p1, %p3575_p0 }
  0x18   : > { %p3573_p13 = pneg %p3572_p12 }
  0x1a   : > { %p3578_p3 = pnand %p3577_p2, %p3573_p13 }
  0x1c   : > { %3581 = shalt.err (!%p3578_p3)
}
  0x1d   : > { %s3633_s19 = smov 128   ;;  %s3634_s24 = smov 8  }
  0x1e   : > { %3511 = dma.hbm_to_vmem [thread:$0]  (!%p3765_p8), %s395_s15, 4096, %s397_s14, %s385_s30, %s3633_s19, %s3633_s19, %s3634_s24  }
  0x1f   : > { %p404_p4 = scmp.lt.s32.totalorder %s3631_s28, 3 }
  0x21   : > { %p405_p5 = pnand %p3391_p9, %p404_p4 }
  0x22   : > { %s410_s25 = sand.u32 (!%p405_p5), 1, %s3623_s26  }
  0x23   : > { %408 = sbr.rel (%p405_p5) target bundleno = 961 (0x3c1), region = 72  ;;  %s3392_s20 = sshll.u32 (!%p405_p5), %s410_s25, 8 }
  0x24   : > { %s411_s27 = scalar_lea.sflag (!%p405_p5), [#allocation5], %s410_s25  ;;  %s3784_s13 = scalar_lea.vmem (!%p405_p5), [#allocation4], %s3392_s20 }
  0x28   : > { %3614 = dma.done.wait (%p3754_p7), %s411_s27, 4096  }
  0x29   : > { %3616 = vsyncadd (%p3754_p7), %s411_s27, 4294963200  ;;  %v3494_v0 = vld [vmem:[%s4832_s1] sm:$0xff]  ;;  %v510_v1 = vld [vmem:[%s3784_s13] sm:$0xff]  ;;  %vm566_vm0 = vcmask 130048   ;;  %vm464_vm1 = vcmask 64512   ;;  %vm467_vm2 = vcmask 58368  }
  0x2a   : > { %v511_v2 = vld [vmem:[%s3784_s13 + $0x8] sm:$0xff]  ;;  %v532_v4 = vld [vmem:[%s3784_s13 + $0xb0] sm:$0xff]  ;;  %v533_v5 = vld [vmem:[%s3784_s13 + $0xb8] sm:$0xff]  ;;  %622 = vmatpush.bf16.msra.mxu0 %v3494_v0  ;;  %3500 = vmatpush.bf16.msra.mxu3 %v3494_v0  ;;  %v3635_v25 = vmov 0.0   ;;  %vm473_vm3 = vcmask 57344   ;;  %s3636_s28 = smov 8  }
  0x2b   : > { %v542_v3 = vpack.c.bf16 %v511_v2, %v510_v1  ;;  %v553_v6 = vpack.c.bf16 %v533_v5, %v532_v4  ;;  %v512_v7 = vld [vmem:[%s3784_s13 + $0x10] sm:$0xff]  ;;  %v513_v8 = vld [vmem:[%s3784_s13 + $0x18] sm:$0xff]  ;;  %v534_v9 = vld [vmem:[%s3784_s13 + $0xc0] sm:$0xff]  ;;  %465 = vst.msk [vmem:[#allocation2] sm:$0xff] %vm464_vm1, %v3635_v25  ;;  %s3637_s15 = smov 16   ;;  %s3638_s17 = smov 40  }
  0x2c   : > { %v535_v10 = vld [vmem:[%s3784_s13 + $0xc8] sm:$0xff]  ;;  %v543_v11 = vpack.c.bf16 %v513_v8, %v512_v7  ;;  %v514_v13 = vld [vmem:[%s3784_s13 + $0x20] sm:$0xff]  ;;  %v536_v15 = vld [vmem:[%s3784_s13 + $0xd0] sm:$0xff]  ;;  %466 = vst.msk [vmem:[#allocation2 + $0x8] sm:$0xff] %vm464_vm1, %v3635_v25  ;;  %s3639_s23 = smov 24   ;;  %s3640_s19 = smov 32  }
  0x2d   : > { %3399 = vmatmul.msk.bf16.vlgmr.msra.gmra.mxu0 %vm566_vm0, %v542_v3  ;;  %3410 = vmatmul.msk.bf16.vlgmr.msra.gmra.mxu3 %vm566_vm0, %v553_v6  ;;  %v554_v12 = vpack.c.bf16 %v535_v10, %v534_v9  ;;  %v515_v14 = vld [vmem:[%s3784_s13 + $0x28] sm:$0xff]  ;;  %v537_v16 = vld [vmem:[%s3784_s13 + $0xd8] sm:$0xff]  ;;  %v516_v19 = vld [vmem:[%s3784_s13 + $0x30] sm:$0xff]  ;;  %468 = vst.msk [vmem:[#allocation2 + $0x10] sm:$0x3] %vm467_vm2, %v3635_v25  ;;  %s3641_s24 = smov 48  }
  0x2e   : > { %v544_v17 = vpack.c.bf16 %v515_v14, %v514_v13  ;;  %v555_v18 = vpack.c.bf16 %v537_v16, %v536_v15  ;;  %v517_v20 = vld [vmem:[%s3784_s13 + $0x38] sm:$0xff]  ;;  %v538_v21 = vld [vmem:[%s3784_s13 + $0xe0] sm:$0xff]  ;;  %v539_v22 = vld [vmem:[%s3784_s13 + $0xe8] sm:$0xff]  ;;  %470 = vst.msk [vmem:[#allocation2 + $0x198] sm:$0xff] %vm464_vm1, %v3635_v25  ;;  %s3642_s25 = smov 56   ;;  %s3643_s20 = smov 64  }
  0x2f   : > { %v545_v23 = vpack.c.bf16 %v517_v20, %v516_v19  ;;  %v556_v24 = vpack.c.bf16 %v539_v22, %v538_v21  ;;  %471 = vst.msk [vmem:[#allocation2 + $0x1a0] sm:$0xff] %vm464_vm1, %v3635_v25  ;;  %v518_v27 = vld [vmem:[%s3784_s13 + $0x40] sm:$0xff]  ;;  %v519_v28 = vld [vmem:[%s3784_s13 + $0x48] sm:$0xff]  ;;  %v520_v36 = vld [vmem:[%s3784_s13 + $0x50] sm:$0xff]  ;;  %vm2741_vm4 = vcmask 1043456   ;;  %vm2474_vm5 = vcmask 195584  }
  0x30   : > { %472 = vst.msk [vmem:[#allocation2 + $0x1a8] sm:$0x3] %vm467_vm2, %v3635_v25  ;;  %v546_v31 = vpack.c.bf16 %v519_v28, %v518_v27  ;;  %v521_v37 = vld [vmem:[%s3784_s13 + $0x58] sm:$0xff]  ;;  %v3881_v41 = vld [vmem:[%s4833_s2] ss:$0 sm:$0xff]  ;;  %v522_v53 = vld [vmem:[%s3784_s13 + $0x60] sm:$0xff] }
  0x31   : > { %474 = vst.msk [vmem:[#allocation2] sm:$0x1] %vm473_vm3, %v3635_v25  ;;  %v547_v38 = vpack.c.bf16 %v521_v37, %v520_v36  ;;  %v3890_v42 = vld [vmem:[%s4834_s3] ss:$0 sm:$0xff]  ;;  %v523_v54 = vld [vmem:[%s3784_s13 + $0x68] sm:$0xff]  ;;  %v525_v19 = vld [vmem:[%s3784_s13 + $0x78] sm:$0xff] }
  0x32   : > { %475 = vst.msk [vmem:[#allocation2 + $0x18] sm:$0x1] %vm473_vm3, %v3635_v25  ;;  %v548_v56 = vpack.c.bf16 %v523_v54, %v522_v53  ;;  %vm2507_vm6 = vcmask 261120   ;;  %vm2540_vm7 = vcmask 326656   ;;  %vm2573_vm8 = vcmask 392192   ;;  %p458_p6 = scmp.lt.s32.totalorder %s3733_s29, 1 }
  0x33   : > { %v905_v26 = vld [vmem:[#allocation2 + $0x1] sm:$0xff]  ;;  %476 = vst.msk [vmem:[#allocation2 + $0x30] sm:$0x1] %vm473_vm3, %v3635_v25  ;;  %vm2606_vm9 = vcmask 457728   ;;  %vm2639_vm10 = vcmask 523264   ;;  %vm2708_vm11 = vcmask 588800  }
  0x34   : > { %v906_v29 = vld [vmem:[#allocation2 + $0x9] sm:$0xff]  ;;  %v937_v30 = vpack.c.bf16 %v905_v26, %v905_v26  ;;  %477 = vst.msk [vmem:[#allocation2 + $0x48] sm:$0x1] %vm473_vm3, %v3635_v25  ;;  %s4862_s29 = smov (!%p458_p6, %s3733_s29), 1 }
  0x35   : > { %v938_v32 = vpack.c.bf16 %v906_v29, %v906_v29  ;;  %478 = vst.msk [vmem:[#allocation2 + $0x60] sm:$0x1] %vm473_vm3, %v3635_v25  ;;  %v969_v39 = vld [vmem:[#allocation2 + $0x2] sm:$0xff]  ;;  %s3493_s22 = sshll.u32 %s4862_s29, 6 }
  0x36   : > { %v1530_v33 = vunpack.c.l.b16 %v937_v30  ;;  %479 = vst.msk [vmem:[#allocation2 + $0x78] sm:$0x1] %vm473_vm3, %v3635_v25  ;;  %v1001_v40 = vpack.c.bf16 %v969_v39, %v969_v39 }
  0x37   : > { %v1531_v34 = vunpack.c.l.b16 %v938_v32  ;;  %480 = vst.msk [vmem:[#allocation2 + $0x90] sm:$0x1] %vm473_vm3, %v3635_v25 }
  0x38   : > { %481 = vst.msk [vmem:[#allocation2 + $0xa8] sm:$0x1] %vm473_vm3, %v3635_v25  ;;  %v1642_v46 = vunpack.c.l.b16 %v1001_v40 }
  0x39   : > { %v1562_v35 = vpack.c.b16 %v1531_v34, %v1530_v33  ;;  %482 = vst.msk [vmem:[#allocation2 + $0xc0] sm:$0x1] %vm473_vm3, %v3635_v25 }
  0x3a   : > { %483 = vst.msk [vmem:[#allocation2 + $0xd8] sm:$0x1] %vm473_vm3, %v3635_v25 }
  0x3b   : > { %1578 = vrot.lane.b32.xlu0 %v1562_v35, %s3636_s28  ;;  %484 = vst.msk [vmem:[#allocation2 + $0xf0] sm:$0x1] %vm473_vm3, %v3635_v25 }
  0x3c   : > { %485 = vst.msk [vmem:[#allocation2 + $0x108] sm:$0x1] %vm473_vm3, %v3635_v25 }
  0x3d   : > { %3400 = vmatmul.msk.bf16.gmra.mxu0 %vm566_vm0, %v543_v11  ;;  %3411 = vmatmul.msk.bf16.gmra.mxu3 %vm566_vm0, %v554_v12  ;;  %486 = vst.msk [vmem:[#allocation2 + $0x120] sm:$0x1] %vm473_vm3, %v3635_v25 }
  0x3e   : > { %487 = vst.msk [vmem:[#allocation2 + $0x138] sm:$0x1] %vm473_vm3, %v3635_v25 }
  0x3f   : > { %488 = vst.msk [vmem:[#allocation2 + $0x150] sm:$0x1] %vm473_vm3, %v3635_v25 }
  0x40   : > { %489 = vst.msk [vmem:[#allocation2 + $0x168] sm:$0x1] %vm473_vm3, %v3635_v25 }
  0x41   : > { %490 = vst.msk [vmem:[#allocation2 + $0x180] sm:$0x1] %vm473_vm3, %v3635_v25 }
  0x42   : > { %492 = vst.msk [vmem:[#allocation2 + $0x11] sm:$0x1] %vm473_vm3, %v3635_v25 }
  0x43   : > { %493 = vst.msk [vmem:[#allocation2 + $0x29] sm:$0x1] %vm473_vm3, %v3635_v25 }
  0x44   : > { %494 = vst.msk [vmem:[#allocation2 + $0x41] sm:$0x1] %vm473_vm3, %v3635_v25 }
  0x45   : > { %495 = vst.msk [vmem:[#allocation2 + $0x59] sm:$0x1] %vm473_vm3, %v3635_v25 }
  0x46   : > { %496 = vst.msk [vmem:[#allocation2 + $0x71] sm:$0x1] %vm473_vm3, %v3635_v25 }
  0x47   : > { %497 = vst.msk [vmem:[#allocation2 + $0x89] sm:$0x1] %vm473_vm3, %v3635_v25 }
  0x48   : > { %498 = vst.msk [vmem:[#allocation2 + $0xa1] sm:$0x1] %vm473_vm3, %v3635_v25 }
  0x49   : > { %499 = vst.msk [vmem:[#allocation2 + $0xb9] sm:$0x1] %vm473_vm3, %v3635_v25  ;;  %v970_v43 = vld [vmem:[#allocation2 + $0xa] sm:$0xff] }
  0x4a   : > { %500 = vst.msk [vmem:[#allocation2 + $0xd1] sm:$0x1] %vm473_vm3, %v3635_v25  ;;  %v1002_v45 = vpack.c.bf16 %v970_v43, %v970_v43 }
  0x4b   : > { %501 = vst.msk [vmem:[#allocation2 + $0xe9] sm:$0x1] %vm473_vm3, %v3635_v25 }
  0x4c   : > { %502 = vst.msk [vmem:[#allocation2 + $0x101] sm:$0x1] %vm473_vm3, %v3635_v25  ;;  %v1643_v48 = vunpack.c.l.b16 %v1002_v45 }
  0x4d   : > { %3401 = vmatmul.msk.bf16.gmra.mxu0 %vm566_vm0, %v544_v17  ;;  %3412 = vmatmul.msk.bf16.gmra.mxu3 %vm566_vm0, %v555_v18  ;;  %503 = vst.msk [vmem:[#allocation2 + $0x119] sm:$0x1] %vm473_vm3, %v3635_v25  ;;  %v524_v18 = vld [vmem:[%s3784_s13 + $0x70] sm:$0xff] }
  0x4e   : > { %504 = vst.msk [vmem:[#allocation2 + $0x131] sm:$0x1] %vm473_vm3, %v3635_v25  ;;  %v1674_v50 = vpack.c.b16 %v1643_v48, %v1642_v46 }
  0x4f   : > { %505 = vst.msk [vmem:[#allocation2 + $0x149] sm:$0x1] %vm473_vm3, %v3635_v25 }
  0x50   : > { %506 = vst.msk [vmem:[#allocation2 + $0x161] sm:$0x1] %vm473_vm3, %v3635_v25  ;;  %1690 = vrot.lane.b32.xlu0 %v1674_v50, %s3637_s15 }
  0x51   : > { %507 = vst.msk [vmem:[#allocation2 + $0x179] sm:$0x1] %vm473_vm3, %v3635_v25 }
  0x52   : > { %508 = vst.msk [vmem:[#allocation2 + $0x191] sm:$0x1] %vm473_vm3, %v3635_v25 }
  0x53   : > { %491 = vst.msk [vmem:[#allocation2 + $0x198] sm:$0x1] %vm473_vm3, %v3635_v25 }
  0x54   : > { %509 = vst.msk [vmem:[#allocation2 + $0x1a9] sm:$0x1] %vm473_vm3, %v3635_v25 }
  0x5d   : > { %3402 = vmatmul.msk.bf16.gmra.mxu0 %vm566_vm0, %v545_v23  ;;  %3413 = vmatmul.msk.bf16.gmra.mxu3 %vm566_vm0, %v556_v24  ;;  %v549_v23 = vpack.c.bf16 %v525_v19, %v524_v18 }
  0x6d   : > { %3403 = vmatmul.msk.bf16.gmra.mxu0 %vm566_vm0, %v546_v31 }
  0x7d   : > { %3404 = vmatmul.msk.bf16.gmra.mxu0 %vm566_vm0, %v547_v38 }
  0x8d   : > { %3405 = vmatmul.msk.bf16.gmra.mxu0 %vm566_vm0, %v548_v56 }
  0x9d   : > { %3406 = vmatmul.msk.bf16.gmra.mxu0 %vm566_vm0, %v549_v23 }
  0xaa   : > { %v624_v44 = vpop.f32.mrf.mxu0 }
  0xab   : > { %v708_v47 = vmul.f32 %v3881_v41, %v624_v44 }
  0xad   : > { %v744_v49 = vadd.f32 %v3890_v42, %v708_v47 }
  0xaf   : > { %v776_v51 = vmax.f32 %v744_v49, 0.0 }
  0xb0   : > { %v679_v52 = vpop.f32.mrf.mxu3 }
  0xb1   : > { %809 = vst.msk [vmem:[#allocation2 + $0x19] sm:$0xff] %vm464_vm1, %v776_v51  ;;  %v730_v55 = vmul.f32 %v3881_v41, %v679_v52 }
  0xb2   : > { %v626_v57 = vpop.f32.mrf.mxu0 }
  0xb3   : > { %v709_v58 = vmul.f32 %v3881_v41, %v626_v57  ;;  %v766_v59 = vadd.f32 %v3890_v42, %v730_v55 }
  0xb5   : > { %v745_v60 = vadd.f32 %v3890_v42, %v709_v58  ;;  %v798_v61 = vmax.f32 %v766_v59, 0.0 }
  0xb7   : > { %v777_v62 = vmax.f32 %v745_v60, 0.0  ;;  %831 = vst.msk [vmem:[#allocation2 + $0x121] sm:$0xff] %vm464_vm1, %v798_v61 }
  0xb8   : > { %v681_v63 = vpop.f32.mrf.mxu3  ;;  %v1033_v3 = vld [vmem:[#allocation2 + $0x18] sm:$0xff] }
  0xb9   : > { %810 = vst.msk [vmem:[#allocation2 + $0x21] sm:$0xff] %vm464_vm1, %v777_v62  ;;  %v731_v0 = vmul.f32 %v3881_v41, %v681_v63  ;;  %v1065_v7 = vpack.c.bf16 %v1033_v3, %v1033_v3  ;;  %v907_v27 = vld [vmem:[#allocation2 + $0x19] sm:$0xff] }
  0xba   : > { %v629_v1 = vpop.f32.mrf.mxu0  ;;  %v939_v35 = vpack.c.bf16 %v907_v27, %v907_v27  ;;  %v529_v27 = vld [vmem:[%s3784_s13 + $0x98] sm:$0xff] }
  0xbb   : > { %v767_v2 = vadd.f32 %v3890_v42, %v731_v0  ;;  %v710_v4 = vmul.f32 %v3881_v41, %v629_v1  ;;  %v1754_v20 = vunpack.c.l.b16 %v1065_v7 }
  0xbc   : > { %v1532_v49 = vunpack.c.l.b16 %v939_v35 }
  0xbd   : > { %v799_v5 = vmax.f32 %v767_v2, 0.0  ;;  %v746_v6 = vadd.f32 %v3890_v42, %v710_v4  ;;  %v526_v4 = vld [vmem:[%s3784_s13 + $0x80] sm:$0xff] }
  0xbe   : > { %v1246_v9 = vld [vmem:[#allocation2 + $0x120] sm:$0xff] }
  0xbf   : > { %832 = vst.msk [vmem:[#allocation2 + $0x129] sm:$0xff] %vm464_vm1, %v799_v5  ;;  %v778_v8 = vmax.f32 %v746_v6, 0.0  ;;  %v1278_v30 = vpack.c.bf16 %v1246_v9, %v1246_v9  ;;  %v1310_v46 = vld [vmem:[#allocation2 + $0x121] sm:$0xff]  ;;  %v527_v5 = vld [vmem:[%s3784_s13 + $0x88] sm:$0xff] }
  0xc0   : > { %v1161_v10 = vld [vmem:[#allocation2 + $0x1a] sm:$0xff]  ;;  %v1162_v11 = vld [vmem:[#allocation2 + $0x22] sm:$0xff]  ;;  %v684_v13 = vpop.f32.mrf.mxu3  ;;  %v1342_v57 = vpack.c.bf16 %v1310_v46, %v1310_v46  ;;  %v550_v7 = vpack.c.bf16 %v527_v5, %v526_v4 }
  0xc1   : > { %v1034_v12 = vld [vmem:[#allocation2 + $0x20] sm:$0xff]  ;;  %v1193_v14 = vpack.c.bf16 %v1161_v10, %v1161_v10  ;;  %v1194_v15 = vpack.c.bf16 %v1162_v11, %v1162_v11  ;;  %811 = vst.msk [vmem:[#allocation2 + $0x31] sm:$0xff] %vm464_vm1, %v778_v8  ;;  %v732_v22 = vmul.f32 %v3881_v41, %v684_v13  ;;  %v2110_v43 = vunpack.c.l.b16 %v1278_v30 }
  0xc2   : > { %v1066_v16 = vpack.c.bf16 %v1034_v12, %v1034_v12  ;;  %v908_v17 = vld [vmem:[#allocation2 + $0x21] sm:$0xff]  ;;  %v631_v21 = vpop.f32.mrf.mxu0  ;;  %v2222_v0 = vunpack.c.l.b16 %v1342_v57  ;;  %3407 = vmatmul.msk.bf16.gmra.mxu0 %vm566_vm0, %v550_v7  ;;  %v530_v57 = vld [vmem:[%s3784_s13 + $0xa0] sm:$0xff] }
  0xc3   : > { %v1978_v24 = vunpack.c.l.b16 %v1193_v14  ;;  %v1979_v25 = vunpack.c.l.b16 %v1194_v15  ;;  %v711_v28 = vmul.f32 %v3881_v41, %v631_v21  ;;  %v940_v29 = vpack.c.bf16 %v908_v17, %v908_v17 }
  0xc4   : > { %v1755_v26 = vunpack.c.l.b16 %v1066_v16  ;;  %v768_v31 = vadd.f32 %v3890_v42, %v732_v22 }
  0xc5   : > { %v2010_v32 = vpack.c.b16 %v1979_v25, %v1978_v24  ;;  %v747_v34 = vadd.f32 %v3890_v42, %v711_v28  ;;  %v1533_v40 = vunpack.c.l.b16 %v940_v29 }
  0xc6   : > { %v3940_v33 = vpack.c.b16 %v1755_v26, %v1754_v20  ;;  %v1247_v36 = vld [vmem:[#allocation2 + $0x128] sm:$0xff]  ;;  %v800_v37 = vmax.f32 %v768_v31, 0.0  ;;  %v528_v26 = vld [vmem:[%s3784_s13 + $0x90] sm:$0xff] }
  0xc7   : > { %2026 = vrot.lane.b32.xlu2 %v2010_v32, %s3638_s17  ;;  %v1279_v38 = vpack.c.bf16 %v1247_v36, %v1247_v36  ;;  %v779_v39 = vmax.f32 %v747_v34, 0.0  ;;  %1692 = vrot.lane.b32.xlu0 %v2010_v32, %s3637_s15  ;;  %v1311_v47 = vld [vmem:[#allocation2 + $0x129] sm:$0xff]  ;;  %v1563_v55 = vpack.c.b16 %v1533_v40, %v1532_v49  ;;  %v551_v29 = vpack.c.bf16 %v529_v27, %v528_v26 }
  0xc8   : > { %1802 = vrot.lane.b32.xlu1 %v3940_v33, %s3639_s23  ;;  %833 = vst.msk [vmem:[#allocation2 + $0x139] sm:$0xff] %vm464_vm1, %v800_v37  ;;  %v686_v44 = vpop.f32.mrf.mxu3  ;;  %v1374_v50 = vld [vmem:[#allocation2 + $0x122] sm:$0xff]  ;;  %v1375_v51 = vld [vmem:[#allocation2 + $0x12a] sm:$0xff]  ;;  %v1343_v58 = vpack.c.bf16 %v1311_v47, %v1311_v47 }
  0xc9   : > { %v2111_v45 = vunpack.c.l.b16 %v1279_v38  ;;  %812 = vst.msk [vmem:[#allocation2 + $0x39] sm:$0xff] %vm464_vm1, %v779_v39  ;;  %v733_v48 = vmul.f32 %v3881_v41, %v686_v44  ;;  %v1406_v59 = vpack.c.bf16 %v1374_v50, %v1374_v50  ;;  %v1407_v60 = vpack.c.bf16 %v1375_v51, %v1375_v51  ;;  %v1226_v13 = vld [vmem:[#allocation2 + $0x30] sm:$0xff] }
  0xca   : > { %v634_v52 = vpop.f32.mrf.mxu0  ;;  %v2223_v1 = vunpack.c.l.b16 %v1343_v58  ;;  %v1290_v15 = vld [vmem:[#allocation2 + $0x31] sm:$0xff]  ;;  %v1258_v17 = vpack.c.bf16 %v1226_v13, %v1226_v13 }
  0xcb   : > { %v769_v53 = vadd.f32 %v3890_v42, %v733_v48  ;;  %v712_v54 = vmul.f32 %v3881_v41, %v634_v52  ;;  %v2132_v56 = vpack.c.b16 %v2111_v45, %v2110_v43  ;;  %v2334_v2 = vunpack.c.l.b16 %v1406_v59  ;;  %v531_v58 = vld [vmem:[%s3784_s13 + $0xa8] sm:$0xff] }
  0xcc   : > { %v2335_v3 = vunpack.c.l.b16 %v1407_v60  ;;  %v2244_v9 = vpack.c.b16 %v2223_v1, %v2222_v0  ;;  %v1322_v19 = vpack.c.bf16 %v1290_v15, %v1290_v15  ;;  %v2090_v21 = vunpack.c.l.b16 %v1258_v17 }
  0xcd   : > { %v801_v61 = vmax.f32 %v769_v53, 0.0  ;;  %v748_v62 = vadd.f32 %v3890_v42, %v712_v54  ;;  %v552_v60 = vpack.c.bf16 %v531_v58, %v530_v57 }
  0xce   : > { %v2356_v10 = vpack.c.b16 %v2335_v3, %v2334_v2  ;;  %v2202_v23 = vunpack.c.l.b16 %v1322_v19 }
  0xcf   : > { %1580 = vrot.lane.b32.xlu2 %v1563_v55, %s3636_s28  ;;  %834 = vst.msk [vmem:[#allocation2 + $0x141] sm:$0xff] %vm464_vm1, %v801_v61  ;;  %v780_v63 = vmax.f32 %v748_v62, 0.0  ;;  %2158 = vrot.lane.b32.xlu0 %v2132_v56, %s3641_s24  ;;  %v1312_v44 = vld [vmem:[#allocation2 + $0x139] sm:$0xff] }
  0xd0   : > { %1914 = vrot.lane.b32.xlu1 %v1563_v55, %s3640_s19  ;;  %v1227_v14 = vld [vmem:[#allocation2 + $0x38] sm:$0xff]  ;;  %v689_v25 = vpop.f32.mrf.mxu3  ;;  %v1344_v48 = vpack.c.bf16 %v1312_v44, %v1312_v44 }
  0xd1   : > { %813 = vst.msk [vmem:[#allocation2 + $0x49] sm:$0xff] %vm464_vm1, %v780_v63  ;;  %v1291_v16 = vld [vmem:[#allocation2 + $0x39] sm:$0xff]  ;;  %v1259_v18 = vpack.c.bf16 %v1227_v14, %v1227_v14  ;;  %v734_v28 = vmul.f32 %v3881_v41, %v689_v25 }
  0xd2   : > { %v636_v6 = vpop.f32.mrf.mxu0  ;;  %v1323_v20 = vpack.c.bf16 %v1291_v16, %v1291_v16  ;;  %v1354_v30 = vld [vmem:[#allocation2 + $0x32] sm:$0xff]  ;;  %v1355_v31 = vld [vmem:[#allocation2 + $0x3a] sm:$0xff]  ;;  %3408 = vmatmul.msk.bf16.gmra.mxu0 %vm566_vm0, %v551_v29  ;;  %v2224_v53 = vunpack.c.l.b16 %v1344_v48 }
  0xd3   : > { %v713_v8 = vmul.f32 %v3881_v41, %v636_v6  ;;  %v2091_v22 = vunpack.c.l.b16 %v1259_v18  ;;  %v770_v34 = vadd.f32 %v3890_v42, %v734_v28  ;;  %v1386_v36 = vpack.c.bf16 %v1354_v30, %v1354_v30 }
  0xd4   : > { %v2203_v24 = vunpack.c.l.b16 %v1323_v20  ;;  %v1387_v37 = vpack.c.bf16 %v1355_v31, %v1355_v31 }
  0xd5   : > { %v749_v11 = vadd.f32 %v3890_v42, %v713_v8  ;;  %v2122_v32 = vpack.c.b16 %v2091_v22, %v2090_v21  ;;  %v802_v38 = vmax.f32 %v770_v34, 0.0  ;;  %v2314_v40 = vunpack.c.l.b16 %v1386_v36  ;;  %v1057_v8 = vld [vmem:[#allocation2 + $0x138] sm:$0xff] }
  0xd6   : > { %v2234_v35 = vpack.c.b16 %v2203_v24, %v2202_v23  ;;  %v2315_v43 = vunpack.c.l.b16 %v1387_v37  ;;  %v1313_v45 = vld [vmem:[#allocation2 + $0x141] sm:$0xff]  ;;  %v1089_v14 = vpack.c.bf16 %v1057_v8, %v1057_v8 }
  0xd7   : > { %2270 = vrot.lane.b32.xlu2 %v2244_v9, %s3642_s25  ;;  %v781_v12 = vmax.f32 %v749_v11, 0.0  ;;  %2048 = vrot.lane.b32.xlu0 %v2356_v10, %s3638_s17  ;;  %835 = vst.msk [vmem:[#allocation2 + $0x151] sm:$0xff] %vm464_vm1, %v802_v38  ;;  %v1345_v49 = vpack.c.bf16 %v1313_v45, %v1313_v45  ;;  %v1376_v52 = vld [vmem:[#allocation2 + $0x13a] sm:$0xff]  ;;  %v1377_v55 = vld [vmem:[#allocation2 + $0x142] sm:$0xff] }
  0xd8   : > { %2382 = vrot.lane.b32.xlu1 %v2356_v10, %s3643_s20  ;;  %v691_v39 = vpop.f32.mrf.mxu3  ;;  %v2346_v50 = vpack.c.b16 %v2315_v43, %v2314_v40  ;;  %v1408_v61 = vpack.c.bf16 %v1376_v52, %v1376_v52  ;;  %v1409_v62 = vpack.c.bf16 %v1377_v55, %v1377_v55  ;;  %v1778_v19 = vunpack.c.l.b16 %v1089_v14  ;;  %v1037_v21 = vld [vmem:[#allocation2 + $0x48] sm:$0xff] }
  0xd9   : > { %814 = vst.msk [vmem:[#allocation2 + $0x51] sm:$0xff] %vm464_vm1, %v781_v12  ;;  %v735_v46 = vmul.f32 %v3881_v41, %v691_v39  ;;  %v2225_v54 = vunpack.c.l.b16 %v1345_v49  ;;  %v1069_v24 = vpack.c.bf16 %v1037_v21, %v1037_v21  ;;  %v1292_v29 = vld [vmem:[#allocation2 + $0x49] sm:$0xff] }
  0xda   : > { %v2336_v2 = vunpack.c.l.b16 %v1408_v61  ;;  %v2337_v3 = vunpack.c.l.b16 %v1409_v62 }
  0xdb   : > { %v771_v47 = vadd.f32 %v3890_v42, %v735_v46  ;;  %v3990_v0 = vpack.c.b16 %v2225_v54, %v2224_v53  ;;  %v1758_v27 = vunpack.c.l.b16 %v1069_v24 }
  0xdd   : > { %v803_v51 = vmax.f32 %v771_v47, 0.0 }
  0xde   : > { %v1250_v58 = vld [vmem:[#allocation2 + $0x150] sm:$0xff] }
  0xdf   : > { %1936 = vrot.lane.b32.xlu2 %v2244_v9, %s3640_s19  ;;  %1602 = vrot.lane.b32.xlu0 %v2244_v9, %s3636_s28  ;;  %836 = vst.msk [vmem:[#allocation2 + $0x159] sm:$0xff] %vm464_vm1, %v803_v51  ;;  %v1058_v9 = vld [vmem:[#allocation2 + $0x140] sm:$0xff] }
  0xe0   : > { %1824 = vrot.lane.b32.xlu1 %v2132_v56, %s3639_s23  ;;  %v639_v56 = vpop.f32.mrf.mxu0  ;;  %v1356_v5 = vld [vmem:[#allocation2 + $0x4a] sm:$0xff]  ;;  %v1357_v6 = vld [vmem:[#allocation2 + $0x52] sm:$0xff]  ;;  %v1090_v15 = vpack.c.bf16 %v1058_v9, %v1058_v9  ;;  %v694_v31 = vpop.f32.mrf.mxu3 }
  0xe1   : > { %v714_v59 = vmul.f32 %v3881_v41, %v639_v56  ;;  %v1388_v12 = vpack.c.bf16 %v1356_v5, %v1356_v5  ;;  %v1389_v13 = vpack.c.bf16 %v1357_v6, %v1357_v6  ;;  %v1038_v22 = vld [vmem:[#allocation2 + $0x50] sm:$0xff] }
  0xe2   : > { %3409 = vmatmul.msk.bf16.gmra.mxu0 %vm566_vm0, %v552_v60  ;;  %v1779_v20 = vunpack.c.l.b16 %v1090_v15  ;;  %v1070_v25 = vpack.c.bf16 %v1038_v22, %v1038_v22  ;;  %v1293_v30 = vld [vmem:[#allocation2 + $0x51] sm:$0xff]  ;;  %v1282_v60 = vpack.c.bf16 %v1250_v58, %v1250_v58 }
  0xe3   : > { %v750_v63 = vadd.f32 %v3890_v42, %v714_v59  ;;  %v2316_v17 = vunpack.c.l.b16 %v1388_v12  ;;  %v2317_v18 = vunpack.c.l.b16 %v1389_v13  ;;  %v1325_v36 = vpack.c.bf16 %v1293_v30, %v1293_v30 }
  0xe4   : > { %v1798_v26 = vpack.c.b16 %v1779_v20, %v1778_v19  ;;  %v1759_v28 = vunpack.c.l.b16 %v1070_v25  ;;  %v2114_v5 = vunpack.c.l.b16 %v1282_v60 }
  0xe5   : > { %v782_v1 = vmax.f32 %v750_v63, 0.0  ;;  %v4005_v23 = vpack.c.b16 %v2317_v18, %v2316_v17  ;;  %v2205_v40 = vunpack.c.l.b16 %v1325_v36  ;;  %v540_v63 = vld [vmem:[%s3784_s13 + $0xf0] sm:$0xff] }
  0xe6   : > { %v1788_v34 = vpack.c.b16 %v1759_v28, %v1758_v27  ;;  %v1378_v43 = vld [vmem:[#allocation2 + $0x152] sm:$0xff]  ;;  %v1379_v44 = vld [vmem:[#allocation2 + $0x15a] sm:$0xff] }
  0xe7   : > { %2138 = vrot.lane.b32.xlu2 %v2122_v32, %s3641_s24  ;;  %2250 = vrot.lane.b32.xlu0 %v2234_v35, %s3642_s25  ;;  %815 = vst.msk [vmem:[#allocation2 + $0x61] sm:$0xff] %vm464_vm1, %v782_v1  ;;  %v1410_v49 = vpack.c.bf16 %v1378_v43, %v1378_v43  ;;  %v1251_v59 = vld [vmem:[#allocation2 + $0x158] sm:$0xff]  ;;  %v541_v1 = vld [vmem:[%s3784_s13 + $0xf8] sm:$0xff] }
  0xe8   : > { %1714 = vrot.lane.b32.xlu1 %v2356_v10, %s3637_s15  ;;  %v641_v4 = vpop.f32.mrf.mxu0  ;;  %v2357_v10 = vpack.c.b16 %v2337_v3, %v2336_v2  ;;  %v696_v46 = vpop.f32.mrf.mxu3  ;;  %v1283_v61 = vpack.c.bf16 %v1251_v59, %v1251_v59  ;;  %v557_v3 = vpack.c.bf16 %v541_v1, %v540_v63  ;;  %v1314_v27 = vld [vmem:[#allocation2 + $0x151] sm:$0xff]  ;;  %v1315_v28 = vld [vmem:[#allocation2 + $0x159] sm:$0xff] }
  0xe9   : > { %v715_v7 = vmul.f32 %v3881_v41, %v641_v4  ;;  %v737_v48 = vmul.f32 %v3881_v41, %v696_v46  ;;  %v2338_v56 = vunpack.c.l.b16 %v1410_v49 }
  0xea   : > { %3414 = vmatmul.msk.bf16.gmra.mxu3 %vm566_vm0, %v557_v3  ;;  %v2115_v6 = vunpack.c.l.b16 %v1283_v61  ;;  %v3497_v61 = vld [vmem:[%s4835_s4 + $0x10] sm:$0xff] }
  0xeb   : > { %v751_v11 = vadd.f32 %v3890_v42, %v715_v7  ;;  %v773_v53 = vadd.f32 %v3890_v42, %v737_v48 }
  0xed   : > { %v783_v16 = vmax.f32 %v751_v11, 0.0  ;;  %v805_v55 = vmax.f32 %v773_v53, 0.0  ;;  %v2134_v11 = vpack.c.b16 %v2115_v6, %v2114_v5 }
  0xee   : > { %v1230_v7 = vld [vmem:[#allocation2 + $0x60] sm:$0xff] }
  0xef   : > { %1916 = vrot.lane.b32.xlu2 %v2234_v35, %s3640_s19  ;;  %2028 = vrot.lane.b32.xlu0 %v2346_v50, %s3638_s17  ;;  %816 = vst.msk [vmem:[#allocation2 + $0x69] sm:$0xff] %vm464_vm1, %v783_v16  ;;  %v1262_v12 = vpack.c.bf16 %v1230_v7, %v1230_v7  ;;  %v4040_v16 = vpop.permute.xlu0 %1578  ;;  %v1103_v25 = vld [vmem:[#allocation2 + $0x61] sm:$0xff] }
  0xf0   : > { %2362 = vrot.lane.b32.xlu1 %v2346_v50, %s3643_s20  ;;  %v644_v45 = vpop.f32.mrf.mxu0  ;;  %838 = vst.msk [vmem:[#allocation2 + $0x171] sm:$0xff] %vm464_vm1, %v805_v55  ;;  %v3496_v7 = vld [vmem:[%s4835_s4 + $0x8] sm:$0xff] }
  0xf1   : > { %v716_v47 = vmul.f32 %v3881_v41, %v644_v45  ;;  %v2094_v18 = vunpack.c.l.b16 %v1262_v12 }
  0xf3   : > { %v752_v52 = vadd.f32 %v3890_v42, %v716_v47 }
  0xf5   : > { %v784_v54 = vmax.f32 %v752_v52, 0.0 }
  0xf6   : > { %v1231_v8 = vld [vmem:[#allocation2 + $0x68] sm:$0xff] }
  0xf7   : > { %1694 = vrot.lane.b32.xlu2 %v2346_v50, %s3637_s15  ;;  %2272 = vrot.lane.b32.xlu0 %v3990_v0, %s3642_s25  ;;  %v1411_v50 = vpack.c.bf16 %v1379_v44, %v1379_v44  ;;  %817 = vst.msk [vmem:[#allocation2 + $0x79] sm:$0xff] %vm464_vm1, %v784_v54  ;;  %v1263_v13 = vpack.c.bf16 %v1231_v8, %v1231_v8  ;;  %v1358_v20 = vld [vmem:[#allocation2 + $0x62] sm:$0xff]  ;;  %v1359_v21 = vld [vmem:[#allocation2 + $0x6a] sm:$0xff]  ;;  %v4056_v47 = vpop.permute.xlu0 %1690 }
  0xf8   : > { %1804 = vrot.lane.b32.xlu1 %v2122_v32, %s3639_s23  ;;  %v736_v32 = vmul.f32 %v3881_v41, %v694_v31  ;;  %v646_v62 = vpop.f32.mrf.mxu0  ;;  %v1390_v30 = vpack.c.bf16 %v1358_v20, %v1358_v20  ;;  %v1391_v31 = vpack.c.bf16 %v1359_v21, %v1359_v21 }
  0xf9   : > { %v2339_v57 = vunpack.c.l.b16 %v1411_v50  ;;  %v2095_v19 = vunpack.c.l.b16 %v1263_v13 }
  0xfa   : > { %v772_v37 = vadd.f32 %v3890_v42, %v736_v32  ;;  %v2318_v45 = vunpack.c.l.b16 %v1390_v30  ;;  %v2319_v46 = vunpack.c.l.b16 %v1391_v31 }
  0xfb   : > { %v2358_v2 = vpack.c.b16 %v2339_v57, %v2338_v56  ;;  %v3498_v56 = vld [vmem:[%s4835_s4 + $0x18] sm:$0xff] }
  0xfc   : > { %v804_v38 = vmax.f32 %v772_v37, 0.0 }
  0xfe   : > { %837 = vst.msk [vmem:[#allocation2 + $0x169] sm:$0xff] %vm464_vm1, %v804_v38  ;;  %v1296_v21 = vld [vmem:[#allocation2 + $0x79] sm:$0xff] }
  0xff   : > { %2384 = vrot.lane.b32.xlu2 %v2357_v10, %s3643_s20  ;;  %1938 = vrot.lane.b32.xlu0 %v3990_v0, %s3640_s19  ;;  %v1328_v31 = vpack.c.bf16 %v1296_v21, %v1296_v21 }
 0x100   : > { %1582 = vrot.lane.b32.xlu1 %v2234_v35, %s3636_s28  ;;  %v1324_v35 = vpack.c.bf16 %v1292_v29, %v1292_v29  ;;  %v649_v14 = vpop.f32.mrf.mxu0  ;;  %v2124_v29 = vpack.c.b16 %v2095_v19, %v2094_v18 }
 0x101   : > { %v718_v15 = vmul.f32 %v3881_v41, %v649_v14 }
 0x102   : > { %v2204_v39 = vunpack.c.l.b16 %v1324_v35  ;;  %v1135_v35 = vpack.c.bf16 %v1103_v25, %v1103_v25 }
 0x103   : > { %v754_v17 = vadd.f32 %v3890_v42, %v718_v15 }
 0x104   : > { %v2235_v51 = vpack.c.b16 %v2205_v40, %v2204_v39  ;;  %v1346_v39 = vpack.c.bf16 %v1314_v27, %v1314_v27  ;;  %v1347_v40 = vpack.c.bf16 %v1315_v28, %v1315_v28  ;;  %v1872_v48 = vunpack.c.l.b16 %v1135_v35  ;;  %v842_v28 = vld [vmem:[#allocation2 + $0x8] sm:$0xff] }
 0x105   : > { %v786_v22 = vmax.f32 %v754_v17, 0.0  ;;  %v1316_v15 = vld [vmem:[#allocation2 + $0x169] sm:$0xff]  ;;  %v1317_v17 = vld [vmem:[#allocation2 + $0x171] sm:$0xff] }
 0x106   : > { %v2226_v53 = vunpack.c.l.b16 %v1346_v39  ;;  %v2227_v54 = vunpack.c.l.b16 %v1347_v40  ;;  %v1348_v25 = vpack.c.bf16 %v1316_v15, %v1316_v15  ;;  %v2208_v40 = vunpack.c.l.b16 %v1328_v31 }
 0x107   : > { %1826 = vrot.lane.b32.xlu2 %v1798_v26, %s3639_s23  ;;  %2364 = vrot.lane.b32.xlu0 %v4005_v23, %s3643_s20  ;;  %819 = vst.msk [vmem:[#allocation2 + $0x91] sm:$0xff] %vm464_vm1, %v786_v22 }
 0x108   : > { %2160 = vrot.lane.b32.xlu1 %v1798_v26, %s3641_s24  ;;  %v1104_v26 = vld [vmem:[#allocation2 + $0x69] sm:$0xff]  ;;  %v651_v32 = vpop.f32.mrf.mxu0  ;;  %v2246_v59 = vpack.c.b16 %v2227_v54, %v2226_v53 }
 0x109   : > { %v1136_v36 = vpack.c.bf16 %v1104_v26, %v1104_v26  ;;  %v719_v37 = vmul.f32 %v3881_v41, %v651_v32  ;;  %v1349_v26 = vpack.c.bf16 %v1317_v17, %v1317_v17 }
 0x10b   : > { %v755_v43 = vadd.f32 %v3890_v42, %v719_v37  ;;  %v1873_v49 = vunpack.c.l.b16 %v1136_v36  ;;  %v874_v36 = vpack.c.bf16 %v842_v28, %v842_v28  ;;  %v2229_v39 = vunpack.c.l.b16 %v1349_v26 }
 0x10d   : > { %v787_v50 = vmax.f32 %v755_v43, 0.0  ;;  %v1901_v57 = vpack.c.b16 %v1873_v49, %v1872_v48  ;;  %v1232_v48 = vld [vmem:[#allocation2 + $0x78] sm:$0xff]  ;;  %v1451_v54 = vunpack.c.l.b16 %v874_v36 }
 0x10f   : > { %1716 = vrot.lane.b32.xlu2 %v2357_v10, %s3637_s15  ;;  %1806 = vrot.lane.b32.xlu0 %v1788_v34, %s3639_s23  ;;  %820 = vst.msk [vmem:[#allocation2 + $0x99] sm:$0xff] %vm464_vm1, %v787_v50 }
 0x110   : > { %2050 = vrot.lane.b32.xlu1 %v2357_v10, %s3638_s17  ;;  %v654_v55 = vpop.f32.mrf.mxu0 }
 0x111   : > { %v720_v58 = vmul.f32 %v3881_v41, %v654_v55 }
 0x113   : > { %v756_v60 = vadd.f32 %v3890_v42, %v720_v58 }
 0x116   : > { %v1299_v31 = vld [vmem:[#allocation2 + $0x99] sm:$0xff] }
 0x117   : > { %2252 = vrot.lane.b32.xlu2 %v2235_v51, %s3642_s25  ;;  %1584 = vrot.lane.b32.xlu0 %v2235_v51, %s3636_s28 }
 0x118   : > { %1604 = vrot.lane.b32.xlu1 %v3990_v0, %s3636_s28  ;;  %v717_v0 = vmul.f32 %v3881_v41, %v646_v62  ;;  %v788_v62 = vmax.f32 %v756_v60, 0.0  ;;  %v656_v6 = vpop.f32.mrf.mxu0  ;;  %v866_v60 = vld [vmem:[#allocation2 + $0x128] sm:$0xff] }
 0x11a   : > { %v753_v4 = vadd.f32 %v3890_v42, %v717_v0  ;;  %v1253_v0 = vld [vmem:[#allocation2 + $0x170] sm:$0xff]  ;;  %821 = vst.msk [vmem:[#allocation2 + $0xa9] sm:$0xff] %vm464_vm1, %v788_v62  ;;  %v1264_v62 = vpack.c.bf16 %v1232_v48, %v1232_v48  ;;  %v1331_v48 = vpack.c.bf16 %v1299_v31, %v1299_v31 }
 0x11c   : > { %v785_v9 = vmax.f32 %v753_v4, 0.0 }
 0x11e   : > { %818 = vst.msk [vmem:[#allocation2 + $0x81] sm:$0xff] %vm464_vm1, %v785_v9  ;;  %v1285_v9 = vpack.c.bf16 %v1253_v0, %v1253_v0 }
 0x11f   : > { %2030 = vrot.lane.b32.xlu2 %v4005_v23, %s3638_s17  ;;  %2386 = vrot.lane.b32.xlu0 %v2358_v2, %s3643_s20 }
 0x120   : > { %2140 = vrot.lane.b32.xlu1 %v1788_v34, %s3641_s24  ;;  %v2680_v34 = vld [vmem:[%s4835_s4 + $0x20] sm:$0xf]  ;;  %v2117_v14 = vunpack.c.l.b16 %v1285_v9  ;;  %v659_v27 = vpop.f32.mrf.mxu0 }
 0x121   : > { %v4036_v10 = vpop.permute.xlu2 %2026  ;;  %v2698_v38 = vunpack.c.l.b16 %v2680_v34  ;;  %v722_v34 = vmul.f32 %v3881_v41, %v659_v27 }
 0x123   : > { %v2703_v44 = vpack.c.b16 %v2698_v38, %v2698_v38  ;;  %v758_v35 = vadd.f32 %v3890_v42, %v722_v34  ;;  %v2228_v38 = vunpack.c.l.b16 %v1348_v25 }
 0x125   : > { %v1297_v22 = vld [vmem:[#allocation2 + $0x81] sm:$0xff] }
 0x126   : > { %v1329_v32 = vpack.c.bf16 %v1297_v22, %v1297_v22  ;;  %v1233_v50 = vld [vmem:[#allocation2 + $0x80] sm:$0xff] }
 0x127   : > { %2162 = vrot.lane.b32.xlu2 %v2134_v11, %s3641_s24  ;;  %1828 = vrot.lane.b32.xlu0 %v2134_v11, %s3639_s23  ;;  %v721_v11 = vmul.f32 %v3881_v41, %v656_v6  ;;  %v1361_v53 = vld [vmem:[#allocation2 + $0x82] sm:$0xff] }
 0x128   : > { %1918 = vrot.lane.b32.xlu1 %v2235_v51, %s3640_s19  ;;  %v2743_v51 = vsel %vm2741_vm4, %v2703_v44, 0  ;;  %v2209_v43 = vunpack.c.l.b16 %v1329_v32  ;;  %v790_v44 = vmax.f32 %v758_v35, 0.0 }
 0x129   : > { %v1581_v24 = vpop.permute.xlu2 %1580  ;;  %2748 = vmatpush.bf16.msra.mxu1 %v2743_v51  ;;  %3501 = vmatpush.bf16.msra.mxu2 %v2743_v51  ;;  %v757_v12 = vadd.f32 %v3890_v42, %v721_v11  ;;  %v1360_v51 = vld [vmem:[#allocation2 + $0x7a] sm:$0xff] }
 0x12a   : > { %v2399_v3 = vsel %vm464_vm1, %v3940_v33, %v1581_v24  ;;  %v3495_v33 = vld [vmem:[%s4835_s4] sm:$0xff]  ;;  %823 = vst.msk [vmem:[#allocation2 + $0xc1] sm:$0xff] %vm464_vm1, %v790_v44  ;;  %v4117_v58 = vpack.c.b16 %v2209_v43, %v2208_v40  ;;  %v1392_v0 = vpack.c.bf16 %v1360_v51, %v1360_v51 }
 0x12b   : > { %v789_v18 = vmax.f32 %v757_v12, 0.0 }
 0x12d   : > { %2749 = vmatpush.bf16.msra.mxu1 %v3498_v56  ;;  %3502 = vmatpush.bf16.msra.mxu2 %v3498_v56  ;;  %822 = vst.msk [vmem:[#allocation2 + $0xb1] sm:$0xff] %vm464_vm1, %v789_v18  ;;  %v2247_v56 = vpack.c.b16 %v2229_v39, %v2228_v38  ;;  %v1363_v38 = vld [vmem:[#allocation2 + $0x9a] sm:$0xff] }
 0x12e   : > { %v1395_v51 = vpack.c.bf16 %v1363_v38, %v1363_v38 }
 0x12f   : > { %2052 = vrot.lane.b32.xlu2 %v2358_v2, %s3638_s17  ;;  %2142 = vrot.lane.b32.xlu0 %v2124_v29, %s3641_s24  ;;  %v1252_v2 = vld [vmem:[#allocation2 + $0x168] sm:$0xff] }
 0x130   : > { %1696 = vrot.lane.b32.xlu1 %v4005_v23, %s3637_s15  ;;  %v4062_v23 = vpack.c.b16 %v2319_v46, %v2318_v45  ;;  %v1284_v8 = vpack.c.bf16 %v1252_v2, %v1252_v2  ;;  %v1265_v2 = vpack.c.bf16 %v1233_v50, %v1233_v50 }
 0x131   : > { %v4059_v52 = vpop.permute.xlu2 %2270  ;;  %2750 = vmatpush.bf16.msra.mxu1 %v3497_v61  ;;  %3503 = vmatpush.bf16.msra.mxu2 %v3497_v61 }
 0x132   : > { %v2116_v13 = vunpack.c.l.b16 %v1284_v8  ;;  %v898_v8 = vpack.c.bf16 %v866_v60, %v866_v60 }
 0x134   : > { %v2135_v30 = vpack.c.b16 %v2117_v14, %v2116_v13  ;;  %v2097_v13 = vunpack.c.l.b16 %v1265_v2  ;;  %v2320_v14 = vunpack.c.l.b16 %v1392_v0  ;;  %v1475_v21 = vunpack.c.l.b16 %v898_v8  ;;  %v845_v8 = vld [vmem:[#allocation2 + $0x30] sm:$0xff] }
 0x135   : > { %2751 = vmatpush.bf16.msra.mxu1 %v3496_v7  ;;  %3504 = vmatpush.bf16.msra.mxu2 %v3496_v7 }
 0x137   : > { %2366 = vrot.lane.b32.xlu2 %v4062_v23, %s3643_s20  ;;  %1920 = vrot.lane.b32.xlu0 %v1901_v57, %s3640_s19 }
 0x138   : > { %2274 = vrot.lane.b32.xlu1 %v2246_v59, %s3642_s25 }
 0x139   : > { %v4076_v63 = vpop.permute.xlu2 %1936  ;;  %v1693_v4 = vpop.permute.xlu0 %1692  ;;  %2752 = vmatpush.bf16.msra.mxu1 %v3495_v33  ;;  %3505 = vmatpush.bf16.msra.mxu2 %v3495_v33  ;;  %v2096_v33 = vunpack.c.l.b16 %v1264_v62 }
 0x13a   : > { %v4078_v1 = vpop.permute.xlu1 %1802  ;;  %v4084_v5 = vsel %vm566_vm0, %v2399_v3, %v1693_v4  ;;  %v1393_v3 = vpack.c.bf16 %v1361_v53, %v1361_v53 }
 0x13b   : > { %v2125_v26 = vpack.c.b16 %v2097_v13, %v2096_v33 }
 0x13c   : > { %v2321_v15 = vunpack.c.l.b16 %v1393_v3  ;;  %v1043_v3 = vld [vmem:[#allocation2 + $0x90] sm:$0xff] }
 0x13d   : > { %v1075_v13 = vpack.c.bf16 %v1043_v3, %v1043_v3 }
 0x13e   : > { %v2349_v27 = vpack.c.b16 %v2321_v15, %v2320_v14  ;;  %v846_v15 = vld [vmem:[#allocation2 + $0x38] sm:$0xff] }
 0x13f   : > { %1808 = vrot.lane.b32.xlu2 %v2124_v29, %s3639_s23  ;;  %1698 = vrot.lane.b32.xlu0 %v4062_v23, %s3637_s15  ;;  %v841_v29 = vld [vmem:[#allocation2] sm:$0xff] }
 0x140   : > { %1940 = vrot.lane.b32.xlu1 %v2246_v59, %s3640_s19  ;;  %v873_v37 = vpack.c.bf16 %v841_v29, %v841_v29  ;;  %v865_v59 = vld [vmem:[#allocation2 + $0x120] sm:$0xff] }
 0x141   : > { %v4098_v19 = vpop.permute.xlu2 %2138  ;;  %v4102_v24 = vpop.permute.xlu0 %2158  ;;  %v897_v7 = vpack.c.bf16 %v865_v59, %v865_v59 }
 0x142   : > { %v4100_v20 = vpop.permute.xlu1 %1914  ;;  %v1450_v55 = vunpack.c.l.b16 %v873_v37  ;;  %v1362_v37 = vld [vmem:[#allocation2 + $0x92] sm:$0xff] }
 0x143   : > { %v1474_v18 = vunpack.c.l.b16 %v897_v7 }
 0x144   : > { %v1482_v6 = vpack.c.b16 %v1451_v54, %v1450_v55 }
 0x147   : > { %1586 = vrot.lane.b32.xlu2 %v1901_v57, %s3636_s28  ;;  %2164 = vrot.lane.b32.xlu0 %v2135_v30, %s3641_s24  ;;  %v1494_v30 = vpack.c.b16 %v1475_v21, %v1474_v18  ;;  %v877_v18 = vpack.c.bf16 %v845_v8, %v845_v8  ;;  %v878_v21 = vpack.c.bf16 %v846_v15, %v846_v15  ;;  %v867_v15 = vld [vmem:[#allocation2 + $0x138] sm:$0xff] }
 0x148   : > { %2254 = vrot.lane.b32.xlu1 %v1901_v57, %s3642_s25  ;;  %v661_v57 = vpop.f32.mrf.mxu0 }
 0x149   : > { %v4110_v45 = vpop.permute.xlu2 %1916  ;;  %v4114_v49 = vpop.permute.xlu0 %2048  ;;  %v723_v61 = vmul.f32 %v3881_v41, %v661_v57  ;;  %v1454_v31 = vunpack.c.l.b16 %v877_v18 }
 0x14a   : > { %v4112_v46 = vpop.permute.xlu1 %2382 }
 0x14b   : > { %v759_v4 = vadd.f32 %v3890_v42, %v723_v61 }
 0x14d   : > { %v791_v9 = vmax.f32 %v759_v4, 0.0  ;;  %v1044_v4 = vld [vmem:[#allocation2 + $0x98] sm:$0xff] }
 0x14e   : > { %v1076_v14 = vpack.c.bf16 %v1044_v4, %v1044_v4  ;;  %v1173_v4 = vld [vmem:[#allocation2 + $0xaa] sm:$0xff] }
 0x14f   : > { %2276 = vrot.lane.b32.xlu2 %v2247_v56, %s3642_s25  ;;  %2256 = vrot.lane.b32.xlu0 %v4117_v58, %s3642_s25  ;;  %824 = vst.msk [vmem:[#allocation2 + $0xc9] sm:$0xff] %vm464_vm1, %v791_v9  ;;  %v2211_v56 = vunpack.c.l.b16 %v1331_v48  ;;  %v4171_v9 = vld [vmem:[%s4833_s2] ss:$0 sm:$0xff] }
 0x150   : > { %2032 = vrot.lane.b32.xlu1 %v4062_v23, %s3638_s17  ;;  %v2396_v23 = vsel %vm464_vm1, %v1482_v6, %v4040_v16  ;;  %v664_v22 = vpop.f32.mrf.mxu0  ;;  %v1298_v16 = vld [vmem:[#allocation2 + $0x91] sm:$0xff] }
 0x151   : > { %v4126_v11 = vpop.permute.xlu2 %1694  ;;  %v1603_v17 = vpop.permute.xlu0 %1602  ;;  %v724_v25 = vmul.f32 %v3881_v41, %v664_v22  ;;  %v2443_v28 = vsel %vm566_vm0, %v2396_v23, %v4056_v47  ;;  %v1330_v44 = vpack.c.bf16 %v1298_v16, %v1298_v16 }
 0x152   : > { %v4128_v12 = vpop.permute.xlu1 %1824  ;;  %v2476_v34 = vsel %vm2474_vm5, %v2443_v28, %v4078_v1  ;;  %v2432_v35 = vsel %vm464_vm1, %v1494_v30, %v1603_v17  ;;  %v1394_v1 = vpack.c.bf16 %v1362_v37, %v1362_v37  ;;  %v4177_v17 = vld [vmem:[%s4834_s3] ss:$0 sm:$0xff]  ;;  %v1765_v28 = vunpack.c.l.b16 %v1076_v14  ;;  %v1301_v30 = vld [vmem:[#allocation2 + $0xb1] sm:$0xff] }
 0x153   : > { %v760_v29 = vadd.f32 %v3890_v42, %v724_v25  ;;  %v2509_v39 = vsel %vm2507_vm6, %v2476_v34, %v4100_v20  ;;  %v2210_v20 = vunpack.c.l.b16 %v1330_v44 }
 0x154   : > { %v2542_v54 = vsel %vm2540_vm7, %v2509_v39, %v4036_v10  ;;  %v2323_v10 = vunpack.c.l.b16 %v1395_v51 }
 0x155   : > { %v792_v32 = vmax.f32 %v760_v29, 0.0  ;;  %v2575_v57 = vsel %vm2573_vm8, %v2542_v54, %v4098_v19  ;;  %v2238_v19 = vpack.c.b16 %v2211_v56, %v2210_v20  ;;  %v1300_v29 = vld [vmem:[#allocation2 + $0xa9] sm:$0xff] }
 0x156   : > { %v1332_v34 = vpack.c.bf16 %v1300_v29, %v1300_v29  ;;  %v1237_v54 = vld [vmem:[#allocation2 + $0xb0] sm:$0xff] }
 0x157   : > { %2144 = vrot.lane.b32.xlu2 %v2125_v26, %s3641_s24  ;;  %2034 = vrot.lane.b32.xlu0 %v2349_v27, %s3638_s17  ;;  %825 = vst.msk [vmem:[#allocation2 + $0xd9] sm:$0xff] %vm464_vm1, %v792_v32  ;;  %v1455_v32 = vunpack.c.l.b16 %v878_v21  ;;  %v899_v21 = vpack.c.bf16 %v867_v15, %v867_v15 }
 0x158   : > { %2368 = vrot.lane.b32.xlu1 %v2349_v27, %s3643_s20  ;;  %v666_v50 = vpop.f32.mrf.mxu0 }
 0x159   : > { %v4143_v47 = vpop.permute.xlu2 %2384  ;;  %v2251_v43 = vpop.permute.xlu0 %2250  ;;  %v725_v53 = vmul.f32 %v3881_v41, %v666_v50  ;;  %v2322_v41 = vunpack.c.l.b16 %v1394_v1  ;;  %v1484_v39 = vpack.c.b16 %v1455_v32, %v1454_v31 }
 0x15a   : > { %v1715_v36 = vpop.permute.xlu1 %1714  ;;  %v2608_v60 = vsel %vm2606_vm9, %v2575_v57, %v2251_v43 }
 0x15b   : > { %v2467_v40 = vsel %vm566_vm0, %v2432_v35, %v1715_v36  ;;  %v761_v55 = vadd.f32 %v3890_v42, %v725_v53  ;;  %v4166_v7 = vpack.c.b16 %v2323_v10, %v2322_v41  ;;  %v1333_v35 = vpack.c.bf16 %v1301_v30, %v1301_v30  ;;  %v1236_v53 = vld [vmem:[#allocation2 + $0xa8] sm:$0xff] }
 0x15c   : > { %v1268_v10 = vpack.c.bf16 %v1236_v53, %v1236_v53 }
 0x15d   : > { %v793_v59 = vmax.f32 %v761_v55, 0.0  ;;  %v2213_v43 = vunpack.c.l.b16 %v1333_v35  ;;  %v1239_v35 = vld [vmem:[#allocation2 + $0xc8] sm:$0xff] }
 0x15f   : > { %1922 = vrot.lane.b32.xlu2 %v4117_v58, %s3640_s19  ;;  %1700 = vrot.lane.b32.xlu0 %v2349_v27, %s3637_s15  ;;  %826 = vst.msk [vmem:[#allocation2 + $0xe1] sm:$0xff] %vm464_vm1, %v793_v59  ;;  %v1764_v27 = vunpack.c.l.b16 %v1075_v13  ;;  %v1269_v59 = vpack.c.bf16 %v1237_v54, %v1237_v54  ;;  %v1205_v13 = vpack.c.bf16 %v1173_v4, %v1173_v4 }
 0x160   : > { %1810 = vrot.lane.b32.xlu1 %v2125_v26, %s3639_s23  ;;  %v669_v6 = vpop.f32.mrf.mxu0 }
 0x161   : > { %v1827_v42 = vpop.permute.xlu2 %1826  ;;  %v4161_v2 = vpop.permute.xlu0 %2028  ;;  %v726_v33 = vmul.f32 %v4171_v9, %v669_v6  ;;  %v4193_v37 = vpack.c.b16 %v1765_v28, %v1764_v27  ;;  %v1174_v6 = vld [vmem:[#allocation2 + $0xb2] sm:$0xff]  ;;  %v1990_v30 = vunpack.c.l.b16 %v1205_v13 }
 0x162   : > { %v2363_v61 = vpop.permute.xlu1 %2362  ;;  %v2500_v62 = vsel %vm2474_vm5, %v2467_v40, %v1827_v42  ;;  %v2212_v40 = vunpack.c.l.b16 %v1332_v34  ;;  %v1206_v14 = vpack.c.bf16 %v1174_v6, %v1174_v6  ;;  %v1238_v34 = vld [vmem:[#allocation2 + $0xc0] sm:$0xff] }
 0x163   : > { %v2641_v0 = vsel %vm2639_vm10, %v2608_v60, %v2363_v61  ;;  %v762_v23 = vadd.f32 %v4177_v17, %v726_v33 }
 0x164   : > { %3431 = vmatmul.msk.bf16.vlgmr.msra.gmra.mxu1 %vm2708_vm11, %v2641_v0  ;;  %v4210_v57 = vpack.c.b16 %v2213_v43, %v2212_v40  ;;  %v2101_v0 = vunpack.c.l.b16 %v1269_v59  ;;  %v1991_v31 = vunpack.c.l.b16 %v1206_v14  ;;  %v1270_v40 = vpack.c.bf16 %v1238_v34, %v1238_v34  ;;  %v1303_v59 = vld [vmem:[#allocation2 + $0xc9] sm:$0xff] }
 0x165   : > { %v794_v22 = vmax.f32 %v762_v23, 0.0  ;;  %v868_v23 = vld [vmem:[#allocation2 + $0x140] sm:$0xff]  ;;  %v1271_v43 = vpack.c.bf16 %v1239_v35, %v1239_v35  ;;  %v1335_v6 = vpack.c.bf16 %v1303_v59, %v1303_v59 }
 0x166   : > { %v1241_v59 = vld [vmem:[#allocation2 + $0xe0] sm:$0xff] }
 0x167   : > { %2258 = vrot.lane.b32.xlu2 %v2238_v19, %s3642_s25  ;;  %2370 = vrot.lane.b32.xlu0 %v4166_v7, %s3643_s20  ;;  %827 = vst.msk [vmem:[#allocation2 + $0xf1] sm:$0xff] %vm464_vm1, %v794_v22  ;;  %v900_v22 = vpack.c.bf16 %v868_v23, %v868_v23  ;;  %v2215_v15 = vunpack.c.l.b16 %v1335_v6 }
 0x168   : > { %1588 = vrot.lane.b32.xlu1 %v4117_v58, %s3636_s28  ;;  %v671_v58 = vpop.f32.mrf.mxu0 }
 0x169   : > { %v4185_v25 = vpop.permute.xlu2 %1716  ;;  %v4189_v16 = vpop.permute.xlu0 %2272  ;;  %v727_v36 = vmul.f32 %v4171_v9, %v671_v58 }
 0x16a   : > { %v4187_v26 = vpop.permute.xlu1 %1804 }
 0x16b   : > { %v763_v38 = vadd.f32 %v4177_v17, %v727_v36 }
 0x16d   : > { %v795_v44 = vmax.f32 %v763_v38, 0.0  ;;  %v1477_v38 = vunpack.c.l.b16 %v900_v22 }
 0x16f   : > { %1812 = vrot.lane.b32.xlu2 %v4193_v37, %s3639_s23  ;;  %1924 = vrot.lane.b32.xlu0 %v2238_v19, %s3640_s19  ;;  %828 = vst.msk [vmem:[#allocation2 + $0xf9] sm:$0xff] %vm464_vm1, %v795_v44 }
 0x170   : > { %2146 = vrot.lane.b32.xlu1 %v4193_v37, %s3641_s24  ;;  %v674_v56 = vpop.f32.mrf.mxu0 }
 0x171   : > { %v4201_v48 = vpop.permute.xlu2 %2252  ;;  %v1939_v51 = vpop.permute.xlu0 %1938  ;;  %v728_v41 = vmul.f32 %v4171_v9, %v674_v56  ;;  %v2103_v56 = vunpack.c.l.b16 %v1271_v43 }
 0x172   : > { %v1583_v50 = vpop.permute.xlu1 %1582  ;;  %v2533_v55 = vsel %vm2507_vm6, %v2500_v62, %v1939_v51  ;;  %v2100_v62 = vunpack.c.l.b16 %v1268_v10  ;;  %v1366_v51 = vld [vmem:[#allocation2 + $0xc2] sm:$0xff] }
 0x173   : > { %v2402_v1 = vsel %vm464_vm1, %v1484_v39, %v1583_v50  ;;  %v764_v60 = vadd.f32 %v4177_v17, %v728_v41  ;;  %v2016_v39 = vpack.c.b16 %v1991_v31, %v1990_v30  ;;  %v1367_v41 = vld [vmem:[#allocation2 + $0xca] sm:$0xff]  ;;  %v1302_v10 = vld [vmem:[#allocation2 + $0xc1] sm:$0xff] }
 0x174   : > { %v4208_v20 = vsel %vm566_vm0, %v2402_v1, %v4126_v11  ;;  %v2127_v33 = vpack.c.b16 %v2101_v0, %v2100_v62  ;;  %v1398_v62 = vpack.c.bf16 %v1366_v51, %v1366_v51  ;;  %v1399_v0 = vpack.c.bf16 %v1367_v41, %v1367_v41  ;;  %v1369_v31 = vld [vmem:[#allocation2 + $0xe2] sm:$0xff] }
 0x175   : > { %v796_v42 = vmax.f32 %v764_v60, 0.0  ;;  %v2478_v60 = vsel %vm2474_vm5, %v4084_v5, %v4187_v26  ;;  %v1334_v4 = vpack.c.bf16 %v1302_v10, %v1302_v10 }
 0x176   : > { %v2327_v13 = vunpack.c.l.b16 %v1399_v0  ;;  %v989_v41 = vld [vmem:[#allocation2 + $0xf2] sm:$0xff]  ;;  %v990_v10 = vld [vmem:[#allocation2 + $0xfa] sm:$0xff] }
 0x177   : > { %1590 = vrot.lane.b32.xlu2 %v2238_v19, %s3636_s28  ;;  %2260 = vrot.lane.b32.xlu0 %v4210_v57, %s3642_s25  ;;  %829 = vst.msk [vmem:[#allocation2 + $0x109] sm:$0xff] %vm464_vm1, %v796_v42  ;;  %v2214_v14 = vunpack.c.l.b16 %v1334_v4 }
 0x178   : > { %2036 = vrot.lane.b32.xlu1 %v4166_v7, %s3638_s17  ;;  %v676_v19 = vpop.f32.mrf.mxu0 }
 0x179   : > { %v4219_v11 = vpop.permute.xlu2 %2030  ;;  %v4223_v3 = vpop.permute.xlu0 %2364  ;;  %v729_v8 = vmul.f32 %v4171_v9, %v676_v19  ;;  %v2511_v19 = vsel %vm2507_vm6, %v2478_v60, %v4110_v45  ;;  %v2240_v22 = vpack.c.b16 %v2215_v15, %v2214_v14 }
 0x17a   : > { %v4221_v61 = vpop.permute.xlu1 %2160  ;;  %v699_v60 = vpop.f32.mrf.mxu3 }
 0x17b   : > { %v765_v18 = vadd.f32 %v4177_v17, %v729_v8  ;;  %v738_v4 = vmul.f32 %v4171_v9, %v699_v60  ;;  %v848_v60 = vld [vmem:[#allocation2 + $0x50] sm:$0xff] }
 0x17d   : > { %v797_v27 = vmax.f32 %v765_v18, 0.0 }
 0x17f   : > { %2148 = vrot.lane.b32.xlu2 %v2127_v33, %s3641_s24  ;;  %1814 = vrot.lane.b32.xlu0 %v2127_v33, %s3639_s23  ;;  %830 = vst.msk [vmem:[#allocation2 + $0x111] sm:$0xff] %vm464_vm1, %v797_v27  ;;  %v2326_v33 = vunpack.c.l.b16 %v1398_v62 }
 0x180   : > { %1702 = vrot.lane.b32.xlu1 %v4166_v7, %s3637_s15  ;;  %v1476_v7 = vunpack.c.l.b16 %v899_v21 }
 0x181   : > { %v2163_v28 = vpop.permute.xlu2 %2162  ;;  %v4233_v32 = vpop.permute.xlu0 %1806  ;;  %v2352_v21 = vpack.c.b16 %v2327_v13, %v2326_v33  ;;  %v1273_v33 = vpack.c.bf16 %v1241_v59, %v1241_v59 }
 0x182   : > { %v2051_v29 = vpop.permute.xlu1 %2050  ;;  %v1495_v44 = vpack.c.b16 %v1477_v38, %v1476_v7  ;;  %v1401_v7 = vpack.c.bf16 %v1369_v31, %v1369_v31 }
 0x183   : > { %v2566_v58 = vsel %vm2540_vm7, %v2533_v55, %v2051_v29  ;;  %v2102_v55 = vunpack.c.l.b16 %v1270_v40  ;;  %v1304_v29 = vld [vmem:[#allocation2 + $0xd9] sm:$0xff] }
 0x184   : > { %v4237_v36 = vsel %vm2573_vm8, %v2566_v58, %v2163_v28  ;;  %v1336_v58 = vpack.c.bf16 %v1304_v29, %v1304_v29 }
 0x185   : > { %v2128_v8 = vpack.c.b16 %v2103_v56, %v2102_v55  ;;  %v2329_v56 = vunpack.c.l.b16 %v1401_v7 }
 0x186   : > { %v2216_v40 = vunpack.c.l.b16 %v1336_v58  ;;  %v1054_v51 = vld [vmem:[#allocation2 + $0x110] sm:$0xff] }
 0x187   : > { %2038 = vrot.lane.b32.xlu2 %v2016_v39, %s3638_s17  ;;  %1592 = vrot.lane.b32.xlu0 %v4210_v57, %s3636_s28  ;;  %v1086_v0 = vpack.c.bf16 %v1054_v51, %v1054_v51  ;;  %v1181_v15 = vld [vmem:[#allocation2 + $0x10a] sm:$0xff] }
 0x188   : > { %2372 = vrot.lane.b32.xlu1 %v2016_v39, %s3643_s20 }
 0x189   : > { %v4243_v50 = vpop.permute.xlu2 %2052  ;;  %v4246_v54 = vpop.permute.xlu0 %1584  ;;  %v1775_v14 = vunpack.c.l.b16 %v1086_v0 }
 0x18a   : > { %v1605_v1 = vpop.permute.xlu1 %1604 }
 0x18b   : > { %v2435_v53 = vsel %vm464_vm1, %v1495_v44, %v1605_v1  ;;  %v1240_v44 = vld [vmem:[#allocation2 + $0xd8] sm:$0xff]  ;;  %v1053_v1 = vld [vmem:[#allocation2 + $0x108] sm:$0xff] }
 0x18c   : > { %v2469_v42 = vsel %vm566_vm0, %v2435_v53, %v4185_v25  ;;  %v2544_v25 = vsel %vm2540_vm7, %v2511_v19, %v4161_v2  ;;  %v1085_v62 = vpack.c.bf16 %v1053_v1, %v1053_v1  ;;  %v1021_v19 = vpack.c.bf16 %v989_v41, %v989_v41 }
 0x18e   : > { %v1774_v13 = vunpack.c.l.b16 %v1085_v62 }
 0x18f   : > { %1704 = vrot.lane.b32.xlu2 %v2016_v39, %s3637_s15  ;;  %2150 = vrot.lane.b32.xlu0 %v2128_v8, %s3641_s24 }
 0x190   : > { %1926 = vrot.lane.b32.xlu1 %v4210_v57, %s3640_s19 }
 0x191   : > { %v4259_v5 = vpop.permute.xlu2 %2366  ;;  %v4264_v23 = vpop.permute.xlu0 %2386 }
 0x192   : > { %v2141_v26 = vpop.permute.xlu1 %2140 }
 0x193   : > { %v2577_v45 = vsel %vm2573_vm8, %v2544_v25, %v2141_v26  ;;  %v774_v25 = vadd.f32 %v4177_v17, %v738_v4 }
 0x194   : > { %v2610_v18 = vsel %vm2606_vm9, %v2577_v45, %v4201_v48  ;;  %v1305_v48 = vld [vmem:[#allocation2 + $0xe1] sm:$0xff]  ;;  %v1182_v45 = vld [vmem:[#allocation2 + $0x112] sm:$0xff] }
 0x195   : > { %v2643_v57 = vsel %vm2639_vm10, %v2610_v18, %v4223_v3  ;;  %v1368_v3 = vld [vmem:[#allocation2 + $0xda] sm:$0xff]  ;;  %v1337_v34 = vpack.c.bf16 %v1305_v48, %v1305_v48  ;;  %v806_v18 = vmax.f32 %v774_v25, 0.0  ;;  %v1214_v7 = vpack.c.bf16 %v1182_v45, %v1182_v45 }
 0x196   : > { %3432 = vmatmul.msk.bf16.gmra.mxu1 %vm2708_vm11, %v2643_v57  ;;  %v1400_v35 = vpack.c.bf16 %v1368_v3, %v1368_v3  ;;  %v2105_v3 = vunpack.c.l.b16 %v1273_v33  ;;  %v1118_v33 = vld [vmem:[#allocation2 + $0x111] sm:$0xff]  ;;  %v2480_v45 = vsel %vm2474_vm5, %v4208_v20, %v4233_v32 }
 0x197   : > { %2374 = vrot.lane.b32.xlu2 %v2352_v21, %s3643_s20  ;;  %2040 = vrot.lane.b32.xlu0 %v2352_v21, %s3638_s17  ;;  %v2217_v43 = vunpack.c.l.b16 %v1337_v34  ;;  %v926_v34 = vld [vmem:[#allocation2 + $0xf9] sm:$0xff]  ;;  %839 = vst.msk [vmem:[#allocation2 + $0x181] sm:$0xff] %vm464_vm1, %v806_v18  ;;  %v1999_v59 = vunpack.c.l.b16 %v1214_v7 }
 0x198   : > { %2262 = vrot.lane.b32.xlu1 %v2240_v22, %s3642_s25  ;;  %v2328_v55 = vunpack.c.l.b16 %v1400_v35  ;;  %v1213_v35 = vpack.c.bf16 %v1181_v15, %v1181_v15  ;;  %v1381_v7 = vld [vmem:[#allocation2 + $0x172] sm:$0xff] }
 0x199   : > { %v4274_v2 = vpop.permute.xlu2 %1808  ;;  %v1829_v28 = vpop.permute.xlu0 %1828  ;;  %v4291_v6 = vpack.c.b16 %v2217_v43, %v2216_v40 }
 0x19a   : > { %v4276_v27 = vpop.permute.xlu1 %1918  ;;  %v4279_v30 = vsel %vm2474_vm5, %v2469_v42, %v1829_v28  ;;  %v1272_v42 = vpack.c.bf16 %v1240_v44, %v1240_v44  ;;  %v4293_v26 = vpack.c.b16 %v2329_v56, %v2328_v55  ;;  %v1662_v28 = vunpack.c.l.b16 %v1021_v19  ;;  %v701_v40 = vpop.f32.mrf.mxu3 }
 0x19b   : > { %v4312_v44 = vpack.c.b16 %v1775_v14, %v1774_v13  ;;  %v739_v1 = vmul.f32 %v4171_v9, %v701_v40  ;;  %v958_v56 = vpack.c.bf16 %v926_v34, %v926_v34  ;;  %v880_v13 = vpack.c.bf16 %v848_v60, %v848_v60 }
 0x19c   : > { %v2104_v48 = vunpack.c.l.b16 %v1272_v42 }
 0x19d   : > { %v775_v41 = vadd.f32 %v4177_v17, %v739_v1  ;;  %v1551_v4 = vunpack.c.l.b16 %v958_v56 }
 0x19f   : > { %1928 = vrot.lane.b32.xlu2 %v2240_v22, %s3640_s19  ;;  %1706 = vrot.lane.b32.xlu0 %v2352_v21, %s3637_s15  ;;  %v807_v9 = vmax.f32 %v775_v41, 0.0  ;;  %v1413_v41 = vpack.c.bf16 %v1381_v7, %v1381_v7 }
 0x1a0   : > { %1816 = vrot.lane.b32.xlu1 %v2128_v8, %s3639_s23  ;;  %v1022_v8 = vpack.c.bf16 %v990_v10, %v990_v10  ;;  %v1998_v10 = vunpack.c.l.b16 %v1213_v35 }
 0x1a1   : > { %v4284_v38 = vpop.permute.xlu2 %1586  ;;  %v4288_v53 = vpop.permute.xlu0 %2142  ;;  %840 = vst.msk [vmem:[#allocation2 + $0x189] sm:$0xff] %vm464_vm1, %v807_v9 }
 0x1a2   : > { %v4286_v39 = vpop.permute.xlu1 %1696  ;;  %v1663_v29 = vunpack.c.l.b16 %v1022_v8  ;;  %v1117_v8 = vld [vmem:[#allocation2 + $0x109] sm:$0xff]  ;;  %v4328_v14 = vpack.c.b16 %v1999_v59, %v1998_v10 }
 0x1a4   : > { %v4315_v51 = vpack.c.b16 %v1663_v29, %v1662_v28  ;;  %v1150_v28 = vpack.c.bf16 %v1118_v33, %v1118_v33 }
 0x1a7   : > { %2264 = vrot.lane.b32.xlu2 %v4291_v6, %s3642_s25  ;;  %2376 = vrot.lane.b32.xlu0 %v4293_v26, %s3643_s20 }
 0x1a8   : > { %1594 = vrot.lane.b32.xlu1 %v2240_v22, %s3636_s28  ;;  %v925_v22 = vld [vmem:[#allocation2 + $0xf1] sm:$0xff] }
 0x1a9   : > { %v4301_v57 = vpop.permute.xlu2 %2276  ;;  %v4305_v58 = vpop.permute.xlu0 %1920  ;;  %v957_v55 = vpack.c.bf16 %v925_v22, %v925_v22  ;;  %v1380_v22 = vld [vmem:[#allocation2 + $0x16a] sm:$0xff] }
 0x1aa   : > { %v2275_v21 = vpop.permute.xlu1 %2274 }
 0x1ab   : > { %v2632_v31 = vsel %vm2606_vm9, %v4237_v36, %v2275_v21  ;;  %v2129_v36 = vpack.c.b16 %v2105_v3, %v2104_v48  ;;  %v1550_v0 = vunpack.c.l.b16 %v957_v55  ;;  %v1149_v21 = vpack.c.bf16 %v1117_v8, %v1117_v8 }
 0x1ac   : > { %v4310_v43 = vsel %vm2639_vm10, %v2632_v31, %v4264_v23  ;;  %v847_v23 = vld [vmem:[#allocation2 + $0x48] sm:$0xff]  ;;  %v1457_v48 = vunpack.c.l.b16 %v880_v13  ;;  %v1887_v31 = vunpack.c.l.b16 %v1150_v28  ;;  %v1412_v55 = vpack.c.bf16 %v1380_v22, %v1380_v22 }
 0x1ad   : > { %v879_v25 = vpack.c.bf16 %v847_v23, %v847_v23  ;;  %v4337_v18 = vpack.c.b16 %v1551_v4, %v1550_v0  ;;  %v1886_v3 = vunpack.c.l.b16 %v1149_v21  ;;  %v997_v4 = vld [vmem:[#allocation2 + $0x152] sm:$0xff] }
 0x1ae   : > { %v2340_v60 = vunpack.c.l.b16 %v1412_v55  ;;  %v1029_v13 = vpack.c.bf16 %v997_v4, %v997_v4 }
 0x1af   : > { %1710 = vrot.lane.b32.xlu2 %v4315_v51, %s3637_s15  ;;  %1822 = vrot.lane.b32.xlu0 %v4312_v44, %s3639_s23  ;;  %v1456_v29 = vunpack.c.l.b16 %v879_v25  ;;  %v4358_v56 = vpack.c.b16 %v1887_v31, %v1886_v3  ;;  %v849_v3 = vld [vmem:[#allocation2 + $0x60] sm:$0xff]  ;;  %v850_v31 = vld [vmem:[#allocation2 + $0x68] sm:$0xff] }
 0x1b0   : > { %2152 = vrot.lane.b32.xlu1 %v2129_v36, %s3641_s24 }
 0x1b1   : > { %v2145_v42 = vpop.permute.xlu2 %2144  ;;  %v4325_v19 = vpop.permute.xlu0 %1698  ;;  %v1485_v40 = vpack.c.b16 %v1457_v48, %v1456_v29  ;;  %v1670_v48 = vunpack.c.l.b16 %v1029_v13 }
 0x1b2   : > { %v1941_v62 = vpop.permute.xlu1 %1940 }
 0x1b3   : > { %v2535_v17 = vsel %vm2507_vm6, %v4279_v30, %v1941_v62  ;;  %v2513_v30 = vsel %vm2507_vm6, %v2480_v45, %v4276_v27  ;;  %v1242_v62 = vld [vmem:[#allocation2 + $0xf0] sm:$0xff] }
 0x1b4   : > { %v2568_v15 = vsel %vm2540_vm7, %v2535_v17, %v4243_v50  ;;  %v2546_v50 = vsel %vm2540_vm7, %v2513_v30, %v4219_v11  ;;  %v998_v17 = vld [vmem:[#allocation2 + $0x15a] sm:$0xff]  ;;  %v1274_v33 = vpack.c.bf16 %v1242_v62, %v1242_v62 }
 0x1b5   : > { %v2579_v20 = vsel %vm2573_vm8, %v2546_v50, %v4288_v53  ;;  %v2405_v53 = vsel %vm464_vm1, %v1485_v40, %v4246_v54  ;;  %v881_v40 = vpack.c.bf16 %v849_v3, %v849_v3 }
 0x1b6   : > { %v2449_v59 = vsel %vm566_vm0, %v2405_v53, %v4286_v39  ;;  %v2106_v21 = vunpack.c.l.b16 %v1274_v33 }
 0x1b7   : > { %2046 = vrot.lane.b32.xlu2 %v4328_v14, %s3638_s17  ;;  %1930 = vrot.lane.b32.xlu0 %v4291_v6, %s3640_s19  ;;  %v2482_v54 = vsel %vm2474_vm5, %v2449_v59, %v4274_v2  ;;  %v1125_v59 = vld [vmem:[#allocation2 + $0x169] sm:$0xff]  ;;  %v1458_v62 = vunpack.c.l.b16 %v881_v40 }
 0x1b8   : > { %1598 = vrot.lane.b32.xlu1 %v4337_v18, %s3636_s28  ;;  %v2515_v9 = vsel %vm2507_vm6, %v2482_v54, %v4305_v58  ;;  %v1318_v54 = vld [vmem:[#allocation2 + $0x181] sm:$0xff] }
 0x1b9   : > { %v4349_v32 = vpop.permute.xlu2 %1922  ;;  %v2165_v35 = vpop.permute.xlu0 %2164  ;;  %v1350_v4 = vpack.c.bf16 %v1318_v54, %v1318_v54 }
 0x1ba   : > { %v2255_v27 = vpop.permute.xlu1 %2254  ;;  %v2601_v1 = vsel %vm2573_vm8, %v2568_v15, %v2165_v35  ;;  %v1030_v15 = vpack.c.bf16 %v998_v17, %v998_v17 }
 0x1bb   : > { %v2612_v34 = vsel %vm2606_vm9, %v2579_v20, %v2255_v27  ;;  %v4362_v10 = vsel %vm2606_vm9, %v2601_v1, %v4301_v57  ;;  %v2341_v57 = vunpack.c.l.b16 %v1413_v41  ;;  %v933_v20 = vld [vmem:[#allocation2 + $0x151] sm:$0xff]  ;;  %v934_v27 = vld [vmem:[#allocation2 + $0x159] sm:$0xff]  ;;  %v882_v1 = vpack.c.bf16 %v850_v31, %v850_v31 }
 0x1bc   : > { %v2645_v11 = vsel %vm2639_vm10, %v2612_v34, %v4259_v5  ;;  %v1671_v50 = vunpack.c.l.b16 %v1030_v15  ;;  %v965_v34 = vpack.c.bf16 %v933_v20, %v933_v20  ;;  %v966_v35 = vpack.c.bf16 %v934_v27, %v934_v27 }
 0x1bd   : > { %3433 = vmatmul.msk.bf16.gmra.mxu1 %vm2708_vm11, %v2645_v11  ;;  %v4378_v8 = vpack.c.b16 %v2341_v57, %v2340_v60  ;;  %v1126_v57 = vld [vmem:[#allocation2 + $0x171] sm:$0xff] }
 0x1be   : > { %v1688_v7 = vpack.c.b16 %v1671_v50, %v1670_v48  ;;  %v1558_v53 = vunpack.c.l.b16 %v965_v34  ;;  %v1559_v41 = vunpack.c.l.b16 %v966_v35  ;;  %v1254_v34 = vld [vmem:[#allocation2 + $0x180] sm:$0xff]  ;;  %v1255_v35 = vld [vmem:[#allocation2 + $0x188] sm:$0xff] }
 0x1bf   : > { %1818 = vrot.lane.b32.xlu2 %v2129_v36, %s3639_s23  ;;  %1712 = vrot.lane.b32.xlu0 %v4328_v14, %s3637_s15  ;;  %v1243_v36 = vld [vmem:[#allocation2 + $0xf8] sm:$0xff]  ;;  %v1286_v54 = vpack.c.bf16 %v1254_v34, %v1254_v34 }
 0x1c0   : > { %1934 = vrot.lane.b32.xlu1 %v4358_v56, %s3640_s19  ;;  %v1275_v25 = vpack.c.bf16 %v1243_v36, %v1243_v36  ;;  %v1459_v36 = vunpack.c.l.b16 %v882_v1  ;;  %v1576_v33 = vpack.c.b16 %v1559_v41, %v1558_v53  ;;  %v851_v1 = vld [vmem:[#allocation2 + $0x78] sm:$0xff]  ;;  %v852_v53 = vld [vmem:[#allocation2 + $0x80] sm:$0xff] }
 0x1c1   : > { %v4373_v5 = vpop.permute.xlu2 %2258  ;;  %v2257_v39 = vpop.permute.xlu0 %2256 }
 0x1c2   : > { %v2033_v23 = vpop.permute.xlu1 %2032  ;;  %v2107_v28 = vunpack.c.l.b16 %v1275_v25  ;;  %v1158_v25 = vpack.c.bf16 %v1126_v57, %v1126_v57  ;;  %v1486_v15 = vpack.c.b16 %v1459_v36, %v1458_v62  ;;  %v883_v57 = vpack.c.bf16 %v851_v1, %v851_v1 }
 0x1c3   : > { %v2548_v0 = vsel %vm2540_vm7, %v2515_v9, %v2033_v23  ;;  %v1319_v23 = vld [vmem:[#allocation2 + $0x189] sm:$0xff] }
 0x1c4   : > { %v2581_v2 = vsel %vm2573_vm8, %v2548_v0, %v2145_v42  ;;  %v4394_v22 = vpack.c.b16 %v2107_v28, %v2106_v21  ;;  %v1061_v9 = vld [vmem:[#allocation2 + $0x168] sm:$0xff]  ;;  %v1157_v0 = vpack.c.bf16 %v1125_v59, %v1125_v59  ;;  %v1351_v17 = vpack.c.bf16 %v1319_v23, %v1319_v23  ;;  %v4424_v59 = vld [vmem:[%s4836_s5] ss:$0 sm:$0xff] }
 0x1c5   : > { %v2614_v58 = vsel %vm2606_vm9, %v2581_v2, %v2257_v39  ;;  %v1062_v39 = vld [vmem:[#allocation2 + $0x170] sm:$0xff]  ;;  %v1093_v2 = vpack.c.bf16 %v1061_v9, %v1061_v9  ;;  %v2408_v28 = vsel %vm464_vm1, %v1486_v15, %v4284_v38  ;;  %v1895_v50 = vunpack.c.l.b16 %v1158_v25 }
 0x1c6   : > { %v1094_v13 = vpack.c.bf16 %v1062_v39, %v1062_v39  ;;  %v2231_v21 = vunpack.c.l.b16 %v1351_v17  ;;  %v2451_v3 = vsel %vm566_vm0, %v2408_v28, %v4325_v19  ;;  %v1287_v23 = vpack.c.bf16 %v1255_v35, %v1255_v35 }
 0x1c7   : > { %1600 = vrot.lane.b32.xlu2 %v4358_v56, %s3636_s28  ;;  %2266 = vrot.lane.b32.xlu0 %v4337_v18, %s3642_s25  ;;  %v1782_v20 = vunpack.c.l.b16 %v1093_v2  ;;  %v884_v9 = vpack.c.bf16 %v852_v53, %v852_v53  ;;  %v1382_v2 = vld [vmem:[#allocation2 + $0x182] sm:$0xff] }
 0x1c8   : > { %2388 = vrot.lane.b32.xlu1 %v4378_v8, %s3643_s20  ;;  %v1783_v27 = vunpack.c.l.b16 %v1094_v13  ;;  %v2119_v17 = vunpack.c.l.b16 %v1287_v23  ;;  %v1383_v13 = vld [vmem:[#allocation2 + $0x18a] sm:$0xff] }
 0x1c9   : > { %v4388_v45 = vpop.permute.xlu2 %1812  ;;  %v4390_v29 = vpop.permute.xlu0 %2034 }
 0x1ca   : > { %v2369_v30 = vpop.permute.xlu1 %2368  ;;  %v4419_v38 = vpack.c.b16 %v1783_v27, %v1782_v20  ;;  %v1414_v20 = vpack.c.bf16 %v1382_v2, %v1382_v2  ;;  %v1415_v27 = vpack.c.bf16 %v1383_v13, %v1383_v13 }
 0x1cb   : > { %v2647_v42 = vsel %vm2639_vm10, %v2614_v58, %v2369_v30  ;;  %v1894_v58 = vunpack.c.l.b16 %v1157_v0  ;;  %v2230_v30 = vunpack.c.l.b16 %v1350_v4  ;;  %v2118_v4 = vunpack.c.l.b16 %v1286_v54 }
 0x1cc   : > { %v2343_v1 = vunpack.c.l.b16 %v1415_v27 }
 0x1cd   : > { %3434 = vmatmul.msk.bf16.gmra.mxu1 %vm2708_vm11, %v2647_v42  ;;  %v4417_v40 = vpack.c.b16 %v2231_v21, %v2230_v30  ;;  %v1912_v41 = vpack.c.b16 %v1895_v50, %v1894_v58  ;;  %v1460_v30 = vunpack.c.l.b16 %v883_v57  ;;  %v1461_v21 = vunpack.c.l.b16 %v884_v9 }
 0x1cf   : > { %2154 = vrot.lane.b32.xlu2 %v4394_v22, %s3641_s24  ;;  %1718 = vrot.lane.b32.xlu0 %v1688_v7, %s3637_s15 }
 0x1d0   : > { %2042 = vrot.lane.b32.xlu1 %v4293_v26, %s3638_s17 }
 0x1d1   : > { %v4401_v11 = vpop.permute.xlu2 %1590  ;;  %v4403_v60 = vpop.permute.xlu0 %1700 }
 0x1d2   : > { %v1811_v55 = vpop.permute.xlu1 %1810 }
 0x1d3   : > { %v2484_v7 = vsel %vm2474_vm5, %v2451_v3, %v1811_v55  ;;  %v4434_v55 = vld [vmem:[%s4837_s6] ss:$0 sm:$0xff]  ;;  %v1487_v3 = vpack.c.b16 %v1461_v21, %v1460_v30 }
 0x1d4   : > { %v2517_v19 = vsel %vm2507_vm6, %v2484_v7, %v4349_v32  ;;  %v2342_v7 = vunpack.c.l.b16 %v1414_v20 }
 0x1d5   : > { %v2550_v0 = vsel %vm2540_vm7, %v2517_v19, %v4390_v29  ;;  %v2136_v29 = vpack.c.b16 %v2119_v17, %v2118_v4  ;;  %v1320_v4 = vld [vmem:[#allocation2 + $0x199] sm:$0xff]  ;;  %v1321_v17 = vld [vmem:[#allocation2 + $0x1a1] sm:$0xff] }
 0x1d6   : > { %v4460_v19 = vpack.c.b16 %v2343_v1, %v2342_v7  ;;  %v855_v1 = vld [vmem:[#allocation2 + $0xa8] sm:$0xff] }
 0x1d7   : > { %1606 = vrot.lane.b32.xlu2 %v1576_v33, %s3636_s28  ;;  %2054 = vrot.lane.b32.xlu0 %v4378_v8, %s3638_s17 }
 0x1d8   : > { %2378 = vrot.lane.b32.xlu1 %v4315_v51, %s3643_s20 }
 0x1d9   : > { %v4412_v42 = vpop.permute.xlu2 %2148  ;;  %v2371_v31 = vpop.permute.xlu0 %2370 }
 0x1da   : > { %v1589_v48 = vpop.permute.xlu1 %1588 }
 0x1db   : > { %v2411_v54 = vsel %vm464_vm1, %v1487_v3, %v1589_v48  ;;  %v1384_v3 = vld [vmem:[#allocation2 + $0x19a] sm:$0xff] }
 0x1dc   : > { %v2453_v57 = vsel %vm566_vm0, %v2411_v54, %v4403_v60 }
 0x1dd   : > { %v2486_v48 = vsel %vm2474_vm5, %v2453_v57, %v4388_v45 }
 0x1df   : > { %1942 = vrot.lane.b32.xlu2 %v1912_v41, %s3640_s19  ;;  %2278 = vrot.lane.b32.xlu0 %v4417_v40, %s3642_s25 }
 0x1e0   : > { %1830 = vrot.lane.b32.xlu1 %v4419_v38, %s3639_s23 }
 0x1e1   : > { %v2754_v39 = vpop.f32.mrf.mxu1  ;;  %v4439_v36 = vpop.permute.xlu2 %2038 }
 0x1e2   : > { %v2838_v62 = vmul.f32 %v4424_v59, %v2754_v39  ;;  %v2147_v32 = vpop.permute.xlu1 %2146  ;;  %v1925_v25 = vpop.permute.xlu0 %1924 }
 0x1e3   : > { %v2583_v33 = vsel %vm2573_vm8, %v2550_v0, %v2147_v32 }
 0x1e4   : > { %v2874_v15 = vadd.f32 %v4434_v55, %v2838_v62  ;;  %v2616_v58 = vsel %vm2606_vm9, %v2583_v33, %v4373_v5  ;;  %v2519_v62 = vsel %vm2507_vm6, %v2486_v48, %v1925_v25  ;;  %v887_v48 = vpack.c.bf16 %v855_v1, %v855_v1 }
 0x1e5   : > { %v2649_v28 = vsel %vm2639_vm10, %v2616_v58, %v2371_v31 }
 0x1e6   : > { %v2906_v50 = vmax.f32 %v2874_v15, 0.0  ;;  %3435 = vmatmul.msk.bf16.gmra.mxu1 %vm2708_vm11, %v2649_v28 }
 0x1e7   : > { %1596 = vrot.lane.b32.xlu2 %v4291_v6, %s3636_s28  ;;  %1820 = vrot.lane.b32.xlu0 %v4394_v22, %s3639_s23 }
 0x1e8   : > { %2938 = vst.msk [vmem:[#allocation3] sm:$0xff] %vm464_vm1, %v2906_v50  ;;  %2166 = vrot.lane.b32.xlu1 %v2136_v29, %s3641_s24  ;;  %v1256_v50 = vld [vmem:[#allocation2 + $0x198] sm:$0xff] }
 0x1e9   : > { %v2756_v5 = vpop.f32.mrf.mxu1  ;;  %v4456_v34 = vpop.permute.xlu2 %1704  ;;  %v1288_v20 = vpack.c.bf16 %v1256_v50, %v1256_v50 }
 0x1ea   : > { %v2839_v31 = vmul.f32 %v4424_v59, %v2756_v5  ;;  %v2037_v35 = vpop.permute.xlu1 %2036  ;;  %v2261_v53 = vpop.permute.xlu0 %2260 }
 0x1eb   : > { %v2552_v60 = vsel %vm2540_vm7, %v2519_v62, %v2037_v35 }
 0x1ec   : > { %v2875_v23 = vadd.f32 %v4434_v55, %v2839_v31  ;;  %v2585_v0 = vsel %vm2573_vm8, %v2552_v60, %v4412_v42  ;;  %v1352_v42 = vpack.c.bf16 %v1320_v4, %v1320_v4  ;;  %v1385_v31 = vld [vmem:[#allocation2 + $0x1a2] sm:$0xff]  ;;  %v1464_v60 = vunpack.c.l.b16 %v887_v48 }
 0x1ee   : > { %v2907_v6 = vmax.f32 %v2875_v23, 0.0  ;;  %v2232_v13 = vunpack.c.l.b16 %v1352_v42 }
 0x1ef   : > { %2390 = vrot.lane.b32.xlu2 %v4460_v19, %s3643_s20  ;;  %1608 = vrot.lane.b32.xlu0 %v1912_v41, %s3636_s28 }
 0x1f0   : > { %2939 = vst.msk [vmem:[#allocation3 + $0x8] sm:$0xff] %vm464_vm1, %v2907_v6  ;;  %1708 = vrot.lane.b32.xlu1 %v4293_v26, %s3637_s15  ;;  %v2618_v26 = vsel %vm2606_vm9, %v2585_v0, %v2261_v53  ;;  %v856_v53 = vld [vmem:[#allocation2 + $0xb0] sm:$0xff]  ;;  %v1417_v6 = vpack.c.bf16 %v1385_v31, %v1385_v31 }
 0x1f1   : > { %v2375_v9 = vpop.permute.xlu2 %2374 }
 0x1f2   : > { %v1703_v39 = vpop.permute.xlu1 %1702  ;;  %v1815_v32 = vpop.permute.xlu0 %1814 }
 0x1f7   : > { %2044 = vrot.lane.b32.xlu2 %v4315_v51, %s3638_s17  ;;  %2156 = vrot.lane.b32.xlu0 %v4312_v44, %s3641_s24  ;;  %v1353_v51 = vpack.c.bf16 %v1321_v17, %v1321_v17 }
 0x1f8   : > { %1932 = vrot.lane.b32.xlu1 %v4337_v18, %s3640_s19  ;;  %v2414_v18 = vsel %vm464_vm1, %v4193_v37, %v4401_v11  ;;  %v1257_v37 = vld [vmem:[#allocation2 + $0x1a0] sm:$0xff] }
 0x1f9   : > { %v4483_v45 = vpop.permute.xlu2 %1928  ;;  %v2455_v2 = vsel %vm566_vm0, %v2414_v18, %v1703_v39  ;;  %v2233_v15 = vunpack.c.l.b16 %v1353_v51  ;;  %v888_v39 = vpack.c.bf16 %v856_v53, %v856_v53 }
 0x1fa   : > { %v2373_v41 = vpop.permute.xlu1 %2372  ;;  %v1593_v33 = vpop.permute.xlu0 %1592  ;;  %v2488_v30 = vsel %vm2474_vm5, %v2455_v2, %v1815_v32  ;;  %v2345_v32 = vunpack.c.l.b16 %v1417_v6 }
 0x1fb   : > { %v2651_v25 = vsel %vm2639_vm10, %v2618_v26, %v2373_v41  ;;  %v2249_v27 = vpack.c.b16 %v2233_v15, %v2232_v13  ;;  %v1465_v0 = vunpack.c.l.b16 %v888_v39 }
 0x1fc   : > { %3436 = vmatmul.msk.bf16.gmra.mxu1 %vm2708_vm11, %v2651_v25 }
 0x1fd   : > { %v1489_v25 = vpack.c.b16 %v1465_v0, %v1464_v60 }
 0x1ff   : > { %1832 = vrot.lane.b32.xlu2 %v2136_v29, %s3639_s23  ;;  %1944 = vrot.lane.b32.xlu0 %v4417_v40, %s3640_s19  ;;  %v1289_v29 = vpack.c.bf16 %v1257_v37, %v1257_v37  ;;  %v2120_v40 = vunpack.c.l.b16 %v1288_v20  ;;  %v2417_v18 = vsel %vm464_vm1, %v1489_v25, %v1593_v33 }
 0x200   : > { %1720 = vrot.lane.b32.xlu1 %v4378_v8, %s3637_s15  ;;  %v2457_v13 = vsel %vm566_vm0, %v2417_v18, %v4456_v34  ;;  %s4855_s15 = sld [smem:[#allocation10_spill]] }
 0x201   : > { %v4497_v21 = vpop.permute.xlu2 %2264  ;;  %v2121_v5 = vunpack.c.l.b16 %v1289_v29 }
 0x202   : > { %v1927_v58 = vpop.permute.xlu1 %1926  ;;  %v2151_v28 = vpop.permute.xlu0 %2150 }
 0x203   : > { %v2521_v11 = vsel %vm2507_vm6, %v2488_v30, %v1927_v58  ;;  %v2137_v57 = vpack.c.b16 %v2121_v5, %v2120_v40 }
 0x204   : > { %v2554_v8 = vsel %vm2540_vm7, %v2521_v11, %v4439_v36 }
 0x205   : > { %v2587_v35 = vsel %vm2573_vm8, %v2554_v8, %v2151_v28 }
 0x207   : > { %2380 = vrot.lane.b32.xlu2 %v4328_v14, %s3643_s20  ;;  %2280 = vrot.lane.b32.xlu0 %v2249_v27, %s3642_s25  ;;  %v1416_v14 = vpack.c.bf16 %v1384_v3, %v1384_v3 }
 0x208   : > { %2268 = vrot.lane.b32.xlu1 %v4358_v56, %s3642_s25 }
 0x209   : > { %v1711_v56 = vpop.permute.xlu2 %1710  ;;  %v2344_v62 = vunpack.c.l.b16 %v1416_v14 }
 0x20a   : > { %v2263_v7 = vpop.permute.xlu1 %2262  ;;  %v2041_v36 = vpop.permute.xlu0 %2040 }
 0x20b   : > { %v2620_v54 = vsel %vm2606_vm9, %v2587_v35, %v2263_v7  ;;  %v2361_v17 = vpack.c.b16 %v2345_v32, %v2344_v62  ;;  %v857_v35 = vld [vmem:[#allocation2 + $0xc0] sm:$0xff]  ;;  %v858_v7 = vld [vmem:[#allocation2 + $0xc8] sm:$0xff] }
 0x20c   : > { %v2653_v23 = vsel %vm2639_vm10, %v2620_v54, %v2375_v9  ;;  %v889_v53 = vpack.c.bf16 %v857_v35, %v857_v35  ;;  %v890_v54 = vpack.c.bf16 %v858_v7, %v858_v7 }
 0x20d   : > { %3437 = vmatmul.msk.bf16.gmra.mxu1 %vm2708_vm11, %v2653_v23 }
 0x20e   : > { %v1467_v62 = vunpack.c.l.b16 %v890_v54 }
 0x20f   : > { %2168 = vrot.lane.b32.xlu2 %v2137_v57, %s3641_s24 }
 0x210   : > { %2056 = vrot.lane.b32.xlu1 %v4460_v19, %s3638_s17  ;;  %s4772_s17 = scalar_lea.vmem %s4855_s15, %s3493_s22 }
 0x211   : > { %v2047_v51 = vpop.permute.xlu2 %2046 }
 0x212   : > { %v1817_v26 = vpop.permute.xlu1 %1816  ;;  %v4514_v41 = vpop.permute.xlu0 %1706 }
 0x213   : > { %v2759_v9 = vpop.f32.mrf.mxu1  ;;  %v2490_v30 = vsel %vm2474_vm5, %v2457_v13, %v1817_v26 }
 0x214   : > { %v2840_v4 = vmul.f32 %v4424_v59, %v2759_v9  ;;  %v2523_v33 = vsel %vm2507_vm6, %v2490_v30, %v4483_v45 }
 0x215   : > { %v2556_v29 = vsel %vm2540_vm7, %v2523_v33, %v2041_v36 }
 0x216   : > { %v2876_v42 = vadd.f32 %v4434_v55, %v2840_v4 }
 0x218   : > { %v2908_v19 = vmax.f32 %v2876_v42, 0.0  ;;  %2392 = vrot.lane.b32.xlu1 %v2361_v17, %s3643_s20 }
 0x219   : > { %v1819_v11 = vpop.permute.xlu2 %1818 }
 0x21a   : > { %2940 = vst.msk [vmem:[#allocation3 + $0x10] sm:$0xff] %vm464_vm1, %v2908_v19  ;;  %v1595_v2 = vpop.permute.xlu1 %1594  ;;  %v2377_v15 = vpop.permute.xlu0 %2376 }
 0x21b   : > { %v2761_v58 = vpop.f32.mrf.mxu1 }
 0x21c   : > { %v2841_v28 = vmul.f32 %v4424_v59, %v2761_v58 }
 0x21e   : > { %v2877_v50 = vadd.f32 %v4434_v55, %v2841_v28 }
 0x220   : > { %v2909_v37 = vmax.f32 %v2877_v50, 0.0 }
 0x221   : > { %v1601_v3 = vpop.permute.xlu2 %1600 }
 0x222   : > { %2941 = vst.msk [vmem:[#allocation3 + $0x18] sm:$0xff] %vm464_vm1, %v2909_v37  ;;  %v2153_v20 = vpop.permute.xlu1 %2152  ;;  %v1823_v27 = vpop.permute.xlu0 %1822  ;;  %v2429_v6 = vsel %vm464_vm1, %v4312_v44, %v1601_v3 }
 0x223   : > { %v2589_v34 = vsel %vm2573_vm8, %v2556_v29, %v2153_v20 }
 0x224   : > { %v2622_v8 = vsel %vm2606_vm9, %v2589_v34, %v4497_v21 }
 0x225   : > { %v2655_v40 = vsel %vm2639_vm10, %v2622_v8, %v2377_v15 }
 0x226   : > { %3438 = vmatmul.msk.bf16.gmra.mxu1 %vm2708_vm11, %v2655_v40 }
 0x229   : > { %v2155_v48 = vpop.permute.xlu2 %2154 }
 0x22a   : > { %v1599_v5 = vpop.permute.xlu1 %1598  ;;  %v1931_v45 = vpop.permute.xlu0 %1930 }
 0x22b   : > { %v2426_v31 = vsel %vm464_vm1, %v4394_v22, %v1599_v5 }
 0x22c   : > { %v2463_v1 = vsel %vm566_vm0, %v2426_v31, %v1711_v56  ;;  %v1466_v56 = vunpack.c.l.b16 %v889_v53  ;;  %v870_v53 = vld [vmem:[#allocation2 + $0x158] sm:$0xff] }
 0x22d   : > { %v2496_v23 = vsel %vm2474_vm5, %v2463_v1, %v1823_v27  ;;  %v869_v1 = vld [vmem:[#allocation2 + $0x150] sm:$0xff] }
 0x22e   : > { %v1490_v44 = vpack.c.b16 %v1467_v62, %v1466_v56 }
 0x230   : > { %v2420_v17 = vsel %vm464_vm1, %v1490_v44, %v1595_v2 }
 0x231   : > { %v1607_v42 = vpop.permute.xlu2 %1606 }
 0x232   : > { %v1935_v36 = vpop.permute.xlu1 %1934  ;;  %v1713_v14 = vpop.permute.xlu0 %1712 }
 0x233   : > { %v2529_v21 = vsel %vm2507_vm6, %v2496_v23, %v1935_v36  ;;  %v2465_v22 = vsel %vm566_vm0, %v2429_v6, %v1713_v14  ;;  %v901_v36 = vpack.c.bf16 %v869_v1, %v869_v1  ;;  %v902_v23 = vpack.c.bf16 %v870_v53, %v870_v53  ;;  %v3469_v1 = vld [vmem:[%s3784_s13 + $0x31] ss:$2 sm:$0xff] }
 0x234   : > { %v2562_v57 = vsel %vm2540_vm7, %v2529_v21, %v2047_v51  ;;  %v2498_v0 = vsel %vm2474_vm5, %v2465_v22, %v4128_v12  ;;  %v2459_v12 = vsel %vm566_vm0, %v2420_v17, %v4514_v41 }
 0x235   : > { %v2595_v39 = vsel %vm2573_vm8, %v2562_v57, %v4102_v24  ;;  %v2531_v9 = vsel %vm2507_vm6, %v2498_v0, %v4076_v63  ;;  %v2492_v63 = vsel %vm2474_vm5, %v2459_v12, %v1819_v11  ;;  %v1478_v14 = vunpack.c.l.b16 %v901_v36  ;;  %v859_v57 = vld [vmem:[#allocation2 + $0xd8] sm:$0xff] }
 0x236   : > { %v2628_v32 = vsel %vm2606_vm9, %v2595_v39, %v4059_v52  ;;  %v2525_v2 = vsel %vm2507_vm6, %v2492_v63, %v1931_v45  ;;  %v1479_v6 = vunpack.c.l.b16 %v902_v23  ;;  %v891_v62 = vpack.c.bf16 %v859_v57, %v859_v57 }
 0x237   : > { %v2661_v60 = vsel %vm2639_vm10, %v2628_v32, %v4112_v46  ;;  %v2564_v46 = vsel %vm2540_vm7, %v2531_v9, %v4114_v49 }
 0x238   : > { %3441 = vmatmul.msk.bf16.vlgmr.msra.gmra.mxu2 %vm2708_vm11, %v2661_v60  ;;  %v2597_v18 = vsel %vm2573_vm8, %v2564_v46, %v4221_v61 }
 0x239   : > { %v2630_v41 = vsel %vm2606_vm9, %v2597_v18, %v4189_v16  ;;  %v1943_v33 = vpop.permute.xlu2 %1942 }
 0x23a   : > { %v4553_v26 = vpop.permute.xlu1 %2388  ;;  %v2267_v24 = vpop.permute.xlu0 %2266  ;;  %v2663_v28 = vsel %vm2639_vm10, %v2630_v41, %v4143_v47 }
 0x23b   : > { %v2764_v4 = vpop.f32.mrf.mxu1  ;;  %v2667_v44 = vsel %vm2639_vm10, %v4362_v10, %v4553_v26 }
 0x23c   : > { %v2842_v52 = vmul.f32 %v4424_v59, %v2764_v4  ;;  %v1468_v4 = vunpack.c.l.b16 %v891_v62 }
 0x23e   : > { %v2878_v25 = vadd.f32 %v4434_v55, %v2842_v52 }
 0x240   : > { %v2910_v51 = vmax.f32 %v2878_v25, 0.0 }
 0x241   : > { %v1597_v40 = vpop.permute.xlu2 %1596 }
 0x242   : > { %2942 = vst.msk [vmem:[#allocation3 + $0x20] sm:$0xff] %vm464_vm1, %v2910_v51  ;;  %v2043_v19 = vpop.permute.xlu1 %2042  ;;  %v1719_v13 = vpop.permute.xlu0 %1718 }
 0x243   : > { %v2766_v15 = vpop.f32.mrf.mxu1  ;;  %v2558_v58 = vsel %vm2540_vm7, %v2525_v2, %v2043_v19 }
 0x244   : > { %v2843_v49 = vmul.f32 %v4424_v59, %v2766_v15  ;;  %v2591_v61 = vsel %vm2573_vm8, %v2558_v58, %v2155_v48  ;;  %v860_v48 = vld [vmem:[#allocation2 + $0xe0] sm:$0xff] }
 0x245   : > { %v2624_v11 = vsel %vm2606_vm9, %v2591_v61, %v2267_v24  ;;  %v892_v32 = vpack.c.bf16 %v860_v48, %v860_v48 }
 0x246   : > { %v2879_v30 = vadd.f32 %v4434_v55, %v2843_v49 }
 0x247   : > { %v1469_v17 = vunpack.c.l.b16 %v892_v32 }
 0x248   : > { %v2911_v50 = vmax.f32 %v2879_v30, 0.0  ;;  %3442 = vmatmul.msk.bf16.gmra.mxu2 %vm2708_vm11, %v2663_v28 }
 0x249   : > { %v2391_v54 = vpop.permute.xlu2 %2390  ;;  %v1491_v63 = vpack.c.b16 %v1469_v17, %v1468_v4 }
 0x24a   : > { %2943 = vst.msk [vmem:[#allocation3 + $0x28] sm:$0xff] %vm464_vm1, %v2911_v50  ;;  %v2379_v37 = vpop.permute.xlu1 %2378  ;;  %v2055_v34 = vpop.permute.xlu0 %2054 }
 0x24b   : > { %v2769_v20 = vpop.f32.mrf.mxu1  ;;  %v2657_v29 = vsel %vm2639_vm10, %v2624_v11, %v2379_v37  ;;  %v3130_v37 = vld [vmem:[%s3784_s13] ss:$2 sm:$0xff]  ;;  %v3451_v11 = vld [vmem:[%s3784_s13 + $0x10] ss:$2 sm:$0xff] }
 0x24c   : > { %v2844_v16 = vmul.f32 %v4424_v59, %v2769_v20  ;;  %3439 = vmatmul.msk.bf16.gmra.mxu1 %vm2708_vm11, %v2657_v29  ;;  %v3452_v20 = vld [vmem:[%s3784_s13 + $0x20] ss:$2 sm:$0xff]  ;;  %v3453_v29 = vld [vmem:[%s3784_s13 + $0x30] ss:$2 sm:$0xff] }
 0x24d   : > { %v3196_v23 = vadd.f32 %v3469_v1, %v3453_v29 }
 0x24e   : > { %v2880_v27 = vadd.f32 %v4434_v55, %v2844_v16  ;;  %v3466_v16 = vld [vmem:[%s3784_s13 + $0x1] ss:$2 sm:$0xff] }
 0x250   : > { %v2912_v47 = vmax.f32 %v2880_v27, 0.0 }
 0x251   : > { %v2045_v0 = vpop.permute.xlu2 %2044 }
 0x252   : > { %2944 = vst.msk [vmem:[#allocation3 + $0x30] sm:$0xff] %vm464_vm1, %v2912_v47  ;;  %v1831_v8 = vpop.permute.xlu1 %1830  ;;  %v2279_v31 = vpop.permute.xlu0 %2278  ;;  %v3061_v47 = vld [vmem:[%s4838_s7] sm:$0xf] }
 0x253   : > { %v2771_v5 = vpop.f32.mrf.mxu1 }
 0x254   : > { %v2845_v3 = vmul.f32 %v4424_v59, %v2771_v5  ;;  %v3193_v5 = vadd.f32 %v3466_v16, %v3130_v37 }
 0x256   : > { %v2881_v45 = vadd.f32 %v4434_v55, %v2845_v3 }
 0x258   : > { %v2913_v35 = vmax.f32 %v2881_v45, 0.0  ;;  %3443 = vmatmul.msk.bf16.gmra.mxu2 %vm2708_vm11, %v4310_v43  ;;  %v1496_v43 = vpack.c.b16 %v1479_v6, %v1478_v14 }
 0x259   : > { %v1833_v15 = vpop.permute.xlu2 %1832 }
 0x25a   : > { %2945 = vst.msk [vmem:[#allocation3 + $0x38] sm:$0xff] %vm464_vm1, %v2913_v35  ;;  %v2167_v7 = vpop.permute.xlu1 %2166  ;;  %v1821_v21 = vpop.permute.xlu0 %1820  ;;  %v2438_v9 = vsel %vm464_vm1, %v1496_v43, %v1607_v42  ;;  %v2423_v42 = vsel %vm464_vm1, %v1491_v63, %v1597_v40  ;;  %v3468_v40 = vld [vmem:[%s3784_s13 + $0x21] ss:$2 sm:$0xff] }
 0x25b   : > { %v2471_v52 = vsel %vm566_vm0, %v2438_v9, %v1719_v13  ;;  %v3195_v53 = vadd.f32 %v3468_v40, %v3452_v20  ;;  %v3470_v40 = vld [vmem:[%s3784_s13 + $0x41] ss:$2 sm:$0xff] }
 0x25c   : > { %v2504_v25 = vsel %vm2474_vm5, %v2471_v52, %v1831_v8  ;;  %v3499_v8 = vld [vmem:[%s4841_s10] sm:$0xff] }
 0x25d   : > { %v2537_v10 = vsel %vm2507_vm6, %v2504_v25, %v1943_v33  ;;  %3248 = vmatpush.bf16.msrb.mxu3 %v3499_v8  ;;  %v3457_v8 = vld [vmem:[%s3784_s13 + $0x70] ss:$2 sm:$0xff] }
 0x25e   : > { %v2570_v19 = vsel %vm2540_vm7, %v2537_v10, %v2055_v34  ;;  %v3467_v34 = vld [vmem:[%s3784_s13 + $0x11] ss:$2 sm:$0xff] }
 0x25f   : > { %v2603_v58 = vsel %vm2573_vm8, %v2570_v19, %v2167_v7  ;;  %v3194_v3 = vadd.f32 %v3467_v34, %v3451_v11  ;;  %v3075_v7 = vsel %vm2741_vm4, %v3061_v47, 0  ;;  %v2972_v19 = vld [vmem:[#allocation3 + $0x10] ss:$2 sm:$0xff]  ;;  %v3454_v34 = vld [vmem:[%s3784_s13 + $0x40] ss:$2 sm:$0xff] }
 0x260   : > { %v2636_v61 = vsel %vm2606_vm9, %v2603_v58, %v2279_v31  ;;  %3084 = vmatpush.bf16.msrb.mxu2 %v3075_v7  ;;  %v3456_v47 = vld [vmem:[%s3784_s13 + $0x60] ss:$2 sm:$0xff] }
 0x261   : > { %v2669_v33 = vsel %vm2639_vm10, %v2636_v61, %v2391_v54  ;;  %v2381_v54 = vpop.permute.xlu2 %2380  ;;  %v3002_v61 = vld [vmem:[#allocation3 + $0x1] ss:$2 sm:$0xff] }
 0x262   : > { %v1709_v22 = vpop.permute.xlu1 %1708  ;;  %v1609_v12 = vpop.permute.xlu0 %1608 }
 0x263   : > { %v2774_v39 = vpop.f32.mrf.mxu1  ;;  %v2461_v2 = vsel %vm566_vm0, %v2423_v42, %v1709_v22  ;;  %v2441_v14 = vsel %vm464_vm1, %v4419_v38, %v1609_v12  ;;  %v3210_v22 = vadd.f32 %v3196_v23, %v3195_v53  ;;  %v3008_v42 = vld [vmem:[#allocation3 + $0x31] ss:$2 sm:$0xff] }
 0x264   : > { %v2846_v56 = vmul.f32 %v4424_v59, %v2774_v39  ;;  %v2494_v41 = vsel %vm2474_vm5, %v2461_v2, %v1821_v21  ;;  %v3209_v21 = vadd.f32 %v3194_v3, %v3193_v5  ;;  %v3004_v2 = vld [vmem:[#allocation3 + $0x11] ss:$2 sm:$0xff]  ;;  %v3472_v3 = vld [vmem:[%s3784_s13 + $0x61] ss:$2 sm:$0xff] }
 0x265   : > { %v3471_v5 = vld [vmem:[%s3784_s13 + $0x51] ss:$2 sm:$0xff]  ;;  %v3199_v7 = vadd.f32 %v3472_v3, %v3456_v47 }
 0x266   : > { %v2882_v60 = vadd.f32 %v4434_v55, %v2846_v56  ;;  %v3217_v62 = vpack.c.bf16 %v3210_v22, %v3209_v21 }
 0x268   : > { %v2914_v24 = vmax.f32 %v2882_v60, 0.0  ;;  %3444 = vmatmul.msk.bf16.gmra.mxu2 %vm2708_vm11, %v2667_v44  ;;  %3486 = vmatmul.msk.bf16.vlgmr.msrb.gmra.mxu3 %vm566_vm0, %v3217_v62 }
 0x26a   : > { %2946 = vst.msk [vmem:[#allocation3 + $0x40] sm:$0xff] %vm464_vm1, %v2914_v24  ;;  %v1933_v46 = vpop.permute.xlu1 %1932  ;;  %v2157_v28 = vpop.permute.xlu0 %2156 }
 0x26b   : > { %v2776_v51 = vpop.f32.mrf.mxu1  ;;  %v2527_v30 = vsel %vm2507_vm6, %v2494_v41, %v1933_v46  ;;  %v2169_v24 = vpop.permute.xlu2 %2168 }
 0x26c   : > { %v2847_v18 = vmul.f32 %v4424_v59, %v2776_v51  ;;  %v2560_v50 = vsel %vm2540_vm7, %v2527_v30, %v2045_v0  ;;  %v2970_v30 = vld [vmem:[#allocation3] ss:$2 sm:$0xff] }
 0x26d   : > { %v2593_v45 = vsel %vm2573_vm8, %v2560_v50, %v2157_v28  ;;  %v3034_v28 = vadd.f32 %v3004_v2, %v2972_v19  ;;  %v3033_v37 = vadd.f32 %v3002_v61, %v2970_v30 }
 0x26e   : > { %v2883_v26 = vadd.f32 %v4434_v55, %v2847_v18 }
 0x26f   : > { %v3049_v29 = vadd.f32 %v3034_v28, %v3033_v37 }
 0x270   : > { %v2915_v13 = vmax.f32 %v2883_v26, 0.0  ;;  %v2976_v26 = vld [vmem:[#allocation3 + $0x30] ss:$2 sm:$0xff] }
 0x272   : > { %2947 = vst.msk [vmem:[#allocation3 + $0x48] sm:$0xff] %vm464_vm1, %v2915_v13  ;;  %v1721_v49 = vpop.permute.xlu1 %1720  ;;  %v1945_v56 = vpop.permute.xlu0 %1944  ;;  %v2974_v13 = vld [vmem:[#allocation3 + $0x20] ss:$2 sm:$0xff] }
 0x273   : > { %v2473_v48 = vsel %vm566_vm0, %v2441_v14, %v1721_v49  ;;  %v3036_v49 = vadd.f32 %v3008_v42, %v2976_v26 }
 0x274   : > { %v2506_v32 = vsel %vm2474_vm5, %v2473_v48, %v1833_v15  ;;  %v3006_v15 = vld [vmem:[#allocation3 + $0x21] ss:$2 sm:$0xff] }
 0x275   : > { %v2539_v0 = vsel %vm2507_vm6, %v2506_v32, %v1945_v56  ;;  %v3035_v50 = vadd.f32 %v3006_v15, %v2974_v13 }
 0x277   : > { %v3050_v11 = vadd.f32 %v3036_v49, %v3035_v50 }
 0x278   : > { %3445 = vmatmul.msk.bf16.gmra.mxu2 %vm2708_vm11, %v2669_v33 }
 0x279   : > { %v2779_v27 = vpop.f32.mrf.mxu1  ;;  %v3057_v16 = vpack.c.bf16 %v3050_v11, %v3049_v29  ;;  %v2978_v32 = vld [vmem:[#allocation3 + $0x40] ss:$2 sm:$0xff] }
 0x27a   : > { %v2848_v31 = vmul.f32 %v4424_v59, %v2779_v27  ;;  %v2269_v35 = vpop.permute.xlu1 %2268  ;;  %v2281_v52 = vpop.permute.xlu0 %2280  ;;  %v3455_v27 = vld [vmem:[%s3784_s13 + $0x50] ss:$2 sm:$0xff] }
 0x27b   : > { %v2626_v36 = vsel %vm2606_vm9, %v2593_v45, %v2269_v35  ;;  %v3473_v45 = vld [vmem:[%s3784_s13 + $0x71] ss:$2 sm:$0xff]  ;;  %v3198_v35 = vadd.f32 %v3471_v5, %v3455_v27 }
 0x27c   : > { %v2884_v6 = vadd.f32 %v4434_v55, %v2848_v31  ;;  %v2659_v57 = vsel %vm2639_vm10, %v2626_v36, %v2381_v54  ;;  %v3197_v31 = vadd.f32 %v3470_v40, %v3454_v34  ;;  %v3200_v1 = vadd.f32 %v3473_v45, %v3457_v8 }
 0x27d   : > { %3440 = vmatmul.msk.bf16.gmra.mxu1 %vm2708_vm11, %v2659_v57 }
 0x27e   : > { %v2916_v39 = vmax.f32 %v2884_v6, 0.0  ;;  %v3211_v53 = vadd.f32 %v3198_v35, %v3197_v31  ;;  %v3212_v54 = vadd.f32 %v3200_v1, %v3199_v7  ;;  %v3458_v1 = vld [vmem:[%s3784_s13 + $0x80] ss:$2 sm:$0xff] }
 0x280   : > { %2948 = vst.msk [vmem:[#allocation3 + $0x50] sm:$0xff] %vm464_vm1, %v2916_v39  ;;  %v3218_v36 = vpack.c.bf16 %v3212_v54, %v3211_v53  ;;  %v3459_v53 = vld [vmem:[%s3784_s13 + $0x90] ss:$2 sm:$0xff]  ;;  %v3460_v54 = vld [vmem:[%s3784_s13 + $0xa0] ss:$2 sm:$0xff] }
 0x281   : > { %v2781_v43 = vpop.f32.mrf.mxu1 }
 0x282   : > { %v2849_v38 = vmul.f32 %v4424_v59, %v2781_v43  ;;  %v2057_v60 = vpop.permute.xlu1 %2056  ;;  %3487 = vmatmul.msk.bf16.gmra.mxu3 %vm566_vm0, %v3218_v36 }
 0x283   : > { %v2572_v9 = vsel %vm2540_vm7, %v2539_v0, %v2057_v60 }
 0x284   : > { %v2885_v44 = vadd.f32 %v4434_v55, %v2849_v38  ;;  %v2605_v17 = vsel %vm2573_vm8, %v2572_v9, %v2169_v24  ;;  %v3010_v38 = vld [vmem:[#allocation3 + $0x41] ss:$2 sm:$0xff] }
 0x285   : > { %v2638_v25 = vsel %vm2606_vm9, %v2605_v17, %v2281_v52  ;;  %v3037_v24 = vadd.f32 %v3010_v38, %v2978_v32 }
 0x286   : > { %v2917_v4 = vmax.f32 %v2885_v44, 0.0 }
 0x288   : > { %2949 = vst.msk [vmem:[#allocation3 + $0x58] sm:$0xff] %vm464_vm1, %v2917_v4 }
 0x28a   : > { %v2393_v46 = vpop.permute.xlu1 %2392  ;;  %v2784_v12 = vpop.f32.mrf.mxu1 }
 0x28b   : > { %v2850_v51 = vmul.f32 %v4424_v59, %v2784_v12  ;;  %v2671_v18 = vsel %vm2639_vm10, %v2638_v25, %v2393_v46 }
 0x28c   : > { %3446 = vmatmul.msk.bf16.gmra.mxu2 %vm2708_vm11, %v2671_v18 }
 0x28d   : > { %v2886_v63 = vadd.f32 %v4434_v55, %v2850_v51 }
 0x28f   : > { %v2918_v10 = vmax.f32 %v2886_v63, 0.0  ;;  %v2980_v56 = vld [vmem:[#allocation3 + $0x50] ss:$2 sm:$0xff]  ;;  %v3012_v62 = vld [vmem:[#allocation3 + $0x51] ss:$2 sm:$0xff] }
 0x290   : > { %v3038_v0 = vadd.f32 %v3012_v62, %v2980_v56 }
 0x291   : > { %2950 = vst.msk [vmem:[#allocation3 + $0x60] sm:$0xff] %vm464_vm1, %v2918_v10 }
 0x292   : > { %v2786_v58 = vpop.f32.mrf.mxu1  ;;  %v3051_v46 = vadd.f32 %v3038_v0, %v3037_v24 }
 0x293   : > { %v2851_v41 = vmul.f32 %v4424_v59, %v2786_v58 }
 0x295   : > { %v2887_v33 = vadd.f32 %v4434_v55, %v2851_v41 }
 0x297   : > { %v2919_v20 = vmax.f32 %v2887_v33, 0.0 }
 0x299   : > { %2951 = vst.msk [vmem:[#allocation3 + $0x68] sm:$0xff] %vm464_vm1, %v2919_v20 }
 0x29c   : > { %3447 = vmatmul.msk.bf16.vlgmr.msrb.gmra.mxu2 %vm464_vm1, %v3057_v16 }
 0x2a0   : > { %v2982_v43 = vld [vmem:[#allocation3 + $0x60] ss:$2 sm:$0xff]  ;;  %v3014_v60 = vld [vmem:[#allocation3 + $0x61] ss:$2 sm:$0xff] }
 0x2a1   : > { %v3039_v4 = vadd.f32 %v3014_v60, %v2982_v43 }
 0x2a3   : > { %v2789_v23 = vpop.f32.mrf.mxu1 }
 0x2a4   : > { %v2852_v21 = vmul.f32 %v4424_v59, %v2789_v23  ;;  %v3461_v23 = vld [vmem:[%s3784_s13 + $0xb0] ss:$2 sm:$0xff] }
 0x2a6   : > { %v2888_v14 = vadd.f32 %v4434_v55, %v2852_v21  ;;  %v3474_v21 = vld [vmem:[%s3784_s13 + $0x81] ss:$2 sm:$0xff] }
 0x2a8   : > { %v2920_v6 = vmax.f32 %v2888_v14, 0.0  ;;  %v3475_v14 = vld [vmem:[%s3784_s13 + $0x91] ss:$2 sm:$0xff] }
 0x2aa   : > { %2952 = vst.msk [vmem:[#allocation3 + $0x70] sm:$0xff] %vm464_vm1, %v2920_v6  ;;  %v3476_v6 = vld [vmem:[%s3784_s13 + $0xa1] ss:$2 sm:$0xff] }
 0x2ab   : > { %v2791_v57 = vpop.f32.mrf.mxu1 }
 0x2ac   : > { %v2853_v48 = vmul.f32 %v4424_v59, %v2791_v57  ;;  %v3477_v57 = vld [vmem:[%s3784_s13 + $0xb1] ss:$2 sm:$0xff] }
 0x2ad   : > { %v3204_v56 = vadd.f32 %v3477_v57, %v3461_v23 }
 0x2ae   : > { %v2889_v22 = vadd.f32 %v4434_v55, %v2853_v48  ;;  %v3201_v48 = vadd.f32 %v3474_v21, %v3458_v1 }
 0x2b0   : > { %v2921_v39 = vmax.f32 %v2889_v22, 0.0  ;;  %v3202_v22 = vadd.f32 %v3475_v14, %v3459_v53 }
 0x2b2   : > { %2953 = vst.msk [vmem:[#allocation3 + $0x78] sm:$0xff] %vm464_vm1, %v2921_v39  ;;  %v3203_v39 = vadd.f32 %v3476_v6, %v3460_v54  ;;  %v3213_v43 = vadd.f32 %v3202_v22, %v3201_v48 }
 0x2b4   : > { %v3214_v38 = vadd.f32 %v3204_v56, %v3203_v39  ;;  %v4743_v39 = vld [vmem:[%s4842_s11] ss:$0 sm:$0xff] }
 0x2b6   : > { %v3219_v0 = vpack.c.bf16 %v3214_v38, %v3213_v43  ;;  %v4756_v38 = vld [vmem:[%s4843_s12] ss:$0 sm:$0xff] }
 0x2b8   : > { %3488 = vmatmul.msk.bf16.gmra.mxu3 %vm566_vm0, %v3219_v0 }
 0x2b9   : > { %v2984_v44 = vld [vmem:[#allocation3 + $0x70] ss:$2 sm:$0xff]  ;;  %v3016_v9 = vld [vmem:[#allocation3 + $0x71] ss:$2 sm:$0xff] }
 0x2ba   : > { %v3040_v17 = vadd.f32 %v3016_v9, %v2984_v44 }
 0x2bb   : > { %v2804_v52 = vpop.f32.mrf.mxu2 }
 0x2bc   : > { %v2858_v25 = vmul.f32 %v4424_v59, %v2804_v52  ;;  %v3052_v12 = vadd.f32 %v3040_v17, %v3039_v4 }
 0x2be   : > { %v2894_v51 = vadd.f32 %v4434_v55, %v2858_v25  ;;  %v3058_v18 = vpack.c.bf16 %v3052_v12, %v3051_v46 }
 0x2c0   : > { %v2926_v63 = vmax.f32 %v2894_v51, 0.0  ;;  %3448 = vmatmul.msk.bf16.gmra.mxu2 %vm464_vm1, %v3058_v18  ;;  %v3462_v51 = vld [vmem:[%s3784_s13 + $0xc0] ss:$2 sm:$0xff]  ;;  %v3463_v18 = vld [vmem:[%s3784_s13 + $0xd0] ss:$2 sm:$0xff] }
 0x2c2   : > { %2958 = vst.msk [vmem:[#allocation3 + $0xa0] sm:$0xff] %vm464_vm1, %v2926_v63  ;;  %v3464_v63 = vld [vmem:[%s3784_s13 + $0xe0] ss:$2 sm:$0xff] }
 0x2c3   : > { %v2806_v10 = vpop.f32.mrf.mxu2 }
 0x2c4   : > { %v2859_v26 = vmul.f32 %v4424_v59, %v2806_v10 }
 0x2c6   : > { %v2895_v42 = vadd.f32 %v4434_v55, %v2859_v26  ;;  %v3465_v26 = vld [vmem:[%s3784_s13 + $0xf0] ss:$2 sm:$0xff] }
 0x2c8   : > { %v2927_v19 = vmax.f32 %v2895_v42, 0.0 }
 0x2c9   : > { %v2794_v2 = vpop.f32.mrf.mxu1 }
 0x2ca   : > { %2959 = vst.msk [vmem:[#allocation3 + $0xa8] sm:$0xff] %vm464_vm1, %v2927_v19  ;;  %v2854_v13 = vmul.f32 %v4424_v59, %v2794_v2  ;;  %v3478_v2 = vld [vmem:[%s3784_s13 + $0xc1] ss:$2 sm:$0xff] }
 0x2cb   : > { %v2809_v15 = vpop.f32.mrf.mxu2 }
 0x2cc   : > { %v2890_v58 = vadd.f32 %v4434_v55, %v2854_v13  ;;  %v2860_v49 = vmul.f32 %v4424_v59, %v2809_v15  ;;  %v3479_v13 = vld [vmem:[%s3784_s13 + $0xd1] ss:$2 sm:$0xff]  ;;  %v3480_v15 = vld [vmem:[%s3784_s13 + $0xe1] ss:$2 sm:$0xff] }
 0x2ce   : > { %v2922_v41 = vmax.f32 %v2890_v58, 0.0  ;;  %v2896_v30 = vadd.f32 %v4434_v55, %v2860_v49  ;;  %v3481_v49 = vld [vmem:[%s3784_s13 + $0xf1] ss:$2 sm:$0xff] }
 0x2d0   : > { %2954 = vst.msk [vmem:[#allocation3 + $0x80] sm:$0xff] %vm464_vm1, %v2922_v41  ;;  %v2928_v61 = vmax.f32 %v2896_v30, 0.0  ;;  %v3205_v41 = vadd.f32 %v3478_v2, %v3462_v51  ;;  %v3206_v30 = vadd.f32 %v3479_v13, %v3463_v18 }
 0x2d1   : > { %v2796_v28 = vpop.f32.mrf.mxu1 }
 0x2d2   : > { %2960 = vst.msk [vmem:[#allocation3 + $0xb0] sm:$0xff] %vm464_vm1, %v2928_v61  ;;  %v2855_v50 = vmul.f32 %v4424_v59, %v2796_v28  ;;  %v3207_v61 = vadd.f32 %v3480_v15, %v3464_v63 }
 0x2d3   : > { %v2811_v33 = vpop.f32.mrf.mxu2 }
 0x2d4   : > { %v2891_v37 = vadd.f32 %v4434_v55, %v2855_v50  ;;  %v2861_v11 = vmul.f32 %v4424_v59, %v2811_v33  ;;  %v3208_v50 = vadd.f32 %v3481_v49, %v3465_v26 }
 0x2d6   : > { %v2923_v20 = vmax.f32 %v2891_v37, 0.0  ;;  %v2897_v29 = vadd.f32 %v4434_v55, %v2861_v11  ;;  %v3215_v37 = vadd.f32 %v3206_v30, %v3205_v41 }
 0x2d8   : > { %2955 = vst.msk [vmem:[#allocation3 + $0x88] sm:$0xff] %vm464_vm1, %v2923_v20  ;;  %v2929_v16 = vmax.f32 %v2897_v29, 0.0  ;;  %v3216_v20 = vadd.f32 %v3208_v50, %v3207_v61 }
 0x2da   : > { %2961 = vst.msk [vmem:[#allocation3 + $0xb8] sm:$0xff] %vm464_vm1, %v2929_v16  ;;  %v3220_v16 = vpack.c.bf16 %v3216_v20, %v3215_v37 }
 0x2db   : > { %v2814_v34 = vpop.f32.mrf.mxu2 }
 0x2dc   : > { %v2862_v27 = vmul.f32 %v4424_v59, %v2814_v34  ;;  %3489 = vmatmul.msk.bf16.gmra.mxu3 %vm566_vm0, %v3220_v16 }
 0x2de   : > { %v2898_v47 = vadd.f32 %v4434_v55, %v2862_v27 }
 0x2e0   : > { %v2930_v8 = vmax.f32 %v2898_v47, 0.0  ;;  %v2990_v47 = vld [vmem:[#allocation3 + $0xa0] ss:$2 sm:$0xff] }
 0x2e1   : > { %v2992_v34 = vld [vmem:[#allocation3 + $0xb0] ss:$2 sm:$0xff]  ;;  %v3024_v27 = vld [vmem:[#allocation3 + $0xb1] ss:$2 sm:$0xff] }
 0x2e2   : > { %2962 = vst.msk [vmem:[#allocation3 + $0xc0] sm:$0xff] %vm464_vm1, %v2930_v8  ;;  %v2986_v8 = vld [vmem:[#allocation3 + $0x80] ss:$2 sm:$0xff] }
 0x2e3   : > { %v2816_v40 = vpop.f32.mrf.mxu2 }
 0x2e4   : > { %v2863_v5 = vmul.f32 %v4424_v59, %v2816_v40  ;;  %v3018_v40 = vld [vmem:[#allocation3 + $0x81] ss:$2 sm:$0xff] }
 0x2e5   : > { %v3041_v1 = vadd.f32 %v3018_v40, %v2986_v8 }
 0x2e6   : > { %v2899_v3 = vadd.f32 %v4434_v55, %v2863_v5  ;;  %v3022_v5 = vld [vmem:[#allocation3 + $0xa1] ss:$2 sm:$0xff] }
 0x2e7   : > { %v3043_v54 = vadd.f32 %v3022_v5, %v2990_v47 }
 0x2e8   : > { %v2931_v45 = vmax.f32 %v2899_v3, 0.0 }
 0x2ea   : > { %2963 = vst.msk [vmem:[#allocation3 + $0xc8] sm:$0xff] %vm464_vm1, %v2931_v45  ;;  %v3044_v45 = vadd.f32 %v3024_v27, %v2992_v34 }
 0x2eb   : > { %v2819_v31 = vpop.f32.mrf.mxu2  ;;  %v3250_v48 = vpop.f32.mrf.mxu3 }
 0x2ec   : > { %v2864_v35 = vmul.f32 %v4424_v59, %v2819_v31  ;;  %v3054_v21 = vadd.f32 %v3044_v45, %v3043_v54  ;;  %v3274_v43 = vmul.f32 %v4743_v39, %v3250_v48 }
 0x2ee   : > { %v2900_v7 = vadd.f32 %v4434_v55, %v2864_v35 }
 0x2f0   : > { %v2932_v36 = vmax.f32 %v2900_v7, 0.0 }
 0x2f2   : > { %2964 = vst.msk [vmem:[#allocation3 + $0xd0] sm:$0xff] %vm464_vm1, %v2932_v36 }
 0x2f3   : > { %v2821_v62 = vpop.f32.mrf.mxu2 }
 0x2f4   : > { %v2865_v32 = vmul.f32 %v4424_v59, %v2821_v62 }
 0x2f6   : > { %v2901_v60 = vadd.f32 %v4434_v55, %v2865_v32  ;;  %v4750_v32 = vld [vmem:[%s4839_s8] ss:$0 sm:$0xff] }
 0x2f8   : > { %v2933_v44 = vmax.f32 %v2901_v60, 0.0 }
 0x2fa   : > { %2965 = vst.msk [vmem:[#allocation3 + $0xd8] sm:$0xff] %vm464_vm1, %v2933_v44  ;;  %v2799_v9 = vpop.f32.mrf.mxu1  ;;  %v3286_v44 = vadd.f32 %v4756_v38, %v3274_v43 }
 0x2fb   : > { %v2856_v24 = vmul.f32 %v4424_v59, %v2799_v9  ;;  %v2824_v4 = vpop.f32.mrf.mxu2  ;;  %v3252_v9 = vpop.f32.mrf.mxu3 }
 0x2fc   : > { %v2866_v17 = vmul.f32 %v4424_v59, %v2824_v4  ;;  %v3275_v18 = vmul.f32 %v4743_v39, %v3252_v9 }
 0x2fd   : > { %v2892_v52 = vadd.f32 %v4434_v55, %v2856_v24 }
 0x2fe   : > { %v2902_v25 = vadd.f32 %v4434_v55, %v2866_v17  ;;  %v3287_v49 = vadd.f32 %v4756_v38, %v3275_v18 }
 0x2ff   : > { %v2924_v46 = vmax.f32 %v2892_v52, 0.0  ;;  %v2994_v52 = vld [vmem:[#allocation3 + $0xc0] ss:$2 sm:$0xff] }
 0x300   : > { %v2934_v12 = vmax.f32 %v2902_v25, 0.0 }
 0x301   : > { %2956 = vst.msk [vmem:[#allocation3 + $0x90] sm:$0xff] %vm464_vm1, %v2924_v46  ;;  %v2996_v24 = vld [vmem:[#allocation3 + $0xd0] ss:$2 sm:$0xff]  ;;  %v3028_v4 = vld [vmem:[#allocation3 + $0xd1] ss:$2 sm:$0xff] }
 0x302   : > { %2966 = vst.msk [vmem:[#allocation3 + $0xe0] sm:$0xff] %vm464_vm1, %v2934_v12  ;;  %v2801_v10 = vpop.f32.mrf.mxu1  ;;  %v3026_v46 = vld [vmem:[#allocation3 + $0xc1] ss:$2 sm:$0xff]  ;;  %v3046_v63 = vadd.f32 %v3028_v4, %v2996_v24 }
 0x303   : > { %v2857_v42 = vmul.f32 %v4424_v59, %v2801_v10  ;;  %v2826_v19 = vpop.f32.mrf.mxu2 }
 0x304   : > { %v2867_v58 = vmul.f32 %v4424_v59, %v2826_v19  ;;  %v3045_v19 = vadd.f32 %v3026_v46, %v2994_v52 }
 0x305   : > { %v2893_v28 = vadd.f32 %v4434_v55, %v2857_v42  ;;  %v3255_v37 = vpop.f32.mrf.mxu3 }
 0x306   : > { %v2903_v33 = vadd.f32 %v4434_v55, %v2867_v58  ;;  %v3055_v41 = vadd.f32 %v3046_v63, %v3045_v19 }
 0x307   : > { %v2925_v11 = vmax.f32 %v2893_v28, 0.0 }
 0x308   : > { %v2935_v29 = vmax.f32 %v2903_v33, 0.0 }
 0x309   : > { %2957 = vst.msk [vmem:[#allocation3 + $0x98] sm:$0xff] %vm464_vm1, %v2925_v11  ;;  %v3276_v11 = vmul.f32 %v4743_v39, %v3255_v37 }
 0x30a   : > { %2967 = vst.msk [vmem:[#allocation3 + $0xe8] sm:$0xff] %vm464_vm1, %v2935_v29 }
 0x30b   : > { %v3288_v16 = vadd.f32 %v4756_v38, %v3276_v11 }
 0x30d   : > { %v3257_v34 = vpop.f32.mrf.mxu3 }
 0x30e   : > { %v3277_v8 = vmul.f32 %v4743_v39, %v3257_v34 }
 0x30f   : > { %v2829_v3 = vpop.f32.mrf.mxu2 }
 0x310   : > { %v2868_v31 = vmul.f32 %v4424_v59, %v2829_v3  ;;  %v2988_v35 = vld [vmem:[#allocation3 + $0x90] ss:$2 sm:$0xff]  ;;  %v3020_v7 = vld [vmem:[#allocation3 + $0x91] ss:$2 sm:$0xff]  ;;  %v3289_v45 = vadd.f32 %v4756_v38, %v3277_v8 }
 0x311   : > { %v3042_v53 = vadd.f32 %v3020_v7, %v2988_v35  ;;  %v3566_v59 = vld [vmem:[%s4836_s5] ss:$0 sm:$0xff]  ;;  %v2998_v25 = vld [vmem:[#allocation3 + $0xe0] ss:$2 sm:$0xff]  ;;  %v3030_v12 = vld [vmem:[#allocation3 + $0xe1] ss:$2 sm:$0xff] }
 0x312   : > { %v2904_v36 = vadd.f32 %v4434_v55, %v2868_v31  ;;  %v3047_v2 = vadd.f32 %v3030_v12, %v2998_v25 }
 0x313   : > { %v3053_v23 = vadd.f32 %v3042_v53, %v3041_v1 }
 0x314   : > { %v2936_v14 = vmax.f32 %v2904_v36, 0.0 }
 0x315   : > { %v3059_v6 = vpack.c.bf16 %v3054_v21, %v3053_v23 }
 0x316   : > { %2968 = vst.msk [vmem:[#allocation3 + $0xf0] sm:$0xff] %vm464_vm1, %v2936_v14 }
 0x317   : > { %v2831_v57 = vpop.f32.mrf.mxu2  ;;  %3449 = vmatmul.msk.bf16.gmra.mxu2 %vm464_vm1, %v3059_v6 }
 0x318   : > { %v2869_v22 = vmul.f32 %v3566_v59, %v2831_v57 }
 0x31a   : > { %v2905_v56 = vadd.f32 %v4434_v55, %v2869_v22  ;;  %v4762_v55 = vld [vmem:[%s4840_s9] ss:$0 sm:$0xff] }
 0x31c   : > { %v2937_v62 = vmax.f32 %v2905_v56, 0.0 }
 0x31e   : > { %2969 = vst.msk [vmem:[#allocation3 + $0xf8] sm:$0xff] %vm464_vm1, %v2937_v62 }
 0x31f   : > { %v3086_v60 = vpop.f32.mrf.mxu2 }
 0x320   : > { %v3110_v0 = vmul.f32 %v4750_v32, %v3086_v60 }
 0x322   : > { %v3122_v17 = vadd.f32 %v4762_v55, %v3110_v0 }
 0x324   : > { %v3294_v51 = vadd.f32 %v3286_v44, %v3122_v17 }
 0x325   : > { %v3000_v10 = vld [vmem:[#allocation3 + $0xf0] ss:$2 sm:$0xff]  ;;  %v3032_v26 = vld [vmem:[#allocation3 + $0xf1] ss:$2 sm:$0xff] }
 0x326   : > { %v3302_v42 = vmax.f32 %v3294_v51, 0.0  ;;  %v3048_v13 = vadd.f32 %v3032_v26, %v3000_v10 }
 0x327   : > { %v3088_v15 = vpop.f32.mrf.mxu2 }
 0x328   : > { %3310 = vst.msk [vmem:[%s4772_s17] sm:$0xff] %vm2507_vm6, %v3302_v42  ;;  %v3111_v58 = vmul.f32 %v4750_v32, %v3088_v15  ;;  %v3056_v30 = vadd.f32 %v3048_v13, %v3047_v2 }
 0x32a   : > { %v3123_v61 = vadd.f32 %v4762_v55, %v3111_v58  ;;  %v3060_v28 = vpack.c.bf16 %v3056_v30, %v3055_v41 }
 0x32c   : > { %v3295_v50 = vadd.f32 %v3287_v49, %v3123_v61  ;;  %3450 = vmatmul.msk.bf16.gmra.mxu2 %vm464_vm1, %v3060_v28 }
 0x32e   : > { %v3303_v33 = vmax.f32 %v3295_v50, 0.0 }
 0x330   : > { %3311 = vst.msk [vmem:[%s4772_s17 + $0x8] sm:$0xff] %vm2507_vm6, %v3303_v33 }
 0x33b   : > { %v3260_v1 = vpop.f32.mrf.mxu3 }
 0x33c   : > { %v3278_v53 = vmul.f32 %v4743_v39, %v3260_v1 }
 0x33e   : > { %v3290_v36 = vadd.f32 %v4756_v38, %v3278_v53 }
 0x343   : > { %v3091_v20 = vpop.f32.mrf.mxu2  ;;  %v3262_v14 = vpop.f32.mrf.mxu3 }
 0x344   : > { %v3112_v29 = vmul.f32 %v4750_v32, %v3091_v20  ;;  %v3279_v48 = vmul.f32 %v4743_v39, %v3262_v14 }
 0x346   : > { %v3124_v27 = vadd.f32 %v4762_v55, %v3112_v29  ;;  %v3291_v56 = vadd.f32 %v4756_v38, %v3279_v48 }
 0x348   : > { %v3296_v47 = vadd.f32 %v3288_v16, %v3124_v27 }
 0x34a   : > { %v3304_v40 = vmax.f32 %v3296_v47, 0.0 }
 0x34b   : > { %v3093_v5 = vpop.f32.mrf.mxu2 }
 0x34c   : > { %3312 = vst.msk [vmem:[%s4772_s17 + $0x10] sm:$0xff] %vm2507_vm6, %v3304_v40  ;;  %v3113_v3 = vmul.f32 %v4750_v32, %v3093_v5 }
 0x34e   : > { %v3125_v31 = vadd.f32 %v4762_v55, %v3113_v3 }
 0x350   : > { %v3297_v35 = vadd.f32 %v3289_v45, %v3125_v31 }
 0x352   : > { %v3305_v7 = vmax.f32 %v3297_v35, 0.0 }
 0x354   : > { %3313 = vst.msk [vmem:[%s4772_s17 + $0x18] sm:$0xff] %vm2507_vm6, %v3305_v7 }
 0x35f   : > { %v3265_v0 = vpop.f32.mrf.mxu3 }
 0x360   : > { %v3280_v44 = vmul.f32 %v4743_v39, %v3265_v0 }
 0x362   : > { %v3292_v24 = vadd.f32 %v4756_v38, %v3280_v44 }
 0x367   : > { %v3267_v52 = vpop.f32.mrf.mxu3 }
 0x368   : > { %v3281_v12 = vmul.f32 %v4743_v39, %v3267_v52 }
 0x36a   : > { %v3293_v63 = vadd.f32 %v4756_v38, %v3281_v12 }
 0x39a   : > { %v3096_v54 = vpop.f32.mrf.mxu2 }
 0x39b   : > { %v3114_v23 = vmul.f32 %v4750_v32, %v3096_v54 }
 0x39d   : > { %v3126_v21 = vadd.f32 %v4762_v55, %v3114_v23 }
 0x39f   : > { %v3298_v6 = vadd.f32 %v3290_v36, %v3126_v21 }
 0x3a1   : > { %v3306_v57 = vmax.f32 %v3298_v6, 0.0 }
 0x3a2   : > { %v3098_v59 = vpop.f32.mrf.mxu2 }
 0x3a3   : > { %3314 = vst.msk [vmem:[%s4772_s17 + $0x20] sm:$0xff] %vm2507_vm6, %v3306_v57  ;;  %v3115_v22 = vmul.f32 %v4750_v32, %v3098_v59 }
 0x3a5   : > { %v3127_v62 = vadd.f32 %v4762_v55, %v3115_v22 }
 0x3a7   : > { %v3299_v43 = vadd.f32 %v3291_v56, %v3127_v62 }
 0x3a9   : > { %v3307_v60 = vmax.f32 %v3299_v43, 0.0 }
 0x3ab   : > { %3315 = vst.msk [vmem:[%s4772_s17 + $0x28] sm:$0xff] %vm2507_vm6, %v3307_v60 }
 0x3af   : > { %v3101_v9 = vpop.f32.mrf.mxu2 }
 0x3b0   : > { %v3116_v4 = vmul.f32 %v4750_v32, %v3101_v9 }
 0x3b2   : > { %v3128_v17 = vadd.f32 %v4762_v55, %v3116_v4 }
 0x3b4   : > { %v3300_v25 = vadd.f32 %v3292_v24, %v3128_v17 }
 0x3b6   : > { %v3308_v46 = vmax.f32 %v3300_v25, 0.0 }
 0x3b7   : > { %v3103_v51 = vpop.f32.mrf.mxu2 }
 0x3b8   : > { %3316 = vst.msk [vmem:[%s4772_s17 + $0x30] sm:$0xff] %vm2507_vm6, %v3308_v46  ;;  %v3117_v18 = vmul.f32 %v4750_v32, %v3103_v51 }
 0x3ba   : > { %v3129_v10 = vadd.f32 %v4762_v55, %v3117_v18 }
 0x3bc   : > { %v3301_v26 = vadd.f32 %v3293_v63, %v3129_v10 }
 0x3be   : > { %v3309_v42 = vmax.f32 %v3301_v26, 0.0 }
 0x3c0   : > { %3317 = vst.msk [vmem:[%s4772_s17 + $0x38] sm:$0xff] %vm2507_vm6, %v3309_v42 }
 0x3c1 PF: > { %s4856_s28 = sld [smem:[#allocation8_spill]]  ;;  %s4859_s25 = smov %s3623_s26 }
 0x3c2   : > { %s4857_s29 = sld [smem:[#allocation7_spill]] }
 0x3c3   : > { %s4858_s27 = sld [smem:[#allocation9_spill]] }
 0x3c7   : > { %p23_p7 = scmp.ge.s32.totalorder %s4856_s28, 4  }
 0x3c8   : > { %s4860_s26 = smov %s4857_s29 }
 0x3c9   :  { %25 = sbr.rel (!%p23_p7) target bundleno = 5 (0x5), region = 177 }
 0x3ce   :  { %3339 = vsyncpa [#allocation5], 1 }
 0x3cf   :  { %3341 = vsyncpa [#allocation5 + $0x1], 1 }

</bundles_post_ra>
